<compile_context>
chip_gen: v5e
topology: v5e:2x2
jax: 0.10.0
libtpu: 0.0.40
codegen_flags: <defaults>
</compile_context>

<pallas_src>
import functools

import jax
import jax.numpy as jnp
from jax import lax
from jax.experimental import pallas as pl
from jax.experimental.pallas import tpu as pltpu

EPS = 1e-5  # BatchNorm2d default eps


# --------------------------- fused forward kernel -----------------------------------
def _fused_kernel(p_ref, wc_ref, g_ref, b_ref, wfc_ref, bfc_ref, o_ref,
                  y2_ref, pool_ref, pb_ref, *, N, Cout, PH, PW):
    S = PH * PW              # pooled spatial positions (36)
    T = S * N                # pooled row count (72)
    M = 4 * T                # conv output rows = N*OH*OW (288)

    # ---- conv as ONE dense MXU matmul (bf16 in, f32 acc) + ReLU ---------------------
    y = jnp.dot(p_ref[...], wc_ref[...], preferred_element_type=jnp.float32)
    y2_ref[...] = jnp.maximum(y, 0.0)                       # (M, Cout) f32 in VMEM

    # ---- BatchNorm2d batch statistics (training mode), two-pass, per channel --------
    cnt = float(M)
    mean = jnp.sum(y2_ref[...], axis=0, keepdims=True) / cnt          # (1, Cout)
    d = y2_ref[...] - mean
    var = jnp.sum(d * d, axis=0, keepdims=True) / cnt                 # (1, Cout)
    inv = lax.rsqrt(var + EPS)
    scale = inv * g_ref[...]                                           # (1, Cout)
    shift = b_ref[...] - mean * scale                                  # (1, Cout)

    # ---- 2x2 mean pool: rows are (dh, dw, ph, pw, n), so the four pool taps are -----
    # ---- four contiguous, tile-aligned quarter slabs; BN affine folded after pool ---
    psum = (y2_ref[0 * T:1 * T, :] + y2_ref[1 * T:2 * T, :] +
            y2_ref[2 * T:3 * T, :] + y2_ref[3 * T:4 * T, :])           # (T, Cout)
    pool_ref[...] = ((0.25 * psum) * scale + shift).astype(jnp.bfloat16)

    # ---- regroup pooled rows (ph, pw, n) into a lane-dense (N, S*Cout) FC input -----
    for s in range(S):
        pb_ref[:, s * Cout:(s + 1) * Cout] = pool_ref[s * N:(s + 1) * N, :]

    # ---- FC: single bf16 x bf16 -> f32 MXU matmul over the 9216 feature axis --------
    logits = lax.dot_general(pb_ref[...], wfc_ref[...],
                             (((1,), (1,)), ((), ())),
                             preferred_element_type=jnp.float32)       # (N, 10)
    logits = logits + bfc_ref[...]

    # ---- log_softmax(dim=1) -----------------------------------------------------------
    mx = jnp.max(logits, axis=1, keepdims=True)
    sh = logits - mx
    lse = jnp.log(jnp.sum(jnp.exp(sh), axis=1, keepdims=True))
    o_ref[...] = sh - lse            # (N, 10) masked store; accepted - 80 bytes


# --------------------------- one-time parameter preparation --------------------------
def prepare_params(params):
    """Hoisted layout work (done once, outside the forward path)."""
    w_conv, gamma, beta, w_fc, b_fc = params
    Cout, Cin, KH, KW = w_conv.shape
    S = w_fc.shape[1] // Cout        # pooled spatial positions (36)

    # (a) dense im2col conv weight: wconv2d[(kh*KW+kw)*Cin + c, co] = w_conv[co, c, kh, kw]
    wconv2d = (jnp.transpose(w_conv, (2, 3, 1, 0))
                  .reshape(KH * KW * Cin, Cout).astype(jnp.bfloat16))

    # (b) fc weight permuted from PyTorch's (c, ph, pw) flatten order to (s=ph*PW+pw, c),
    #     kept with 10 on the sublane axis so the VMEM tile stays lane-dense; stored bf16.
    wfc_p = (w_fc.reshape(10, Cout, S)
                  .transpose(0, 2, 1)
                  .reshape(10, S * Cout).astype(jnp.bfloat16))

    return (wconv2d,
            gamma.reshape(1, Cout).astype(jnp.float32),
            beta.reshape(1, Cout).astype(jnp.float32),
            wfc_p,
            b_fc.reshape(1, 10).astype(jnp.float32))


# --------------------------- wrapper --------------------------------------------------
def student_forward(x, prep):
    """x: (N, Cin, H, W) float32 (NCHW, like PyTorch). Returns (N, 10) log-probs."""
    wconv2d, g2, b2, wfc_p, bfc2 = prep
    N, Cin, H, W = x.shape
    KH = KW = 6
    OH, OW = H - KH + 1, W - KW + 1
    Cout = g2.shape[-1]
    PH, PW = OH // 2, OW // 2
    # AdaptiveAvgPool2d((6,6)) == exact 2x2 mean pool only on the 12x12 map that
    # fc1(9216 = 256*6*6) requires.
    assert OH == 12 and OW == 12 and PH * PW * Cout == wfc_p.shape[-1], \
        "Student_Network_one_conv requires H = W = 17 (conv k=6 -> 12x12 -> 6x6)"
    # TODO(synk): general AdaptiveAvgPool2d((6,6)) (uneven/overlapping windows) for maps != 12x12.

    # --- full im2col patch matrix built once in the wrapper (~81 KB bf16). Rows ordered
    #     (dh, dw, ph, pw, n) so the in-kernel 2x2 pool is four contiguous slab adds.
    xt = jnp.transpose(x, (0, 2, 3, 1))                              # (N, H, W, Cin)
    cols = [xt[:, kh:kh + OH, kw:kw + OW, :]
            for kh in range(KH) for kw in range(KW)]                 # each (N, OH, OW, Cin)
    p = jnp.stack(cols, axis=3)                                      # (N, OH, OW, KH*KW, Cin)
    p = p.reshape(N, PH, 2, PW, 2, KH * KW * Cin)                    # (n, ph, dh, pw, dw, f)
    p = jnp.transpose(p, (2, 4, 1, 3, 0, 5))                         # (dh, dw, ph, pw, n, f)
    patches = p.reshape(N * OH * OW, KH * KW * Cin).astype(jnp.bfloat16)

    kernel = functools.partial(_fused_kernel, N=N, Cout=Cout, PH=PH, PW=PW)

    def fs(shape):
        z = (0,) * len(shape)
        return pl.BlockSpec(shape, lambda i, _z=z: _z)

    out = pl.pallas_call(
        kernel,
        out_shape=jax.ShapeDtypeStruct((N, 10), jnp.float32),
        grid=(1,),
        in_specs=[fs(patches.shape), fs(wconv2d.shape), fs(g2.shape), fs(b2.shape),
                  fs(wfc_p.shape), fs(bfc2.shape)],
        out_specs=fs((N, 10)),
        scratch_shapes=[
            pltpu.VMEM((N * OH * OW, Cout), jnp.float32),     # relu(conv) activations (288,256)
            pltpu.VMEM((PH * PW * N, Cout), jnp.bfloat16),    # pooled+BN feats, rows (ph,pw,n)
            pltpu.VMEM((N, PH * PW * Cout), jnp.bfloat16),    # lane-dense FC input (N, 9216)
        ],
        compiler_params=pltpu.CompilerParams(
            dimension_semantics=("arbitrary",),
            vmem_limit_bytes=32 * 1024 * 1024),
    )(patches, wconv2d, g2, b2, wfc_p, bfc2)
    return out


# --------------------------- pure-JAX reference (for self-check) ---------------------
def reference_forward(x, params):
    w_conv, gamma, beta, w_fc, b_fc = params
    y = lax.conv_general_dilated(x, w_conv, (1, 1), 'VALID',
                                 dimension_numbers=('NCHW', 'OIHW', 'NCHW'))
    y = jnp.maximum(y, 0.0)
    mean = jnp.mean(y, axis=(0, 2, 3), keepdims=True)
    var = jnp.mean((y - mean) ** 2, axis=(0, 2, 3), keepdims=True)
    y = (y - mean) / jnp.sqrt(var + EPS)
    y = y * gamma.reshape(1, -1, 1, 1) + beta.reshape(1, -1, 1, 1)
    N, C, OH, OW = y.shape
    y = y.reshape(N, C, OH // 2, 2, OW // 2, 2).mean(axis=(3, 5))
    feat = y.reshape(N, -1)                                    # PyTorch (c, ph, pw) order
    logits = feat @ w_fc.T + b_fc
    return jax.nn.log_softmax(logits, axis=1)


def init_params(key, in_channels):
    k1, k2, k3, k4, k5 = jax.random.split(key, 5)
    fan_conv = in_channels * 36
    w_conv = jax.random.uniform(k1, (256, in_channels, 6, 6), jnp.float32,
                                -1.0, 1.0) / jnp.sqrt(float(fan_conv))
    gamma = 1.0 + 0.1 * jax.random.normal(k2, (256,), jnp.float32)
    beta = 0.1 * jax.random.normal(k3, (256,), jnp.float32)
    bound = 1.0 / jnp.sqrt(9216.0)
    w_fc = jax.random.uniform(k4, (10, 9216), jnp.float32, -bound, bound)
    b_fc = jax.random.uniform(k5, (10,), jnp.float32, -bound, bound)
    return (w_conv, gamma, beta, w_fc, b_fc)


if __name__ == "__main__":
    key = jax.random.PRNGKey(0)
    kx, kp = jax.random.split(key)
    N, Cin = 2, 4
    H = W = 17     # conv(k=6) -> 12x12 -> AdaptiveAvgPool(6,6) -> 256*6*6 = 9216 feats
    x = jax.random.normal(kx, (N, Cin, H, W), jnp.float32)     # NCHW input like PyTorch
    params = init_params(kp, Cin)
    prep = prepare_params(params)                              # hoisted, done once

    fwd = jax.jit(student_forward)
    out = jax.block_until_ready(fwd(x, prep))

    assert out.shape == (N, 10)
    assert bool(jnp.all(jnp.isfinite(out)))
    # log-softmax rows should exponentiate to a probability distribution
    assert bool(jnp.allclose(jnp.sum(jnp.exp(out), axis=1), 1.0, atol=1e-3))
    # structural check against a pure-JAX f32 reference (loose tol for bf16 MXU operands)
    ref = jax.block_until_ready(reference_forward(x, params))
    assert float(jnp.max(jnp.abs(out - ref))) < 5e-2

    print("KERNEL_OK")
</pallas_src>

<mosaic_0001>
module attributes {stable_mosaic.version = 11 : i64} {
  func.func @_fused_kernel(%arg0: i32, %arg1: memref<288x144xbf16, #tpu.memory_space<vmem>>, %arg2: memref<144x256xbf16, #tpu.memory_space<vmem>>, %arg3: memref<1x256xf32, #tpu.memory_space<vmem>>, %arg4: memref<1x256xf32, #tpu.memory_space<vmem>>, %arg5: memref<10x9216xbf16, #tpu.memory_space<vmem>>, %arg6: memref<1x10xf32, #tpu.memory_space<vmem>>, %arg7: memref<2x10xf32, #tpu.memory_space<vmem>>, %arg8: memref<288x256xf32, #tpu.memory_space<vmem>>, %arg9: memref<72x256xbf16, #tpu.memory_space<vmem>>, %arg10: memref<2x9216xbf16, #tpu.memory_space<vmem>>) attributes {dimension_semantics = [#tpu.dimension_semantics<arbitrary>], iteration_bounds = array<i64: 1>, scalar_prefetch = 0 : i64, scratch_operands = 3 : i64, tpu.core_type = #tpu.core_type<tc>, window_params = [{pipeline_mode = #tpu.pipeline_mode<synchronous>, transform_indices = @transform_0, window_bounds = array<i64: 288, 144>}, {pipeline_mode = #tpu.pipeline_mode<synchronous>, transform_indices = @transform_1, window_bounds = array<i64: 144, 256>}, {pipeline_mode = #tpu.pipeline_mode<synchronous>, transform_indices = @transform_2, window_bounds = array<i64: 1, 256>}, {pipeline_mode = #tpu.pipeline_mode<synchronous>, transform_indices = @transform_3, window_bounds = array<i64: 1, 256>}, {pipeline_mode = #tpu.pipeline_mode<synchronous>, transform_indices = @transform_4, window_bounds = array<i64: 10, 9216>}, {pipeline_mode = #tpu.pipeline_mode<synchronous>, transform_indices = @transform_5, window_bounds = array<i64: 1, 10>}, {pipeline_mode = #tpu.pipeline_mode<synchronous>, transform_indices = @transform_6, window_bounds = array<i64: 2, 10>}]} {
    %c0 = arith.constant 0 : index
    %c0_0 = arith.constant 0 : index
    %0 = vector.load %arg1[%c0, %c0_0] : memref<288x144xbf16, #tpu.memory_space<vmem>>, vector<288x144xbf16>
    %c0_1 = arith.constant 0 : index
    %c0_2 = arith.constant 0 : index
    %1 = vector.load %arg2[%c0_1, %c0_2] : memref<144x256xbf16, #tpu.memory_space<vmem>>, vector<144x256xbf16>
    %cst = arith.constant dense<0.000000e+00> : vector<288x256xf32>
    %2 = tpu.matmul %0, %1, %cst {dimension_numbers = #tpu.dot_dimension_numbers<[1], [0], [0], [1], [0, 0, 1, 1], [], []>} : vector<288x144xbf16>, vector<144x256xbf16>, vector<288x256xf32> -> vector<288x256xf32>
    %cst_3 = arith.constant 0.000000e+00 : f32
    %3 = vector.broadcast %cst_3 : f32 to vector<288x256xf32>
    %4 = arith.maximumf %2, %3 : vector<288x256xf32>
    %c0_4 = arith.constant 0 : index
    %c0_5 = arith.constant 0 : index
    %5 = vector.load %arg8[%c0_4, %c0_5] : memref<288x256xf32, #tpu.memory_space<vmem>>, vector<288x256xf32>
    tpu.vector_store %arg8[%c0_4, %c0_5], %4 {strides = array<i32>} : memref<288x256xf32, #tpu.memory_space<vmem>>, vector<288x256xf32>,
    %c0_6 = arith.constant 0 : index
    %c0_7 = arith.constant 0 : index
    %6 = vector.load %arg8[%c0_6, %c0_7] : memref<288x256xf32, #tpu.memory_space<vmem>>, vector<288x256xf32>
    %cst_8 = arith.constant dense<0.000000e+00> : vector<256xf32>
    %7 = vector.multi_reduction <add>, %6, %cst_8 [0] : vector<288x256xf32> to vector<256xf32>
    %8 = vector.shape_cast %7 : vector<256xf32> to vector<1x256xf32>
    %cst_9 = arith.constant 2.880000e+02 : f32
    %9 = vector.broadcast %cst_9 : f32 to vector<1x256xf32>
    %10 = arith.divf %8, %9 : vector<1x256xf32>
    %c0_10 = arith.constant 0 : index
    %c0_11 = arith.constant 0 : index
    %11 = vector.load %arg8[%c0_10, %c0_11] : memref<288x256xf32, #tpu.memory_space<vmem>>, vector<288x256xf32>
    %12 = vector.broadcast %10 : vector<1x256xf32> to vector<288x256xf32>
    %13 = arith.subf %11, %12 : vector<288x256xf32>
    %14 = arith.mulf %13, %13 : vector<288x256xf32>
    %cst_12 = arith.constant dense<0.000000e+00> : vector<256xf32>
    %15 = vector.multi_reduction <add>, %14, %cst_12 [0] : vector<288x256xf32> to vector<256xf32>
    %16 = vector.shape_cast %15 : vector<256xf32> to vector<1x256xf32>
    %cst_13 = arith.constant 2.880000e+02 : f32
    %17 = vector.broadcast %cst_13 : f32 to vector<1x256xf32>
    %18 = arith.divf %16, %17 : vector<1x256xf32>
    %cst_14 = arith.constant 9.99999974E-6 : f32
    %19 = vector.broadcast %cst_14 : f32 to vector<1x256xf32>
    %20 = arith.addf %18, %19 : vector<1x256xf32>
    %21 = math.rsqrt %20 : vector<1x256xf32>
    %c0_15 = arith.constant 0 : index
    %c0_16 = arith.constant 0 : index
    %22 = vector.load %arg3[%c0_15, %c0_16] : memref<1x256xf32, #tpu.memory_space<vmem>>, vector<1x256xf32>
    %23 = arith.mulf %21, %22 : vector<1x256xf32>
    %c0_17 = arith.constant 0 : index
    %c0_18 = arith.constant 0 : index
    %24 = vector.load %arg4[%c0_17, %c0_18] : memref<1x256xf32, #tpu.memory_space<vmem>>, vector<1x256xf32>
    %25 = arith.mulf %10, %23 : vector<1x256xf32>
    %26 = arith.subf %24, %25 : vector<1x256xf32>
    %c0_19 = arith.constant 0 : index
    %c0_20 = arith.constant 0 : index
    %27 = vector.load %arg8[%c0_19, %c0_20] : memref<288x256xf32, #tpu.memory_space<vmem>>, vector<72x256xf32>
    %c72 = arith.constant 72 : index
    %c0_21 = arith.constant 0 : index
    %28 = vector.load %arg8[%c72, %c0_21] : memref<288x256xf32, #tpu.memory_space<vmem>>, vector<72x256xf32>
    %29 = arith.addf %27, %28 : vector<72x256xf32>
    %c144 = arith.constant 144 : index
    %c0_22 = arith.constant 0 : index
    %30 = vector.load %arg8[%c144, %c0_22] : memref<288x256xf32, #tpu.memory_space<vmem>>, vector<72x256xf32>
    %31 = arith.addf %29, %30 : vector<72x256xf32>
    %c216 = arith.constant 216 : index
    %c0_23 = arith.constant 0 : index
    %32 = vector.load %arg8[%c216, %c0_23] : memref<288x256xf32, #tpu.memory_space<vmem>>, vector<72x256xf32>
    %33 = arith.addf %31, %32 : vector<72x256xf32>
    %cst_24 = arith.constant 2.500000e-01 : f32
    %34 = vector.broadcast %cst_24 : f32 to vector<72x256xf32>
    %35 = arith.mulf %34, %33 : vector<72x256xf32>
    %36 = vector.broadcast %23 : vector<1x256xf32> to vector<72x256xf32>
    %37 = arith.mulf %35, %36 : vector<72x256xf32>
    %38 = vector.broadcast %26 : vector<1x256xf32> to vector<72x256xf32>
    %39 = arith.addf %37, %38 : vector<72x256xf32>
    %40 = arith.truncf %39 : vector<72x256xf32> to vector<72x256xbf16>
    %c0_25 = arith.constant 0 : index
    %c0_26 = arith.constant 0 : index
    %41 = vector.load %arg9[%c0_25, %c0_26] : memref<72x256xbf16, #tpu.memory_space<vmem>>, vector<72x256xbf16>
    tpu.vector_store %arg9[%c0_25, %c0_26], %40 {strides = array<i32>} : memref<72x256xbf16, #tpu.memory_space<vmem>>, vector<72x256xbf16>,
    %c0_27 = arith.constant 0 : index
    %c0_28 = arith.constant 0 : index
    %42 = vector.load %arg9[%c0_27, %c0_28] : memref<72x256xbf16, #tpu.memory_space<vmem>>, vector<2x256xbf16>
    %c0_29 = arith.constant 0 : index
    %c0_30 = arith.constant 0 : index
    %43 = vector.load %arg10[%c0_29, %c0_30] : memref<2x9216xbf16, #tpu.memory_space<vmem>>, vector<2x256xbf16>
    tpu.vector_store %arg10[%c0_29, %c0_30], %42 {strides = array<i32>} : memref<2x9216xbf16, #tpu.memory_space<vmem>>, vector<2x256xbf16>,
    %c2 = arith.constant 2 : index
    %c0_31 = arith.constant 0 : index
    %44 = vector.load %arg9[%c2, %c0_31] : memref<72x256xbf16, #tpu.memory_space<vmem>>, vector<2x256xbf16>
    %c0_32 = arith.constant 0 : index
    %c256 = arith.constant 256 : index
    %45 = vector.load %arg10[%c0_32, %c256] : memref<2x9216xbf16, #tpu.memory_space<vmem>>, vector<2x256xbf16>
    tpu.vector_store %arg10[%c0_32, %c256], %44 {strides = array<i32>} : memref<2x9216xbf16, #tpu.memory_space<vmem>>, vector<2x256xbf16>,
    %c4 = arith.constant 4 : index
    %c0_33 = arith.constant 0 : index
    %46 = vector.load %arg9[%c4, %c0_33] : memref<72x256xbf16, #tpu.memory_space<vmem>>, vector<2x256xbf16>
    %c0_34 = arith.constant 0 : index
    %c512 = arith.constant 512 : index
    %47 = vector.load %arg10[%c0_34, %c512] : memref<2x9216xbf16, #tpu.memory_space<vmem>>, vector<2x256xbf16>
    tpu.vector_store %arg10[%c0_34, %c512], %46 {strides = array<i32>} : memref<2x9216xbf16, #tpu.memory_space<vmem>>, vector<2x256xbf16>,
    %c6 = arith.constant 6 : index
    %c0_35 = arith.constant 0 : index
    %48 = vector.load %arg9[%c6, %c0_35] : memref<72x256xbf16, #tpu.memory_space<vmem>>, vector<2x256xbf16>
    %c0_36 = arith.constant 0 : index
    %c768 = arith.constant 768 : index
    %49 = vector.load %arg10[%c0_36, %c768] : memref<2x9216xbf16, #tpu.memory_space<vmem>>, vector<2x256xbf16>
    tpu.vector_store %arg10[%c0_36, %c768], %48 {strides = array<i32>} : memref<2x9216xbf16, #tpu.memory_space<vmem>>, vector<2x256xbf16>,
    %c8 = arith.constant 8 : index
    %c0_37 = arith.constant 0 : index
    %50 = vector.load %arg9[%c8, %c0_37] : memref<72x256xbf16, #tpu.memory_space<vmem>>, vector<2x256xbf16>
    %c0_38 = arith.constant 0 : index
    %c1024 = arith.constant 1024 : index
    %51 = vector.load %arg10[%c0_38, %c1024] : memref<2x9216xbf16, #tpu.memory_space<vmem>>, vector<2x256xbf16>
    tpu.vector_store %arg10[%c0_38, %c1024], %50 {strides = array<i32>} : memref<2x9216xbf16, #tpu.memory_space<vmem>>, vector<2x256xbf16>,
    %c10 = arith.constant 10 : index
    %c0_39 = arith.constant 0 : index
    %52 = vector.load %arg9[%c10, %c0_39] : memref<72x256xbf16, #tpu.memory_space<vmem>>, vector<2x256xbf16>
    %c0_40 = arith.constant 0 : index
    %c1280 = arith.constant 1280 : index
    %53 = vector.load %arg10[%c0_40, %c1280] : memref<2x9216xbf16, #tpu.memory_space<vmem>>, vector<2x256xbf16>
    tpu.vector_store %arg10[%c0_40, %c1280], %52 {strides = array<i32>} : memref<2x9216xbf16, #tpu.memory_space<vmem>>, vector<2x256xbf16>,
    %c12 = arith.constant 12 : index
    %c0_41 = arith.constant 0 : index
    %54 = vector.load %arg9[%c12, %c0_41] : memref<72x256xbf16, #tpu.memory_space<vmem>>, vector<2x256xbf16>
    %c0_42 = arith.constant 0 : index
    %c1536 = arith.constant 1536 : index
    %55 = vector.load %arg10[%c0_42, %c1536] : memref<2x9216xbf16, #tpu.memory_space<vmem>>, vector<2x256xbf16>
    tpu.vector_store %arg10[%c0_42, %c1536], %54 {strides = array<i32>} : memref<2x9216xbf16, #tpu.memory_space<vmem>>, vector<2x256xbf16>,
    %c14 = arith.constant 14 : index
    %c0_43 = arith.constant 0 : index
    %56 = vector.load %arg9[%c14, %c0_43] : memref<72x256xbf16, #tpu.memory_space<vmem>>, vector<2x256xbf16>
    %c0_44 = arith.constant 0 : index
    %c1792 = arith.constant 1792 : index
    %57 = vector.load %arg10[%c0_44, %c1792] : memref<2x9216xbf16, #tpu.memory_space<vmem>>, vector<2x256xbf16>
    tpu.vector_store %arg10[%c0_44, %c1792], %56 {strides = array<i32>} : memref<2x9216xbf16, #tpu.memory_space<vmem>>, vector<2x256xbf16>,
    %c16 = arith.constant 16 : index
    %c0_45 = arith.constant 0 : index
    %58 = vector.load %arg9[%c16, %c0_45] : memref<72x256xbf16, #tpu.memory_space<vmem>>, vector<2x256xbf16>
    %c0_46 = arith.constant 0 : index
    %c2048 = arith.constant 2048 : index
    %59 = vector.load %arg10[%c0_46, %c2048] : memref<2x9216xbf16, #tpu.memory_space<vmem>>, vector<2x256xbf16>
    tpu.vector_store %arg10[%c0_46, %c2048], %58 {strides = array<i32>} : memref<2x9216xbf16, #tpu.memory_space<vmem>>, vector<2x256xbf16>,
    %c18 = arith.constant 18 : index
    %c0_47 = arith.constant 0 : index
    %60 = vector.load %arg9[%c18, %c0_47] : memref<72x256xbf16, #tpu.memory_space<vmem>>, vector<2x256xbf16>
    %c0_48 = arith.constant 0 : index
    %c2304 = arith.constant 2304 : index
    %61 = vector.load %arg10[%c0_48, %c2304] : memref<2x9216xbf16, #tpu.memory_space<vmem>>, vector<2x256xbf16>
    tpu.vector_store %arg10[%c0_48, %c2304], %60 {strides = array<i32>} : memref<2x9216xbf16, #tpu.memory_space<vmem>>, vector<2x256xbf16>,
    %c20 = arith.constant 20 : index
    %c0_49 = arith.constant 0 : index
    %62 = vector.load %arg9[%c20, %c0_49] : memref<72x256xbf16, #tpu.memory_space<vmem>>, vector<2x256xbf16>
    %c0_50 = arith.constant 0 : index
    %c2560 = arith.constant 2560 : index
    %63 = vector.load %arg10[%c0_50, %c2560] : memref<2x9216xbf16, #tpu.memory_space<vmem>>, vector<2x256xbf16>
    tpu.vector_store %arg10[%c0_50, %c2560], %62 {strides = array<i32>} : memref<2x9216xbf16, #tpu.memory_space<vmem>>, vector<2x256xbf16>,
    %c22 = arith.constant 22 : index
    %c0_51 = arith.constant 0 : index
    %64 = vector.load %arg9[%c22, %c0_51] : memref<72x256xbf16, #tpu.memory_space<vmem>>, vector<2x256xbf16>
    %c0_52 = arith.constant 0 : index
    %c2816 = arith.constant 2816 : index
    %65 = vector.load %arg10[%c0_52, %c2816] : memref<2x9216xbf16, #tpu.memory_space<vmem>>, vector<2x256xbf16>
    tpu.vector_store %arg10[%c0_52, %c2816], %64 {strides = array<i32>} : memref<2x9216xbf16, #tpu.memory_space<vmem>>, vector<2x256xbf16>,
    %c24 = arith.constant 24 : index
    %c0_53 = arith.constant 0 : index
    %66 = vector.load %arg9[%c24, %c0_53] : memref<72x256xbf16, #tpu.memory_space<vmem>>, vector<2x256xbf16>
    %c0_54 = arith.constant 0 : index
    %c3072 = arith.constant 3072 : index
    %67 = vector.load %arg10[%c0_54, %c3072] : memref<2x9216xbf16, #tpu.memory_space<vmem>>, vector<2x256xbf16>
    tpu.vector_store %arg10[%c0_54, %c3072], %66 {strides = array<i32>} : memref<2x9216xbf16, #tpu.memory_space<vmem>>, vector<2x256xbf16>,
    %c26 = arith.constant 26 : index
    %c0_55 = arith.constant 0 : index
    %68 = vector.load %arg9[%c26, %c0_55] : memref<72x256xbf16, #tpu.memory_space<vmem>>, vector<2x256xbf16>
    %c0_56 = arith.constant 0 : index
    %c3328 = arith.constant 3328 : index
    %69 = vector.load %arg10[%c0_56, %c3328] : memref<2x9216xbf16, #tpu.memory_space<vmem>>, vector<2x256xbf16>
    tpu.vector_store %arg10[%c0_56, %c3328], %68 {strides = array<i32>} : memref<2x9216xbf16, #tpu.memory_space<vmem>>, vector<2x256xbf16>,
    %c28 = arith.constant 28 : index
    %c0_57 = arith.constant 0 : index
    %70 = vector.load %arg9[%c28, %c0_57] : memref<72x256xbf16, #tpu.memory_space<vmem>>, vector<2x256xbf16>
    %c0_58 = arith.constant 0 : index
    %c3584 = arith.constant 3584 : index
    %71 = vector.load %arg10[%c0_58, %c3584] : memref<2x9216xbf16, #tpu.memory_space<vmem>>, vector<2x256xbf16>
    tpu.vector_store %arg10[%c0_58, %c3584], %70 {strides = array<i32>} : memref<2x9216xbf16, #tpu.memory_space<vmem>>, vector<2x256xbf16>,
    %c30 = arith.constant 30 : index
    %c0_59 = arith.constant 0 : index
    %72 = vector.load %arg9[%c30, %c0_59] : memref<72x256xbf16, #tpu.memory_space<vmem>>, vector<2x256xbf16>
    %c0_60 = arith.constant 0 : index
    %c3840 = arith.constant 3840 : index
    %73 = vector.load %arg10[%c0_60, %c3840] : memref<2x9216xbf16, #tpu.memory_space<vmem>>, vector<2x256xbf16>
    tpu.vector_store %arg10[%c0_60, %c3840], %72 {strides = array<i32>} : memref<2x9216xbf16, #tpu.memory_space<vmem>>, vector<2x256xbf16>,
    %c32 = arith.constant 32 : index
    %c0_61 = arith.constant 0 : index
    %74 = vector.load %arg9[%c32, %c0_61] : memref<72x256xbf16, #tpu.memory_space<vmem>>, vector<2x256xbf16>
    %c0_62 = arith.constant 0 : index
    %c4096 = arith.constant 4096 : index
    %75 = vector.load %arg10[%c0_62, %c4096] : memref<2x9216xbf16, #tpu.memory_space<vmem>>, vector<2x256xbf16>
    tpu.vector_store %arg10[%c0_62, %c4096], %74 {strides = array<i32>} : memref<2x9216xbf16, #tpu.memory_space<vmem>>, vector<2x256xbf16>,
    %c34 = arith.constant 34 : index
    %c0_63 = arith.constant 0 : index
    %76 = vector.load %arg9[%c34, %c0_63] : memref<72x256xbf16, #tpu.memory_space<vmem>>, vector<2x256xbf16>
    %c0_64 = arith.constant 0 : index
    %c4352 = arith.constant 4352 : index
    %77 = vector.load %arg10[%c0_64, %c4352] : memref<2x9216xbf16, #tpu.memory_space<vmem>>, vector<2x256xbf16>
    tpu.vector_store %arg10[%c0_64, %c4352], %76 {strides = array<i32>} : memref<2x9216xbf16, #tpu.memory_space<vmem>>, vector<2x256xbf16>,
    %c36 = arith.constant 36 : index
    %c0_65 = arith.constant 0 : index
    %78 = vector.load %arg9[%c36, %c0_65] : memref<72x256xbf16, #tpu.memory_space<vmem>>, vector<2x256xbf16>
    %c0_66 = arith.constant 0 : index
    %c4608 = arith.constant 4608 : index
    %79 = vector.load %arg10[%c0_66, %c4608] : memref<2x9216xbf16, #tpu.memory_space<vmem>>, vector<2x256xbf16>
    tpu.vector_store %arg10[%c0_66, %c4608], %78 {strides = array<i32>} : memref<2x9216xbf16, #tpu.memory_space<vmem>>, vector<2x256xbf16>,
    %c38 = arith.constant 38 : index
    %c0_67 = arith.constant 0 : index
    %80 = vector.load %arg9[%c38, %c0_67] : memref<72x256xbf16, #tpu.memory_space<vmem>>, vector<2x256xbf16>
    %c0_68 = arith.constant 0 : index
    %c4864 = arith.constant 4864 : index
    %81 = vector.load %arg10[%c0_68, %c4864] : memref<2x9216xbf16, #tpu.memory_space<vmem>>, vector<2x256xbf16>
    tpu.vector_store %arg10[%c0_68, %c4864], %80 {strides = array<i32>} : memref<2x9216xbf16, #tpu.memory_space<vmem>>, vector<2x256xbf16>,
    %c40 = arith.constant 40 : index
    %c0_69 = arith.constant 0 : index
    %82 = vector.load %arg9[%c40, %c0_69] : memref<72x256xbf16, #tpu.memory_space<vmem>>, vector<2x256xbf16>
    %c0_70 = arith.constant 0 : index
    %c5120 = arith.constant 5120 : index
    %83 = vector.load %arg10[%c0_70, %c5120] : memref<2x9216xbf16, #tpu.memory_space<vmem>>, vector<2x256xbf16>
    tpu.vector_store %arg10[%c0_70, %c5120], %82 {strides = array<i32>} : memref<2x9216xbf16, #tpu.memory_space<vmem>>, vector<2x256xbf16>,
    %c42 = arith.constant 42 : index
    %c0_71 = arith.constant 0 : index
    %84 = vector.load %arg9[%c42, %c0_71] : memref<72x256xbf16, #tpu.memory_space<vmem>>, vector<2x256xbf16>
    %c0_72 = arith.constant 0 : index
    %c5376 = arith.constant 5376 : index
    %85 = vector.load %arg10[%c0_72, %c5376] : memref<2x9216xbf16, #tpu.memory_space<vmem>>, vector<2x256xbf16>
    tpu.vector_store %arg10[%c0_72, %c5376], %84 {strides = array<i32>} : memref<2x9216xbf16, #tpu.memory_space<vmem>>, vector<2x256xbf16>,
    %c44 = arith.constant 44 : index
    %c0_73 = arith.constant 0 : index
    %86 = vector.load %arg9[%c44, %c0_73] : memref<72x256xbf16, #tpu.memory_space<vmem>>, vector<2x256xbf16>
    %c0_74 = arith.constant 0 : index
    %c5632 = arith.constant 5632 : index
    %87 = vector.load %arg10[%c0_74, %c5632] : memref<2x9216xbf16, #tpu.memory_space<vmem>>, vector<2x256xbf16>
    tpu.vector_store %arg10[%c0_74, %c5632], %86 {strides = array<i32>} : memref<2x9216xbf16, #tpu.memory_space<vmem>>, vector<2x256xbf16>,
    %c46 = arith.constant 46 : index
    %c0_75 = arith.constant 0 : index
    %88 = vector.load %arg9[%c46, %c0_75] : memref<72x256xbf16, #tpu.memory_space<vmem>>, vector<2x256xbf16>
    %c0_76 = arith.constant 0 : index
    %c5888 = arith.constant 5888 : index
    %89 = vector.load %arg10[%c0_76, %c5888] : memref<2x9216xbf16, #tpu.memory_space<vmem>>, vector<2x256xbf16>
    tpu.vector_store %arg10[%c0_76, %c5888], %88 {strides = array<i32>} : memref<2x9216xbf16, #tpu.memory_space<vmem>>, vector<2x256xbf16>,
    %c48 = arith.constant 48 : index
    %c0_77 = arith.constant 0 : index
    %90 = vector.load %arg9[%c48, %c0_77] : memref<72x256xbf16, #tpu.memory_space<vmem>>, vector<2x256xbf16>
    %c0_78 = arith.constant 0 : index
    %c6144 = arith.constant 6144 : index
    %91 = vector.load %arg10[%c0_78, %c6144] : memref<2x9216xbf16, #tpu.memory_space<vmem>>, vector<2x256xbf16>
    tpu.vector_store %arg10[%c0_78, %c6144], %90 {strides = array<i32>} : memref<2x9216xbf16, #tpu.memory_space<vmem>>, vector<2x256xbf16>,
    %c50 = arith.constant 50 : index
    %c0_79 = arith.constant 0 : index
    %92 = vector.load %arg9[%c50, %c0_79] : memref<72x256xbf16, #tpu.memory_space<vmem>>, vector<2x256xbf16>
    %c0_80 = arith.constant 0 : index
    %c6400 = arith.constant 6400 : index
    %93 = vector.load %arg10[%c0_80, %c6400] : memref<2x9216xbf16, #tpu.memory_space<vmem>>, vector<2x256xbf16>
    tpu.vector_store %arg10[%c0_80, %c6400], %92 {strides = array<i32>} : memref<2x9216xbf16, #tpu.memory_space<vmem>>, vector<2x256xbf16>,
    %c52 = arith.constant 52 : index
    %c0_81 = arith.constant 0 : index
    %94 = vector.load %arg9[%c52, %c0_81] : memref<72x256xbf16, #tpu.memory_space<vmem>>, vector<2x256xbf16>
    %c0_82 = arith.constant 0 : index
    %c6656 = arith.constant 6656 : index
    %95 = vector.load %arg10[%c0_82, %c6656] : memref<2x9216xbf16, #tpu.memory_space<vmem>>, vector<2x256xbf16>
    tpu.vector_store %arg10[%c0_82, %c6656], %94 {strides = array<i32>} : memref<2x9216xbf16, #tpu.memory_space<vmem>>, vector<2x256xbf16>,
    %c54 = arith.constant 54 : index
    %c0_83 = arith.constant 0 : index
    %96 = vector.load %arg9[%c54, %c0_83] : memref<72x256xbf16, #tpu.memory_space<vmem>>, vector<2x256xbf16>
    %c0_84 = arith.constant 0 : index
    %c6912 = arith.constant 6912 : index
    %97 = vector.load %arg10[%c0_84, %c6912] : memref<2x9216xbf16, #tpu.memory_space<vmem>>, vector<2x256xbf16>
    tpu.vector_store %arg10[%c0_84, %c6912], %96 {strides = array<i32>} : memref<2x9216xbf16, #tpu.memory_space<vmem>>, vector<2x256xbf16>,
    %c56 = arith.constant 56 : index
    %c0_85 = arith.constant 0 : index
    %98 = vector.load %arg9[%c56, %c0_85] : memref<72x256xbf16, #tpu.memory_space<vmem>>, vector<2x256xbf16>
    %c0_86 = arith.constant 0 : index
    %c7168 = arith.constant 7168 : index
    %99 = vector.load %arg10[%c0_86, %c7168] : memref<2x9216xbf16, #tpu.memory_space<vmem>>, vector<2x256xbf16>
    tpu.vector_store %arg10[%c0_86, %c7168], %98 {strides = array<i32>} : memref<2x9216xbf16, #tpu.memory_space<vmem>>, vector<2x256xbf16>,
    %c58 = arith.constant 58 : index
    %c0_87 = arith.constant 0 : index
    %100 = vector.load %arg9[%c58, %c0_87] : memref<72x256xbf16, #tpu.memory_space<vmem>>, vector<2x256xbf16>
    %c0_88 = arith.constant 0 : index
    %c7424 = arith.constant 7424 : index
    %101 = vector.load %arg10[%c0_88, %c7424] : memref<2x9216xbf16, #tpu.memory_space<vmem>>, vector<2x256xbf16>
    tpu.vector_store %arg10[%c0_88, %c7424], %100 {strides = array<i32>} : memref<2x9216xbf16, #tpu.memory_space<vmem>>, vector<2x256xbf16>,
    %c60 = arith.constant 60 : index
    %c0_89 = arith.constant 0 : index
    %102 = vector.load %arg9[%c60, %c0_89] : memref<72x256xbf16, #tpu.memory_space<vmem>>, vector<2x256xbf16>
    %c0_90 = arith.constant 0 : index
    %c7680 = arith.constant 7680 : index
    %103 = vector.load %arg10[%c0_90, %c7680] : memref<2x9216xbf16, #tpu.memory_space<vmem>>, vector<2x256xbf16>
    tpu.vector_store %arg10[%c0_90, %c7680], %102 {strides = array<i32>} : memref<2x9216xbf16, #tpu.memory_space<vmem>>, vector<2x256xbf16>,
    %c62 = arith.constant 62 : index
    %c0_91 = arith.constant 0 : index
    %104 = vector.load %arg9[%c62, %c0_91] : memref<72x256xbf16, #tpu.memory_space<vmem>>, vector<2x256xbf16>
    %c0_92 = arith.constant 0 : index
    %c7936 = arith.constant 7936 : index
    %105 = vector.load %arg10[%c0_92, %c7936] : memref<2x9216xbf16, #tpu.memory_space<vmem>>, vector<2x256xbf16>
    tpu.vector_store %arg10[%c0_92, %c7936], %104 {strides = array<i32>} : memref<2x9216xbf16, #tpu.memory_space<vmem>>, vector<2x256xbf16>,
    %c64 = arith.constant 64 : index
    %c0_93 = arith.constant 0 : index
    %106 = vector.load %arg9[%c64, %c0_93] : memref<72x256xbf16, #tpu.memory_space<vmem>>, vector<2x256xbf16>
    %c0_94 = arith.constant 0 : index
    %c8192 = arith.constant 8192 : index
    %107 = vector.load %arg10[%c0_94, %c8192] : memref<2x9216xbf16, #tpu.memory_space<vmem>>, vector<2x256xbf16>
    tpu.vector_store %arg10[%c0_94, %c8192], %106 {strides = array<i32>} : memref<2x9216xbf16, #tpu.memory_space<vmem>>, vector<2x256xbf16>,
    %c66 = arith.constant 66 : index
    %c0_95 = arith.constant 0 : index
    %108 = vector.load %arg9[%c66, %c0_95] : memref<72x256xbf16, #tpu.memory_space<vmem>>, vector<2x256xbf16>
    %c0_96 = arith.constant 0 : index
    %c8448 = arith.constant 8448 : index
    %109 = vector.load %arg10[%c0_96, %c8448] : memref<2x9216xbf16, #tpu.memory_space<vmem>>, vector<2x256xbf16>
    tpu.vector_store %arg10[%c0_96, %c8448], %108 {strides = array<i32>} : memref<2x9216xbf16, #tpu.memory_space<vmem>>, vector<2x256xbf16>,
    %c68 = arith.constant 68 : index
    %c0_97 = arith.constant 0 : index
    %110 = vector.load %arg9[%c68, %c0_97] : memref<72x256xbf16, #tpu.memory_space<vmem>>, vector<2x256xbf16>
    %c0_98 = arith.constant 0 : index
    %c8704 = arith.constant 8704 : index
    %111 = vector.load %arg10[%c0_98, %c8704] : memref<2x9216xbf16, #tpu.memory_space<vmem>>, vector<2x256xbf16>
    tpu.vector_store %arg10[%c0_98, %c8704], %110 {strides = array<i32>} : memref<2x9216xbf16, #tpu.memory_space<vmem>>, vector<2x256xbf16>,
    %c70 = arith.constant 70 : index
    %c0_99 = arith.constant 0 : index
    %112 = vector.load %arg9[%c70, %c0_99] : memref<72x256xbf16, #tpu.memory_space<vmem>>, vector<2x256xbf16>
    %c0_100 = arith.constant 0 : index
    %c8960 = arith.constant 8960 : index
    %113 = vector.load %arg10[%c0_100, %c8960] : memref<2x9216xbf16, #tpu.memory_space<vmem>>, vector<2x256xbf16>
    tpu.vector_store %arg10[%c0_100, %c8960], %112 {strides = array<i32>} : memref<2x9216xbf16, #tpu.memory_space<vmem>>, vector<2x256xbf16>,
    %c0_101 = arith.constant 0 : index
    %c0_102 = arith.constant 0 : index
    %114 = vector.load %arg10[%c0_101, %c0_102] : memref<2x9216xbf16, #tpu.memory_space<vmem>>, vector<2x9216xbf16>
    %c0_103 = arith.constant 0 : index
    %c0_104 = arith.constant 0 : index
    %115 = vector.load %arg5[%c0_103, %c0_104] : memref<10x9216xbf16, #tpu.memory_space<vmem>>, vector<10x9216xbf16>
    %cst_105 = arith.constant dense<0.000000e+00> : vector<2x10xf32>
    %116 = tpu.matmul %114, %115, %cst_105 {dimension_numbers = #tpu.dot_dimension_numbers<[1], [1], [0], [0], [0, 0, 1, 0], [], []>} : vector<2x9216xbf16>, vector<10x9216xbf16>, vector<2x10xf32> -> vector<2x10xf32>
    %c0_106 = arith.constant 0 : index
    %c0_107 = arith.constant 0 : index
    %117 = vector.load %arg6[%c0_106, %c0_107] : memref<1x10xf32, #tpu.memory_space<vmem>>, vector<1x10xf32>
    %118 = vector.broadcast %117 : vector<1x10xf32> to vector<2x10xf32>
    %119 = arith.addf %116, %118 : vector<2x10xf32>
    %cst_108 = arith.constant dense<0xFF800000> : vector<2xf32>
    %120 = vector.multi_reduction <maximumf>, %119, %cst_108 [1] : vector<2x10xf32> to vector<2xf32>
    %121 = vector.shape_cast %120 : vector<2xf32> to vector<2x1xf32>
    %122 = vector.broadcast %121 : vector<2x1xf32> to vector<2x10xf32>
    %123 = arith.subf %119, %122 : vector<2x10xf32>
    %124 = math.exp %123 : vector<2x10xf32>
    %cst_109 = arith.constant dense<0.000000e+00> : vector<2xf32>
    %125 = vector.multi_reduction <add>, %124, %cst_109 [1] : vector<2x10xf32> to vector<2xf32>
    %126 = vector.shape_cast %125 : vector<2xf32> to vector<2x1xf32>
    %127 = math.log %126 : vector<2x1xf32>
    %128 = vector.broadcast %127 : vector<2x1xf32> to vector<2x10xf32>
    %129 = arith.subf %123, %128 : vector<2x10xf32>
    %c0_110 = arith.constant 0 : index
    %c0_111 = arith.constant 0 : index
    %130 = vector.load %arg7[%c0_110, %c0_111] : memref<2x10xf32, #tpu.memory_space<vmem>>, vector<2x10xf32>
    tpu.vector_store %arg7[%c0_110, %c0_111], %129 {strides = array<i32>} : memref<2x10xf32, #tpu.memory_space<vmem>>, vector<2x10xf32>,
    return
  }
  func.func @transform_0(%arg0: i32) -> (i32, i32) {
    %c0_i32 = arith.constant 0 : i32
    %c0_i32_0 = arith.constant 0 : i32
    %c0_i32_1 = arith.constant 0 : i32
    return %c0_i32, %c0_i32_0 : i32, i32
  }
  func.func @transform_1(%arg0: i32) -> (i32, i32) {
    %c0_i32 = arith.constant 0 : i32
    %c0_i32_0 = arith.constant 0 : i32
    %c0_i32_1 = arith.constant 0 : i32
    return %c0_i32, %c0_i32_0 : i32, i32
  }
  func.func @transform_2(%arg0: i32) -> (i32, i32) {
    %c0_i32 = arith.constant 0 : i32
    %c0_i32_0 = arith.constant 0 : i32
    %c0_i32_1 = arith.constant 0 : i32
    return %c0_i32, %c0_i32_0 : i32, i32
  }
  func.func @transform_3(%arg0: i32) -> (i32, i32) {
    %c0_i32 = arith.constant 0 : i32
    %c0_i32_0 = arith.constant 0 : i32
    %c0_i32_1 = arith.constant 0 : i32
    return %c0_i32, %c0_i32_0 : i32, i32
  }
  func.func @transform_4(%arg0: i32) -> (i32, i32) {
    %c0_i32 = arith.constant 0 : i32
    %c0_i32_0 = arith.constant 0 : i32
    %c0_i32_1 = arith.constant 0 : i32
    return %c0_i32, %c0_i32_0 : i32, i32
  }
  func.func @transform_5(%arg0: i32) -> (i32, i32) {
    %c0_i32 = arith.constant 0 : i32
    %c0_i32_0 = arith.constant 0 : i32
    %c0_i32_1 = arith.constant 0 : i32
    return %c0_i32, %c0_i32_0 : i32, i32
  }
  func.func @transform_6(%arg0: i32) -> (i32, i32) {
    %c0_i32 = arith.constant 0 : i32
    %c0_i32_0 = arith.constant 0 : i32
    %c0_i32_1 = arith.constant 0 : i32
    return %c0_i32, %c0_i32_0 : i32, i32
  }
}

</mosaic_0001>

<bundles_post_ra>
// kernel: student_forward.1
= control target key start
LH: loop header
LB: loop body
LE: loop exit
PB: predicated region body
PF: predicated region fallthrough
CT: control target
= control target key end

     0   :  { %vm331_vm0 = vcmask 130048   ;;  %s5859_s0 = inlined_call_operand.vmem [shape: bf16[288,144], index: 0, kind: input, shape index: {}]   ;;  %s5860_s1 = inlined_call_operand.vmem [shape: bf16[144,256], index: 1, kind: input, shape index: {}]   ;;  %s5861_s2 = inlined_call_operand.vmem [shape: f32[1,256], index: 2, kind: input, shape index: {}]   ;;  %s5862_s3 = inlined_call_operand.vmem [shape: f32[1,256], index: 3, kind: input, shape index: {}]   ;;  %s5863_s4 = inlined_call_operand.vmem [shape: bf16[10,9216], index: 4, kind: input, shape index: {}]   ;;  %s5864_s5 = inlined_call_operand.vmem [shape: f32[1,10], index: 5, kind: input, shape index: {}]   ;;  %s5865_s6 = inlined_call_operand.hbm [shape: f32[2,10], index: 6, kind: output, shape index: {}]  }
   0x1   :  { %v3580_v0 = vld [vmem:[%s5860_s1 + $0x70] sm:$0xf]  ;;  %v3969_v1 = vld [vmem:[%s5860_s1 + $0x74] sm:$0xf0]  ;;  %v3968_v2 = vld [vmem:[%s5860_s1 + $0x74] sm:$0xf] }
   0x2   :  { %v3581_v3 = vor.u32 %v3969_v1, %v3580_v0  ;;  %v3582_v4 = vld [vmem:[%s5860_s1 + $0x78] sm:$0xf0]  ;;  %v3572_v5 = vld [vmem:[%s5860_s1 + $0x60] sm:$0xf]  ;;  %v3967_v6 = vld [vmem:[%s5860_s1 + $0x64] sm:$0xf0] }
   0x3   :  { %v3585_v7 = vor.u32 %v3968_v2, %v3582_v4  ;;  %v3966_v8 = vld [vmem:[%s5860_s1 + $0x64] sm:$0xf]  ;;  %v3574_v9 = vld [vmem:[%s5860_s1 + $0x68] sm:$0xf0]  ;;  %v3573_v10 = vor.u32 %v3967_v6, %v3572_v5  ;;  %v3564_v12 = vld [vmem:[%s5860_s1 + $0x50] sm:$0xf] }
   0x4   :  { %386 = vmatpush.bf16.msra.mxu0 %v3581_v3  ;;  %v3577_v11 = vor.u32 %v3966_v8, %v3574_v9  ;;  %v3965_v13 = vld [vmem:[%s5860_s1 + $0x54] sm:$0xf0]  ;;  %v3964_v14 = vld [vmem:[%s5860_s1 + $0x54] sm:$0xf]  ;;  %v3566_v15 = vld [vmem:[%s5860_s1 + $0x58] sm:$0xf0] }
   0x5   :  { %584 = vmatpush.bf16.msra.mxu2 %v3585_v7  ;;  %v3565_v16 = vor.u32 %v3965_v13, %v3564_v12  ;;  %v3556_v17 = vld [vmem:[%s5860_s1 + $0x40] sm:$0xf]  ;;  %v3963_v18 = vld [vmem:[%s5860_s1 + $0x44] sm:$0xf0]  ;;  %v3569_v19 = vor.u32 %v3964_v14, %v3566_v15  ;;  %v3970_v20 = vld [vmem:[%s5860_s1 + $0x84] sm:$0xf] }
   0x6   :  { %v3590_v21 = vld [vmem:[%s5860_s1 + $0x88] sm:$0xf0]  ;;  %v3918_v22 = vld [vmem:[%s5859_s0 + $0x4] sm:$0xf]  ;;  %v3557_v28 = vor.u32 %v3963_v18, %v3556_v17  ;;  %v3588_v29 = vld [vmem:[%s5860_s1 + $0x80] sm:$0xf] }
   0x7   :  { %v3962_v23 = vld [vmem:[%s5860_s1 + $0x44] sm:$0xf]  ;;  %v3558_v24 = vld [vmem:[%s5860_s1 + $0x48] sm:$0xf0]  ;;  %v3593_v25 = vor.u32 %v3970_v20, %v3590_v21  ;;  %v3548_v31 = vld [vmem:[%s5860_s1 + $0x30] sm:$0xf] }
   0x8   :  { %387 = vmatpush.bf16.msra.mxu0 %v3573_v10  ;;  %v3382_v26 = vld [vmem:[%s5859_s0 + $0x8] sm:$0xf0]  ;;  %v3561_v30 = vor.u32 %v3962_v23, %v3558_v24  ;;  %v3961_v32 = vld [vmem:[%s5860_s1 + $0x34] sm:$0xf0]  ;;  %v3971_v33 = vld [vmem:[%s5860_s1 + $0x84] sm:$0xf0] }
   0x9   :  { %585 = vmatpush.bf16.msra.mxu2 %v3577_v11  ;;  %v3385_v27 = vor.u32 %v3918_v22, %v3382_v26  ;;  %690 = vmatpush.bf16.msra.mxu3 %v3593_v25  ;;  %v3960_v34 = vld [vmem:[%s5860_s1 + $0x34] sm:$0xf]  ;;  %v3550_v35 = vld [vmem:[%s5860_s1 + $0x38] sm:$0xf0]  ;;  %v3589_v36 = vor.u32 %v3971_v33, %v3588_v29  ;;  %v3549_v37 = vor.u32 %v3961_v32, %v3548_v31 }
   0xb   :  { %492 = vmatpush.bf16.msra.mxu1 %v3589_v36 }
   0xc   :  { %388 = vmatpush.bf16.msra.mxu0 %v3565_v16  ;;  %3612 = vmatmul.msk.bf16.vlgmr.msra.gmra.mxu3 %vm331_vm0, %v3385_v27 }
   0xd   :  { %586 = vmatpush.bf16.msra.mxu2 %v3569_v19 }
  0x10   :  { %389 = vmatpush.bf16.msra.mxu0 %v3557_v28 }
  0x11   :  { %11 = vsyncpa [#allocation6], 0  ;;  %587 = vmatpush.bf16.msra.mxu2 %v3561_v30  ;;  %v3553_v38 = vor.u32 %v3960_v34, %v3550_v35  ;;  %v3540_v39 = vld [vmem:[%s5860_s1 + $0x20] sm:$0xf]  ;;  %v3959_v40 = vld [vmem:[%s5860_s1 + $0x24] sm:$0xf0]  ;;  %3594 = vmatmul.msk.bf16.vlgmr.msra.gmra.mxu1 %vm331_vm0, %v3385_v27 }
  0x12   :  { %v3958_v41 = vld [vmem:[%s5860_s1 + $0x24] sm:$0xf]  ;;  %v3542_v42 = vld [vmem:[%s5860_s1 + $0x28] sm:$0xf0]  ;;  %v3541_v43 = vor.u32 %v3959_v40, %v3540_v39  ;;  %v3532_v45 = vld [vmem:[%s5860_s1 + $0x10] sm:$0xf] }
  0x13   :  { %v3545_v44 = vor.u32 %v3958_v41, %v3542_v42  ;;  %v3957_v46 = vld [vmem:[%s5860_s1 + $0x14] sm:$0xf0]  ;;  %v3956_v47 = vld [vmem:[%s5860_s1 + $0x14] sm:$0xf]  ;;  %v3534_v48 = vld [vmem:[%s5860_s1 + $0x18] sm:$0xf0] }
  0x14   :  { %390 = vmatpush.bf16.msra.mxu0 %v3549_v37  ;;  %v3533_v49 = vor.u32 %v3957_v46, %v3532_v45  ;;  %v3920_v50 = vld [vmem:[%s5859_s0 + $0x14] sm:$0xf]  ;;  %v3390_v51 = vld [vmem:[%s5859_s0 + $0x18] sm:$0xf0]  ;;  %v3537_v52 = vor.u32 %v3956_v47, %v3534_v48  ;;  %v3524_v53 = vld [vmem:[%s5860_s1] sm:$0xf] }
  0x15   :  { %588 = vmatpush.bf16.msra.mxu2 %v3553_v38  ;;  %v3955_v54 = vld [vmem:[%s5860_s1 + $0x4] sm:$0xf0]  ;;  %v3954_v55 = vld [vmem:[%s5860_s1 + $0x4] sm:$0xf]  ;;  %v3526_v56 = vld [vmem:[%s5860_s1 + $0x8] sm:$0xf0]  ;;  %v3393_v57 = vor.u32 %v3920_v50, %v3390_v51 }
  0x16   :  { %v3525_v58 = vor.u32 %v3955_v54, %v3524_v53  ;;  %v3380_v59 = vld [vmem:[%s5859_s0] sm:$0xf]  ;;  %v3919_v60 = vld [vmem:[%s5859_s0 + $0x4] sm:$0xf0]  ;;  %v3529_v61 = vor.u32 %v3954_v55, %v3526_v56  ;;  %v3922_v63 = vld [vmem:[%s5859_s0 + $0x24] sm:$0xf] }
  0x17   :  { %v3381_v62 = vor.u32 %v3919_v60, %v3380_v59  ;;  %v3398_v0 = vld [vmem:[%s5859_s0 + $0x28] sm:$0xf0]  ;;  %v3388_v2 = vld [vmem:[%s5859_s0 + $0x10] sm:$0xf]  ;;  %v3921_v3 = vld [vmem:[%s5859_s0 + $0x14] sm:$0xf0] }
  0x18   :  { %391 = vmatpush.bf16.msra.mxu0 %v3541_v43  ;;  %v3401_v1 = vor.u32 %v3922_v63, %v3398_v0  ;;  %v3389_v4 = vor.u32 %v3921_v3, %v3388_v2  ;;  %v3924_v5 = vld [vmem:[%s5859_s0 + $0x34] sm:$0xf]  ;;  %v3406_v6 = vld [vmem:[%s5859_s0 + $0x38] sm:$0xf0]  ;;  %v3396_v8 = vld [vmem:[%s5859_s0 + $0x20] sm:$0xf] }
  0x19   :  { %589 = vmatpush.bf16.msra.mxu2 %v3545_v44  ;;  %v3409_v7 = vor.u32 %v3924_v5, %v3406_v6  ;;  %v3923_v9 = vld [vmem:[%s5859_s0 + $0x24] sm:$0xf0]  ;;  %v3926_v11 = vld [vmem:[%s5859_s0 + $0x44] sm:$0xf]  ;;  %v3414_v12 = vld [vmem:[%s5859_s0 + $0x48] sm:$0xf0] }
  0x1a   :  { %v3397_v10 = vor.u32 %v3923_v9, %v3396_v8  ;;  %v3417_v13 = vor.u32 %v3926_v11, %v3414_v12  ;;  %v3404_v14 = vld [vmem:[%s5859_s0 + $0x30] sm:$0xf]  ;;  %v3925_v15 = vld [vmem:[%s5859_s0 + $0x34] sm:$0xf0]  ;;  %v3928_v17 = vld [vmem:[%s5859_s0 + $0x54] sm:$0xf] }
  0x1b   :  { %v3405_v16 = vor.u32 %v3925_v15, %v3404_v14  ;;  %v3422_v18 = vld [vmem:[%s5859_s0 + $0x58] sm:$0xf0]  ;;  %v3412_v20 = vld [vmem:[%s5859_s0 + $0x40] sm:$0xf]  ;;  %v3927_v21 = vld [vmem:[%s5859_s0 + $0x44] sm:$0xf0] }
  0x1c   :  { %392 = vmatpush.bf16.msra.mxu0 %v3533_v49  ;;  %3613 = vmatmul.msk.bf16.gmra.mxu3 %vm331_vm0, %v3393_v57  ;;  %v3425_v19 = vor.u32 %v3928_v17, %v3422_v18  ;;  %v3413_v22 = vor.u32 %v3927_v21, %v3412_v20  ;;  %v3930_v23 = vld [vmem:[%s5859_s0 + $0x64] sm:$0xf]  ;;  %v3430_v24 = vld [vmem:[%s5859_s0 + $0x68] sm:$0xf0]  ;;  %v3420_v26 = vld [vmem:[%s5859_s0 + $0x50] sm:$0xf] }
  0x1d   :  { %590 = vmatpush.bf16.msra.mxu2 %v3537_v52  ;;  %v3433_v25 = vor.u32 %v3930_v23, %v3430_v24  ;;  %v3929_v27 = vld [vmem:[%s5859_s0 + $0x54] sm:$0xf0]  ;;  %v3932_v29 = vld [vmem:[%s5859_s0 + $0x74] sm:$0xf]  ;;  %v3438_v30 = vld [vmem:[%s5859_s0 + $0x78] sm:$0xf0] }
  0x1e   :  { %v3421_v28 = vor.u32 %v3929_v27, %v3420_v26  ;;  %v3441_v31 = vor.u32 %v3932_v29, %v3438_v30  ;;  %v3428_v32 = vld [vmem:[%s5859_s0 + $0x60] sm:$0xf]  ;;  %v3931_v33 = vld [vmem:[%s5859_s0 + $0x64] sm:$0xf0]  ;;  %v3934_v35 = vld [vmem:[%s5859_s0 + $0x84] sm:$0xf] }
  0x1f   :  { %v3429_v34 = vor.u32 %v3931_v33, %v3428_v32  ;;  %v3446_v36 = vld [vmem:[%s5859_s0 + $0x88] sm:$0xf0]  ;;  %v3436_v38 = vld [vmem:[%s5859_s0 + $0x70] sm:$0xf]  ;;  %v3933_v39 = vld [vmem:[%s5859_s0 + $0x74] sm:$0xf0] }
  0x20   :  { %393 = vmatpush.bf16.msra.mxu0 %v3525_v58  ;;  %v3449_v37 = vor.u32 %v3934_v35, %v3446_v36  ;;  %v3437_v40 = vor.u32 %v3933_v39, %v3436_v38  ;;  %v3936_v44 = vld [vmem:[%s5859_s0 + $0x94] sm:$0xf]  ;;  %v3454_v45 = vld [vmem:[%s5859_s0 + $0x98] sm:$0xf0]  ;;  %v3444_v48 = vld [vmem:[%s5859_s0 + $0x80] sm:$0xf] }
  0x21   :  { %591 = vmatpush.bf16.msra.mxu2 %v3529_v61  ;;  %3595 = vmatmul.msk.bf16.gmra.mxu1 %vm331_vm0, %v3393_v57  ;;  %v3457_v47 = vor.u32 %v3936_v44, %v3454_v45  ;;  %v3935_v49 = vld [vmem:[%s5859_s0 + $0x84] sm:$0xf0]  ;;  %v3938_v59 = vld [vmem:[%s5859_s0 + $0xa4] sm:$0xf]  ;;  %v3462_v60 = vld [vmem:[%s5859_s0 + $0xa8] sm:$0xf0] }
  0x22   :  { %v3445_v50 = vor.u32 %v3935_v49, %v3444_v48  ;;  %v3465_v63 = vor.u32 %v3938_v59, %v3462_v60  ;;  %v3452_v0 = vld [vmem:[%s5859_s0 + $0x90] sm:$0xf]  ;;  %v3470_v14 = vld [vmem:[%s5859_s0 + $0xb8] sm:$0xf0]  ;;  %v3460_v18 = vld [vmem:[%s5859_s0 + $0xa0] sm:$0xf] }
  0x23   :  { %394 = vmatmul.bf16.vlgmr.msra.gmra.mxu0 %v3381_v62  ;;  %v3478_v32 = vld [vmem:[%s5859_s0 + $0xc8] sm:$0xf0]  ;;  %v3468_v36 = vld [vmem:[%s5859_s0 + $0xb0] sm:$0xf]  ;;  %v3944_v49 = vld [vmem:[%s5859_s0 + $0xd4] sm:$0xf] }
  0x24   :  { %592 = vmatmul.bf16.vlgmr.msra.gmra.mxu2 %v3381_v62  ;;  %vm1353_vm8 = vcmask 1040384   ;;  %vm3348_vm9 = vcmask 74752   ;;  %s3369_s25 = sshll.u32 %s5865_s6, 4  ;;  %s3370_s25 = int_to_ptr.hbm [resolvable:$true] %s3369_s25 }
  0x2c   :  { %3614 = vmatmul.msk.bf16.gmra.mxu3 %vm331_vm0, %v3401_v1 }
  0x31   :  { %3596 = vmatmul.msk.bf16.gmra.mxu1 %vm331_vm0, %v3401_v1  ;;  %v3937_v1 = vld [vmem:[%s5859_s0 + $0x94] sm:$0xf0] }
  0x32   :  { %v3453_v3 = vor.u32 %v3937_v1, %v3452_v0 }
  0x33   :  { %399 = vmatmul.bf16.gmra.mxu0 %v3389_v4 }
  0x34   :  { %597 = vmatmul.bf16.gmra.mxu2 %v3389_v4 }
  0x3c   :  { %3615 = vmatmul.msk.bf16.gmra.mxu3 %vm331_vm0, %v3409_v7 }
  0x41   :  { %3597 = vmatmul.msk.bf16.gmra.mxu1 %vm331_vm0, %v3409_v7 }
  0x43   :  { %404 = vmatmul.bf16.gmra.mxu0 %v3397_v10 }
  0x44   :  { %602 = vmatmul.bf16.gmra.mxu2 %v3397_v10 }
  0x4c   :  { %3616 = vmatmul.msk.bf16.gmra.mxu3 %vm331_vm0, %v3417_v13 }
  0x51   :  { %3598 = vmatmul.msk.bf16.gmra.mxu1 %vm331_vm0, %v3417_v13  ;;  %v3940_v13 = vld [vmem:[%s5859_s0 + $0xb4] sm:$0xf] }
  0x52   :  { %v3473_v17 = vor.u32 %v3940_v13, %v3470_v14  ;;  %v3484_v14 = vld [vmem:[%s5859_s0 + $0xd0] sm:$0xf] }
  0x53   :  { %409 = vmatmul.bf16.gmra.mxu0 %v3405_v16 }
  0x54   :  { %607 = vmatmul.bf16.gmra.mxu2 %v3405_v16 }
  0x5c   :  { %3617 = vmatmul.msk.bf16.gmra.mxu3 %vm331_vm0, %v3425_v19 }
  0x61   :  { %3599 = vmatmul.msk.bf16.gmra.mxu1 %vm331_vm0, %v3425_v19  ;;  %v3939_v19 = vld [vmem:[%s5859_s0 + $0xa4] sm:$0xf0] }
  0x62   :  { %v3461_v21 = vor.u32 %v3939_v19, %v3460_v18 }
  0x63   :  { %414 = vmatmul.bf16.gmra.mxu0 %v3413_v22 }
  0x64   :  { %612 = vmatmul.bf16.gmra.mxu2 %v3413_v22 }
  0x6c   :  { %3618 = vmatmul.msk.bf16.gmra.mxu3 %vm331_vm0, %v3433_v25 }
  0x71   :  { %3600 = vmatmul.msk.bf16.gmra.mxu1 %vm331_vm0, %v3433_v25 }
  0x73   :  { %419 = vmatmul.bf16.gmra.mxu0 %v3421_v28 }
  0x74   :  { %617 = vmatmul.bf16.gmra.mxu2 %v3421_v28 }
  0x7c   :  { %3619 = vmatmul.msk.bf16.gmra.mxu3 %vm331_vm0, %v3441_v31 }
  0x81   :  { %3601 = vmatmul.msk.bf16.gmra.mxu1 %vm331_vm0, %v3441_v31  ;;  %v3942_v31 = vld [vmem:[%s5859_s0 + $0xc4] sm:$0xf] }
  0x82   :  { %v3481_v35 = vor.u32 %v3942_v31, %v3478_v32  ;;  %v3948_v31 = vld [vmem:[%s5859_s0 + $0xf4] sm:$0xf]  ;;  %v3502_v32 = vld [vmem:[%s5859_s0 + $0xf8] sm:$0xf0] }
  0x83   :  { %424 = vmatmul.bf16.gmra.mxu0 %v3429_v34 }
  0x84   :  { %622 = vmatmul.bf16.gmra.mxu2 %v3429_v34 }
  0x8c   :  { %3620 = vmatmul.msk.bf16.gmra.mxu3 %vm331_vm0, %v3449_v37 }
  0x8e   :  { %v494_v41 = vpop.f32.mrf.mxu1 }
  0x8f   :  { %v692_v42 = vpop.f32.mrf.mxu3 }
  0x91   :  { %3602 = vmatmul.msk.bf16.gmra.mxu1 %vm331_vm0, %v3449_v37  ;;  %v3941_v37 = vld [vmem:[%s5859_s0 + $0xb4] sm:$0xf0] }
  0x92   :  { %v3469_v39 = vor.u32 %v3941_v37, %v3468_v36  ;;  %v3505_v36 = vor.u32 %v3948_v31, %v3502_v32  ;;  %v3492_v37 = vld [vmem:[%s5859_s0 + $0xe0] sm:$0xf] }
  0x93   :  { %429 = vmatmul.bf16.gmra.mxu0 %v3437_v40 }
  0x94   :  { %627 = vmatmul.bf16.gmra.mxu2 %v3437_v40 }
  0x96   :  { %v496_v43 = vpop.f32.mrf.mxu1 }
  0x97   :  { %v694_v46 = vpop.f32.mrf.mxu3 }
  0x9c   :  { %3621 = vmatmul.msk.bf16.gmra.mxu3 %vm331_vm0, %v3457_v47 }
  0x9e   :  { %v499_v52 = vpop.f32.mrf.mxu1 }
  0x9f   :  { %v697_v54 = vpop.f32.mrf.mxu3 }
  0xa0   :  { %v395_v51 = vpop.f32.mrf.mxu0 }
  0xa1   :  { %v4361_v53 = vadd.f32 %v494_v41, %v395_v51  ;;  %3603 = vmatmul.msk.bf16.gmra.mxu1 %vm331_vm0, %v3457_v47 }
  0xa3   :  { %434 = vmatmul.bf16.gmra.mxu0 %v3445_v50 }
  0xa4   :  { %632 = vmatmul.bf16.gmra.mxu2 %v3445_v50  ;;  %v3486_v50 = vld [vmem:[%s5859_s0 + $0xd8] sm:$0xf0] }
  0xa6   :  { %v501_v58 = vpop.f32.mrf.mxu1 }
  0xa7   :  { %v593_v55 = vpop.f32.mrf.mxu2  ;;  %v699_v62 = vpop.f32.mrf.mxu3 }
  0xa8   :  { %v4364_v56 = vadd.f32 %v692_v42, %v593_v55  ;;  %v397_v57 = vpop.f32.mrf.mxu0  ;;  %v3476_v55 = vld [vmem:[%s5859_s0 + $0xc0] sm:$0xf] }
  0xa9   :  { %v4372_v61 = vadd.f32 %v496_v43, %v397_v57  ;;  %v3943_v57 = vld [vmem:[%s5859_s0 + $0xc4] sm:$0xf0] }
  0xaa   :  { %v3477_v59 = vor.u32 %v3943_v57, %v3476_v55  ;;  %v3950_v55 = vld [vmem:[%s5859_s0 + $0x104] sm:$0xf]  ;;  %v3510_v57 = vld [vmem:[%s5859_s0 + $0x108] sm:$0xf0] }
  0xac   :  { %3622 = vmatmul.msk.bf16.gmra.mxu3 %vm331_vm0, %v3465_v63 }
  0xae   :  { %v504_v6 = vpop.f32.mrf.mxu1 }
  0xaf   :  { %v595_v2 = vpop.f32.mrf.mxu2  ;;  %v702_v8 = vpop.f32.mrf.mxu3 }
  0xb0   :  { %v4381_v4 = vadd.f32 %v694_v46, %v595_v2  ;;  %v400_v5 = vpop.f32.mrf.mxu0 }
  0xb1   :  { %v4383_v7 = vadd.f32 %v499_v52, %v400_v5  ;;  %3604 = vmatmul.msk.bf16.gmra.mxu1 %vm331_vm0, %v3465_v63 }
  0xb3   :  { %439 = vmatmul.bf16.gmra.mxu0 %v3453_v3 }
  0xb4   :  { %637 = vmatmul.bf16.gmra.mxu2 %v3453_v3 }
  0xb6   :  { %v506_v12 = vpop.f32.mrf.mxu1 }
  0xb7   :  { %v598_v9 = vpop.f32.mrf.mxu2  ;;  %v704_v16 = vpop.f32.mrf.mxu3 }
  0xb8   :  { %v4386_v10 = vadd.f32 %v697_v54, %v598_v9  ;;  %v402_v11 = vpop.f32.mrf.mxu0  ;;  %v3489_v54 = vor.u32 %v3944_v49, %v3486_v50  ;;  %v3494_v9 = vld [vmem:[%s5859_s0 + $0xe8] sm:$0xf0] }
  0xb9   :  { %v4394_v15 = vadd.f32 %v501_v58, %v402_v11 }
  0xbc   :  { %3623 = vmatmul.msk.bf16.gmra.mxu3 %vm331_vm0, %v3473_v17 }
  0xbe   :  { %v509_v24 = vpop.f32.mrf.mxu1 }
  0xbf   :  { %v600_v20 = vpop.f32.mrf.mxu2  ;;  %v707_v26 = vpop.f32.mrf.mxu3 }
  0xc0   :  { %v4403_v22 = vadd.f32 %v699_v62, %v600_v20  ;;  %v405_v23 = vpop.f32.mrf.mxu0 }
  0xc1   :  { %v4405_v25 = vadd.f32 %v504_v6, %v405_v23  ;;  %3605 = vmatmul.msk.bf16.gmra.mxu1 %vm331_vm0, %v3473_v17 }
  0xc3   :  { %444 = vmatmul.bf16.gmra.mxu0 %v3461_v21 }
  0xc4   :  { %642 = vmatmul.bf16.gmra.mxu2 %v3461_v21 }
  0xc6   :  { %v511_v30 = vpop.f32.mrf.mxu1 }
  0xc7   :  { %v603_v27 = vpop.f32.mrf.mxu2  ;;  %v709_v34 = vpop.f32.mrf.mxu3 }
  0xc8   :  { %v4408_v28 = vadd.f32 %v702_v8, %v603_v27  ;;  %v407_v29 = vpop.f32.mrf.mxu0  ;;  %v3946_v8 = vld [vmem:[%s5859_s0 + $0xe4] sm:$0xf] }
  0xc9   :  { %v4416_v33 = vadd.f32 %v506_v12, %v407_v29  ;;  %v3497_v13 = vor.u32 %v3946_v8, %v3494_v9 }
  0xcc   :  { %3624 = vmatmul.msk.bf16.gmra.mxu3 %vm331_vm0, %v3481_v35 }
  0xce   :  { %v514_v42 = vpop.f32.mrf.mxu1 }
  0xcf   :  { %v605_v38 = vpop.f32.mrf.mxu2  ;;  %v712_v44 = vpop.f32.mrf.mxu3 }
  0xd0   :  { %v4425_v40 = vadd.f32 %v704_v16, %v605_v38  ;;  %v410_v41 = vpop.f32.mrf.mxu0  ;;  %v3945_v16 = vld [vmem:[%s5859_s0 + $0xd4] sm:$0xf0]  ;;  %v3947_v38 = vld [vmem:[%s5859_s0 + $0xe4] sm:$0xf0] }
  0xd1   :  { %v4427_v43 = vadd.f32 %v509_v24, %v410_v41  ;;  %3606 = vmatmul.msk.bf16.gmra.mxu1 %vm331_vm0, %v3481_v35  ;;  %v3485_v18 = vor.u32 %v3945_v16, %v3484_v14  ;;  %v3493_v41 = vor.u32 %v3947_v38, %v3492_v37 }
  0xd3   :  { %449 = vmatmul.bf16.gmra.mxu0 %v3469_v39 }
  0xd4   :  { %647 = vmatmul.bf16.gmra.mxu2 %v3469_v39 }
  0xd6   :  { %v516_v48 = vpop.f32.mrf.mxu1 }
  0xd7   :  { %v608_v45 = vpop.f32.mrf.mxu2  ;;  %v714_v52 = vpop.f32.mrf.mxu3 }
  0xd8   :  { %v4430_v46 = vadd.f32 %v707_v26, %v608_v45  ;;  %v412_v47 = vpop.f32.mrf.mxu0 }
  0xd9   :  { %v4438_v51 = vadd.f32 %v511_v30, %v412_v47 }
  0xdc   :  { %3625 = vmatmul.msk.bf16.gmra.mxu3 %vm331_vm0, %v3489_v54 }
  0xde   :  { %v519_v63 = vpop.f32.mrf.mxu1 }
  0xdf   :  { %v610_v58 = vpop.f32.mrf.mxu2  ;;  %v717_v1 = vpop.f32.mrf.mxu3 }
  0xe0   :  { %v4447_v60 = vadd.f32 %v709_v34, %v610_v58  ;;  %v415_v62 = vpop.f32.mrf.mxu0 }
  0xe1   :  { %v4449_v0 = vadd.f32 %v514_v42, %v415_v62  ;;  %3607 = vmatmul.msk.bf16.gmra.mxu1 %vm331_vm0, %v3489_v54  ;;  %v3500_v62 = vld [vmem:[%s5859_s0 + $0xf0] sm:$0xf] }
  0xe3   :  { %454 = vmatmul.bf16.gmra.mxu0 %v3477_v59 }
  0xe4   :  { %652 = vmatmul.bf16.gmra.mxu2 %v3477_v59  ;;  %v3513_v59 = vor.u32 %v3950_v55, %v3510_v57  ;;  %v3953_v55 = vld [vmem:[%s5859_s0 + $0x114] sm:$0xf0] }
  0xe6   :  { %v521_v6 = vpop.f32.mrf.mxu1 }
  0xe7   :  { %v613_v2 = vpop.f32.mrf.mxu2  ;;  %v719_v12 = vpop.f32.mrf.mxu3 }
  0xe8   :  { %v4452_v3 = vadd.f32 %v712_v44, %v613_v2  ;;  %v417_v5 = vpop.f32.mrf.mxu0 }
  0xe9   :  { %v4460_v11 = vadd.f32 %v516_v48, %v417_v5 }
  0xec   :  { %3626 = vmatmul.msk.bf16.gmra.mxu3 %vm331_vm0, %v3497_v13 }
  0xee   :  { %v524_v21 = vpop.f32.mrf.mxu1 }
  0xef   :  { %v615_v17 = vpop.f32.mrf.mxu2  ;;  %v722_v24 = vpop.f32.mrf.mxu3 }
  0xf0   :  { %v4469_v19 = vadd.f32 %v714_v52, %v615_v17  ;;  %v420_v20 = vpop.f32.mrf.mxu0  ;;  %v3952_v17 = vld [vmem:[%s5859_s0 + $0x114] sm:$0xf] }
  0xf1   :  { %v4471_v23 = vadd.f32 %v519_v63, %v420_v20  ;;  %3608 = vmatmul.msk.bf16.gmra.mxu1 %vm331_vm0, %v3497_v13  ;;  %v3949_v63 = vld [vmem:[%s5859_s0 + $0xf4] sm:$0xf0] }
  0xf2   :  { %v3501_v2 = vor.u32 %v3949_v63, %v3500_v62 }
  0xf3   :  { %459 = vmatmul.bf16.gmra.mxu0 %v3485_v18 }
  0xf4   :  { %657 = vmatmul.bf16.gmra.mxu2 %v3485_v18  ;;  %v3518_v18 = vld [vmem:[%s5859_s0 + $0x118] sm:$0xf0] }
  0xf6   :  { %v4476_v30 = vpop.f32.mrf.mxu1 }
  0xf7   :  { %v618_v26 = vpop.f32.mrf.mxu2  ;;  %v4486_v35 = vpop.f32.mrf.mxu3 }
  0xf8   :  { %v4474_v27 = vadd.f32 %v717_v1, %v618_v26  ;;  %v422_v29 = vpop.f32.mrf.mxu0  ;;  %v3951_v26 = vld [vmem:[%s5859_s0 + $0x104] sm:$0xf0] }
  0xf9   :  { %v4484_v34 = vadd.f32 %v521_v6, %v422_v29 }
  0xfc   :  { %3627 = vmatmul.msk.bf16.gmra.mxu3 %vm331_vm0, %v3505_v36 }
  0xfe   :  { %v529_v45 = vpop.f32.mrf.mxu1 }
  0xff   :  { %v620_v39 = vpop.f32.mrf.mxu2  ;;  %v727_v48 = vpop.f32.mrf.mxu3 }
 0x100   :  { %v4495_v42 = vadd.f32 %v719_v12, %v620_v39  ;;  %v425_v44 = vpop.f32.mrf.mxu0 }
 0x101   :  { %v4497_v47 = vadd.f32 %v524_v21, %v425_v44  ;;  %3609 = vmatmul.msk.bf16.gmra.mxu1 %vm331_vm0, %v3505_v36  ;;  %v3521_v21 = vor.u32 %v3952_v17, %v3518_v18 }
 0x103   :  { %464 = vmatmul.bf16.gmra.mxu0 %v3493_v41 }
 0x104   :  { %662 = vmatmul.bf16.gmra.mxu2 %v3493_v41 }
 0x106   :  { %v4504_v54 = vpop.f32.mrf.mxu1 }
 0x107   :  { %v623_v49 = vpop.f32.mrf.mxu2  ;;  %v4512_v58 = vpop.f32.mrf.mxu3 }
 0x108   :  { %v4500_v50 = vadd.f32 %v722_v24, %v623_v49  ;;  %v4502_v52 = vpop.f32.mrf.mxu0  ;;  %v3508_v24 = vld [vmem:[%s5859_s0 + $0x100] sm:$0xf]  ;;  %v3516_v49 = vld [vmem:[%s5859_s0 + $0x110] sm:$0xf] }
 0x109   :  { %v3509_v31 = vor.u32 %v3951_v26, %v3508_v24 }
 0x10c   :  { %3628 = vmatmul.msk.bf16.gmra.mxu3 %vm331_vm0, %v3513_v59 }
 0x10e   :  { %v534_v6 = vpop.f32.mrf.mxu1 }
 0x10f   :  { %v4520_v1 = vpop.f32.mrf.mxu2  ;;  %v732_v9 = vpop.f32.mrf.mxu3 }
 0x110   :  { %v430_v5 = vpop.f32.mrf.mxu0 }
 0x111   :  { %v4523_v8 = vadd.f32 %v529_v45, %v430_v5  ;;  %3610 = vmatmul.msk.bf16.gmra.mxu1 %vm331_vm0, %v3513_v59  ;;  %v3517_v59 = vor.u32 %v3953_v55, %v3516_v49 }
 0x113   :  { %469 = vmatmul.bf16.gmra.mxu0 %v3501_v2 }
 0x114   :  { %667 = vmatmul.bf16.gmra.mxu2 %v3501_v2 }
 0x116   :  { %v4530_v16 = vpop.f32.mrf.mxu1 }
 0x117   :  { %v628_v12 = vpop.f32.mrf.mxu2  ;;  %v4538_v20 = vpop.f32.mrf.mxu3 }
 0x118   :  { %v4526_v13 = vadd.f32 %v727_v48, %v628_v12  ;;  %v4528_v14 = vpop.f32.mrf.mxu0  ;;  %5946 = vst [vmem:[#allocation8_spill] sm:$0xff] %v4538_v20 }
 0x11c   :  { %3629 = vmatmul.msk.bf16.gmra.mxu3 %vm331_vm0, %v3521_v21 }
 0x11e   :  { %v539_v36 = vpop.f32.mrf.mxu1 }
 0x11f   :  { %v4546_v29 = vpop.f32.mrf.mxu2  ;;  %v737_v38 = vpop.f32.mrf.mxu3 }
 0x120   :  { %v435_v32 = vpop.f32.mrf.mxu0 }
 0x121   :  { %v4549_v37 = vadd.f32 %v534_v6, %v435_v32  ;;  %3611 = vmatmul.msk.bf16.gmra.mxu1 %vm331_vm0, %v3521_v21 }
 0x123   :  { %474 = vmatmul.bf16.gmra.mxu0 %v3509_v31 }
 0x124   :  { %672 = vmatmul.bf16.gmra.mxu2 %v3509_v31 }
 0x126   :  { %v4556_v45 = vpop.f32.mrf.mxu1 }
 0x127   :  { %v633_v39 = vpop.f32.mrf.mxu2  ;;  %v4558_v48 = vpop.f32.mrf.mxu3 }
 0x128   :  { %v4552_v41 = vadd.f32 %v732_v9, %v633_v39  ;;  %v4554_v44 = vpop.f32.mrf.mxu0  ;;  %5948 = vst [vmem:[#allocation10_spill] sm:$0xff] %v4558_v48 }
 0x12a   :  { %5947 = vst [vmem:[#allocation9_spill] sm:$0xff] %v4552_v41 }
 0x12e   :  { %v544_v63 = vpop.f32.mrf.mxu1 }
 0x12f   :  { %v4566_v57 = vpop.f32.mrf.mxu2  ;;  %v742_v5 = vpop.f32.mrf.mxu3 }
 0x130   :  { %v440_v62 = vpop.f32.mrf.mxu0 }
 0x131   :  { %v4568_v2 = vadd.f32 %v539_v36, %v440_v62 }
 0x133   :  { %479 = vmatmul.bf16.gmra.mxu0 %v3517_v59 }
 0x134   :  { %677 = vmatmul.bf16.gmra.mxu2 %v3517_v59 }
 0x136   :  { %v4574_v17 = vpop.f32.mrf.mxu1 }
 0x137   :  { %v638_v6 = vpop.f32.mrf.mxu2  ;;  %v4576_v18 = vpop.f32.mrf.mxu3 }
 0x138   :  { %v4570_v9 = vadd.f32 %v737_v38, %v638_v6  ;;  %v4572_v12 = vpop.f32.mrf.mxu0  ;;  %5950 = vst [vmem:[#allocation12_spill] sm:$0xff] %v4576_v18 }
 0x13a   :  { %5949 = vst [vmem:[#allocation11_spill] sm:$0xff] %v4570_v9 }
 0x13e   :  { %v549_v26 = vpop.f32.mrf.mxu1 }
 0x13f   :  { %v4578_v21 = vpop.f32.mrf.mxu2  ;;  %v747_v32 = vpop.f32.mrf.mxu3 }
 0x140   :  { %5951 = vst [vmem:[#allocation13_spill] sm:$0xff] %v4578_v21  ;;  %v445_v24 = vpop.f32.mrf.mxu0 }
 0x141   :  { %v4580_v31 = vadd.f32 %v544_v63, %v445_v24 }
 0x146   :  { %v4586_v38 = vpop.f32.mrf.mxu1 }
 0x147   :  { %v643_v36 = vpop.f32.mrf.mxu2  ;;  %v4590_v59 = vpop.f32.mrf.mxu3 }
 0x148   :  { %v4582_v39 = vadd.f32 %v742_v5, %v643_v36  ;;  %v4584_v49 = vpop.f32.mrf.mxu0  ;;  %5954 = vst [vmem:[#allocation16_spill] sm:$0xff] %v4590_v59 }
 0x14a   :  { %5952 = vst [vmem:[#allocation14_spill] sm:$0xff] %v4582_v39 }
 0x14e   :  { %v554_v6 = vpop.f32.mrf.mxu1 }
 0x14f   :  { %v4588_v55 = vpop.f32.mrf.mxu2  ;;  %v752_v5 = vpop.f32.mrf.mxu3 }
 0x150   :  { %5953 = vst [vmem:[#allocation15_spill] sm:$0xff] %v4588_v55  ;;  %v450_v62 = vpop.f32.mrf.mxu0 }
 0x151   :  { %v4592_v18 = vadd.f32 %v549_v26, %v450_v62 }
 0x156   :  { %v4598_v24 = vpop.f32.mrf.mxu1 }
 0x157   :  { %v648_v9 = vpop.f32.mrf.mxu2  ;;  %v4606_v59 = vpop.f32.mrf.mxu3 }
 0x158   :  { %v4594_v48 = vadd.f32 %v747_v32, %v648_v9  ;;  %v4596_v63 = vpop.f32.mrf.mxu0  ;;  %5957 = vst [vmem:[#allocation19_spill] sm:$0xff] %v4606_v59 }
 0x15a   :  { %5955 = vst [vmem:[#allocation17_spill] sm:$0xff] %v4594_v48 }
 0x15e   :  { %v4602_v21 = vpop.f32.mrf.mxu1 }
 0x15f   :  { %v4600_v36 = vpop.f32.mrf.mxu2  ;;  %v4614_v32 = vpop.f32.mrf.mxu3 }
 0x160   :  { %5956 = vst [vmem:[#allocation18_spill] sm:$0xff] %v4600_v36  ;;  %v455_v39 = vpop.f32.mrf.mxu0 }
 0x161   :  { %v4604_v55 = vadd.f32 %v554_v6, %v455_v39  ;;  %5960 = vst [vmem:[#allocation22_spill] sm:$0xff] %v4614_v32  ;;  %v4623_v39 = vmax.f32 %v4361_v53, 0.0  ;;  %v4626_v6 = vmax.f32 %v4372_v61, 0.0 }
 0x163   :  { %5963 = vst [vmem:[#allocation25_spill] sm:$0xff] %v4623_v39  ;;  %v998_v59 = vadd.f32 %v4626_v6, %v4623_v39 }
 0x164   :  { %5964 = vst [vmem:[#allocation26_spill] sm:$0xff] %v4626_v6 }
 0x166   :  { %v4612_v9 = vpop.f32.mrf.mxu1 }
 0x167   :  { %v653_v41 = vpop.f32.mrf.mxu2  ;;  %5959 = vst [vmem:[#allocation21_spill] sm:$0xff] %v4612_v9  ;;  %v4654_v9 = vmax.f32 %v4427_v43, 0.0 }
 0x168   :  { %v4608_v26 = vadd.f32 %v752_v5, %v653_v41  ;;  %v4610_v62 = vpop.f32.mrf.mxu0  ;;  %v4629_v41 = vmax.f32 %v4383_v7, 0.0 }
 0x169   :  { %5971 = vst [vmem:[#allocation33_spill] sm:$0xff] %v4654_v9 }
 0x16a   :  { %5958 = vst [vmem:[#allocation20_spill] sm:$0xff] %v4608_v26  ;;  %v4633_v26 = vpop.f32.mrf.mxu3  ;;  %v999_v61 = vadd.f32 %v998_v59, %v4629_v41  ;;  %v4662_v59 = vmax.f32 %v4438_v51, 0.0 }
 0x16b   :  { %5965 = vst [vmem:[#allocation27_spill] sm:$0xff] %v4629_v41 }
 0x16c   :  { %5967 = vst [vmem:[#allocation29_spill] sm:$0xff] %v4633_v26 }
 0x16e   :  { %v4620_v36 = vpop.f32.mrf.mxu1 }
 0x16f   :  { %v4616_v48 = vpop.f32.mrf.mxu2  ;;  %5962 = vst [vmem:[#allocation24_spill] sm:$0xff] %v4620_v36  ;;  %v4646_v36 = vmax.f32 %v4405_v25, 0.0 }
 0x170   :  { %5961 = vst [vmem:[#allocation23_spill] sm:$0xff] %v4616_v48  ;;  %v4618_v20 = vpop.f32.mrf.mxu0  ;;  %v4640_v48 = vmax.f32 %v4394_v15, 0.0 }
 0x171   :  { %5969 = vst [vmem:[#allocation31_spill] sm:$0xff] %v4646_v36 }
 0x172   :  { %5968 = vst [vmem:[#allocation30_spill] sm:$0xff] %v4640_v48  ;;  %v1000_v7 = vadd.f32 %v999_v61, %v4640_v48  ;;  %v4664_v25 = vpop.f32.mrf.mxu3 }
 0x174   :  { %v1001_v26 = vadd.f32 %v1000_v7, %v4646_v36  ;;  %v4674_v36 = vmax.f32 %v4460_v11, 0.0  ;;  %v527_v11 = vadd.f32 %v4476_v30, %v4502_v52 }
 0x176   :  { %v4642_v53 = vpop.f32.mrf.mxu1  ;;  %5973 = vst [vmem:[#allocation35_spill] sm:$0xff] %v4674_v36 }
 0x177   :  { %v4631_v5 = vpop.f32.mrf.mxu2 }
 0x178   :  { %5966 = vst [vmem:[#allocation28_spill] sm:$0xff] %v4631_v5  ;;  %v4635_v32 = vpop.f32.mrf.mxu0  ;;  %v4650_v5 = vmax.f32 %v4416_v33, 0.0  ;;  %v4668_v33 = vmax.f32 %v4449_v0, 0.0 }
 0x17a   :  { %5970 = vst [vmem:[#allocation32_spill] sm:$0xff] %v4650_v5  ;;  %v1002_v39 = vadd.f32 %v1001_v26, %v4650_v5  ;;  %v4678_v26 = vmax.f32 %v4471_v23, 0.0  ;;  %v4683_v5 = vmax.f32 %v4381_v4, 0.0  ;;  %v4697_v23 = vmax.f32 %v4386_v10, 0.0 }
 0x17b   :  { %5972 = vst [vmem:[#allocation34_spill] sm:$0xff] %v4668_v33  ;;  %v4701_v4 = vmax.f32 %v4497_v47, 0.0  ;;  %v532_v10 = vadd.f32 %v4504_v54, %v4528_v14  ;;  %v4717_v47 = vmax.f32 %v4408_v28, 0.0 }
 0x17c   :  { %v1003_v61 = vadd.f32 %v1002_v39, %v4654_v9  ;;  %5974 = vst [vmem:[#allocation36_spill] sm:$0xff] %v4678_v26  ;;  %v4689_v9 = vmax.f32 %v4484_v34, 0.0  ;;  %v4706_v34 = vmax.f32 %v4403_v22, 0.0  ;;  %v4723_v22 = vmax.f32 %v4523_v8, 0.0 }
 0x17d   :  { %5975 = vst [vmem:[#allocation37_spill] sm:$0xff] %v4683_v5  ;;  %v4734_v28 = vmax.f32 %v532_v10, 0.0  ;;  %v4740_v8 = vmax.f32 %v4430_v46, 0.0 }
 0x17e   :  { %v4670_v7 = vpop.f32.mrf.mxu1  ;;  %v1004_v43 = vadd.f32 %v1003_v61, %v4662_v59  ;;  %5976 = vst [vmem:[#allocation38_spill] sm:$0xff] %v4689_v9  ;;  %v4694_v61 = vmax.f32 %v4364_v56, 0.0  ;;  %v4711_v56 = vmax.f32 %v527_v11, 0.0 }
 0x17f   :  { %v4656_v6 = vpop.f32.mrf.mxu2  ;;  %5978 = vst [vmem:[#allocation40_spill] sm:$0xff] %v4697_v23 }
 0x180   :  { %v4658_v15 = vpop.f32.mrf.mxu0  ;;  %v1005_v48 = vadd.f32 %v1004_v43, %v4668_v33  ;;  %5977 = vst [vmem:[#allocation39_spill] sm:$0xff] %v4694_v61 }
 0x181   :  { %5979 = vst [vmem:[#allocation41_spill] sm:$0xff] %v4706_v34 }
 0x182   :  { %v1006_v0 = vadd.f32 %v1005_v48, %v4674_v36  ;;  %v1039_v48 = vadd.f32 %v4683_v5, %v4694_v61  ;;  %v4708_v36 = vpop.f32.mrf.mxu3  ;;  %5980 = vst [vmem:[#allocation42_spill] sm:$0xff] %v4717_v47 }
 0x183   :  { %5982 = vst [vmem:[#allocation44_spill] sm:$0xff] %v4740_v8 }
 0x184   :  { %v1007_v43 = vadd.f32 %v1006_v0, %v4678_v26  ;;  %v1040_v52 = vadd.f32 %v1039_v48, %v4697_v23  ;;  %v537_v48 = vadd.f32 %v4530_v16, %v4554_v44  ;;  %v542_v16 = vadd.f32 %v4556_v45, %v4572_v12 }
 0x185   :  { %v4757_v44 = vmax.f32 %v4452_v3, 0.0 }
 0x186   :  { %v1008_v30 = vadd.f32 %v1007_v43, %v4689_v9  ;;  %v4719_v0 = vpop.f32.mrf.mxu1  ;;  %v1041_v11 = vadd.f32 %v1040_v52, %v4706_v34  ;;  %v4729_v43 = vmax.f32 %v4425_v40, 0.0  ;;  %v4744_v52 = vmax.f32 %v4549_v37, 0.0 }
 0x187   :  { %v4680_v51 = vpop.f32.mrf.mxu2  ;;  %v4748_v34 = vmax.f32 %v4447_v60, 0.0  ;;  %v4751_v10 = vmax.f32 %v537_v48, 0.0  ;;  %5984 = vst [vmem:[#allocation46_spill] sm:$0xff] %v4757_v44  ;;  %v4769_v48 = vmax.f32 %v4469_v19, 0.0  ;;  %v4786_v19 = vmax.f32 %v4580_v31, 0.0 }
 0x188   :  { %v4685_v39 = vpop.f32.mrf.mxu0  ;;  %v1009_v5 = vadd.f32 %v1008_v30, %v4701_v4  ;;  %5981 = vst [vmem:[#allocation43_spill] sm:$0xff] %v4729_v43  ;;  %v1042_v30 = vadd.f32 %v1041_v11, %v4717_v47  ;;  %v4801_v31 = vmax.f32 %v4500_v50, 0.0 }
 0x189   :  { %5983 = vst [vmem:[#allocation45_spill] sm:$0xff] %v4748_v34 }
 0x18a   :  { %v1010_v14 = vadd.f32 %v1009_v5, %v4711_v56  ;;  %v1043_v40 = vadd.f32 %v1042_v30, %v4729_v43  ;;  %v4759_v11 = vpop.f32.mrf.mxu3  ;;  %v4776_v30 = vmax.f32 %v542_v16, 0.0  ;;  %5987 = vst [vmem:[#allocation49_spill] sm:$0xff] %v4786_v19  ;;  %v725_v16 = vadd.f32 %v4486_v35, %v4520_v1 }
 0x18b   :  { %5989 = vst [vmem:[#allocation51_spill] sm:$0xff] %v4801_v31 }
 0x18c   :  { %v1011_v23 = vadd.f32 %v1010_v14, %v4723_v22  ;;  %v1044_v46 = vadd.f32 %v1043_v40, %v4740_v8  ;;  %v4763_v14 = vmax.f32 %v4568_v2, 0.0  ;;  %5986 = vst [vmem:[#allocation48_spill] sm:$0xff] %v4776_v30  ;;  %v547_v40 = vadd.f32 %v4574_v17, %v4584_v49 }
 0x18d   :  { %v4790_v8 = vmax.f32 %v4495_v42, 0.0  ;;  %v4805_v42 = vmax.f32 %v4592_v18, 0.0  ;;  %v4810_v1 = vmax.f32 %v725_v16, 0.0  ;;  %v557_v18 = vadd.f32 %v4598_v24, %v4610_v62  ;;  %v5993_v24 = vld [vmem:[#allocation8_spill] sm:$0xff] }
 0x18e   :  { %v1012_v5 = vadd.f32 %v1011_v23, %v4734_v28  ;;  %5985 = vst [vmem:[#allocation47_spill] sm:$0xff] %v4763_v14  ;;  %v1045_v23 = vadd.f32 %v1044_v46, %v4748_v34  ;;  %v4773_v12 = vpop.f32.mrf.mxu1  ;;  %v4795_v49 = vmax.f32 %v547_v40, 0.0  ;;  %v730_v40 = vadd.f32 %v4512_v58, %v4546_v29 }
 0x18f   :  { %v4725_v61 = vpop.f32.mrf.mxu2  ;;  %5988 = vst [vmem:[#allocation50_spill] sm:$0xff] %v4790_v8  ;;  %v4827_v58 = vmax.f32 %v4604_v55, 0.0  ;;  %v560_v29 = vadd.f32 %v4602_v21, %v4618_v20  ;;  %v735_v62 = vadd.f32 %v5993_v24, %v4566_v57  ;;  %v6001_v24 = vld [vmem:[#allocation10_spill] sm:$0xff] }
 0x190   :  { %v4731_v54 = vpop.f32.mrf.mxu0  ;;  %v1013_v37 = vadd.f32 %v1012_v5, %v4744_v52  ;;  %v1046_v2 = vadd.f32 %v1045_v23, %v4757_v44  ;;  %v4782_v5 = vmax.f32 %v4474_v27, 0.0  ;;  %v552_v27 = vadd.f32 %v4586_v38, %v4596_v63  ;;  %5990 = vst [vmem:[#allocation52_spill] sm:$0xff] %v4810_v1 }
 0x191   :  { %v4846_v21 = vmax.f32 %v560_v29, 0.0  ;;  %v567_v29 = vadd.f32 %v4642_v53, %v4685_v39  ;;  %v6008_v53 = vld [vmem:[#allocation12_spill] sm:$0xff] }
 0x192   :  { %v1014_v3 = vadd.f32 %v1013_v37, %v4751_v10  ;;  %v1047_v34 = vadd.f32 %v1046_v2, %v4769_v48  ;;  %v4814_v38 = vpop.f32.mrf.mxu3 }
 0x194   :  { %v1015_v46 = vadd.f32 %v1014_v3, %v4763_v14  ;;  %v1048_v37 = vadd.f32 %v1047_v34, %v4782_v5  ;;  %v4817_v34 = vmax.f32 %v552_v27, 0.0 }
 0x196   :  { %v1016_v17 = vadd.f32 %v1015_v46, %v4776_v30  ;;  %v1049_v35 = vadd.f32 %v1048_v37, %v4790_v8  ;;  %v4823_v46 = vmax.f32 %v4526_v13, 0.0  ;;  %v576_v16 = vpop.f32.mrf.mxu1  ;;  %v4832_v37 = vmax.f32 %v730_v40, 0.0  ;;  %v5998_v40 = vld [vmem:[#allocation24_spill] sm:$0xff] }
 0x197   :  { %v4765_v60 = vpop.f32.mrf.mxu2  ;;  %v4837_v13 = vmax.f32 %v557_v18, 0.0  ;;  %v6000_v18 = vld [vmem:[#allocation13_spill] sm:$0xff] }
 0x198   :  { %v4771_v45 = vpop.f32.mrf.mxu0  ;;  %v1017_v23 = vadd.f32 %v1016_v17, %v4786_v19  ;;  %v1050_v2 = vadd.f32 %v1049_v35, %v4801_v31  ;;  %5991 = vst [vmem:[#allocation53_spill] sm:$0xff] %v4823_v46  ;;  %v5994_v35 = vld [vmem:[#allocation21_spill] sm:$0xff] }
 0x199   :  { %5992 = vst [vmem:[#allocation54_spill] sm:$0xff] %v4832_v37  ;;  %v5995_v31 = vld [vmem:[#allocation9_spill] sm:$0xff] }
 0x19a   :  { %v1018_v50 = vadd.f32 %v1017_v23, %v4795_v49  ;;  %v1051_v27 = vadd.f32 %v1050_v2, %v4810_v1  ;;  %v4843_v8 = vmax.f32 %v5995_v31, 0.0  ;;  %5997 = vst [vmem:[#allocation21_spill] sm:$0xff] %v4846_v21  ;;  %v565_v2 = vadd.f32 %v5998_v40, %v4658_v15  ;;  %v6003_v15 = vld [vmem:[#allocation11_spill] sm:$0xff] }
 0x19b   :  { %v740_v1 = vadd.f32 %v6001_v24, %v6000_v18  ;;  %v4864_v40 = vmax.f32 %v6003_v15, 0.0  ;;  %v570_v24 = vadd.f32 %v4670_v7, %v4731_v54 }
 0x19c   :  { %v1019_v17 = vadd.f32 %v1018_v50, %v4805_v42  ;;  %v562_v50 = vadd.f32 %v5994_v35, %v4635_v32  ;;  %v1052_v55 = vadd.f32 %v1051_v27, %v4823_v46  ;;  %5996 = vst [vmem:[#allocation8_spill] sm:$0xff] %v4843_v8  ;;  %v4869_v18 = vmax.f32 %v565_v2, 0.0  ;;  %v6010_v46 = vld [vmem:[#allocation14_spill] sm:$0xff] }
 0x19d   :  { %6004 = vst [vmem:[#allocation13_spill] sm:$0xff] %v4864_v40  ;;  %v4888_v54 = vmax.f32 %v570_v24, 0.0 }
 0x19e   :  { %v1020_v23 = vadd.f32 %v1019_v17, %v4817_v34  ;;  %v1053_v57 = vadd.f32 %v1052_v55, %v4832_v37  ;;  %v4851_v17 = vmax.f32 %v735_v62, 0.0  ;;  %v4858_v35 = vmax.f32 %v562_v50, 0.0  ;;  %v4866_v62 = vpop.f32.mrf.mxu3  ;;  %6005 = vst [vmem:[#allocation10_spill] sm:$0xff] %v4869_v18  ;;  %v6007_v37 = vld [vmem:[#allocation15_spill] sm:$0xff] }
 0x19f   :  { %v4807_v3 = vpop.f32.mrf.mxu2  ;;  %v745_v39 = vadd.f32 %v6008_v53, %v6007_v37 }
 0x1a0   :  { %v475_v63 = vpop.f32.mrf.mxu0  ;;  %v1021_v20 = vadd.f32 %v1020_v23, %v4827_v58  ;;  %5999 = vst [vmem:[#allocation9_spill] sm:$0xff] %v4851_v17  ;;  %v1054_v23 = vadd.f32 %v1053_v57, %v4843_v8  ;;  %v579_v57 = vpop.f32.mrf.mxu1  ;;  %v4879_v8 = vmax.f32 %v567_v29, 0.0  ;;  %v6013_v29 = vld [vmem:[#allocation18_spill] sm:$0xff] }
 0x1a1   :  { %6002 = vst [vmem:[#allocation24_spill] sm:$0xff] %v4858_v35 }
 0x1a2   :  { %v1022_v31 = vadd.f32 %v1021_v20, %v4837_v13  ;;  %v1055_v50 = vadd.f32 %v1054_v23, %v4851_v17  ;;  %v4874_v20 = vmax.f32 %v740_v1, 0.0  ;;  %6009 = vst [vmem:[#allocation15_spill] sm:$0xff] %v4879_v8  ;;  %v575_v1 = vadd.f32 %v4773_v12, %v475_v63 }
 0x1a3   :  { %v4892_v23 = vmax.f32 %v745_v39, 0.0 }
 0x1a4   :  { %v1023_v55 = vadd.f32 %v1022_v31, %v4846_v21  ;;  %6006 = vst [vmem:[#allocation11_spill] sm:$0xff] %v4874_v20  ;;  %v572_v31 = vadd.f32 %v4719_v0, %v4771_v45  ;;  %v1056_v2 = vadd.f32 %v1055_v50, %v4864_v40  ;;  %v4885_v21 = vmax.f32 %v6010_v46, 0.0 }
 0x1a5   :  { %6012 = vst [vmem:[#allocation14_spill] sm:$0xff] %v4892_v23  ;;  %v4904_v63 = vmax.f32 %v575_v1, 0.0 }
 0x1a6   :  { %v1024_v15 = vadd.f32 %v1023_v55, %v4858_v35  ;;  %6011 = vst [vmem:[#allocation12_spill] sm:$0xff] %v4885_v21  ;;  %v1057_v37 = vadd.f32 %v1056_v2, %v4874_v20  ;;  %v6014_v55 = vld [vmem:[#allocation16_spill] sm:$0xff]  ;;  %v4897_v45 = vmax.f32 %v572_v31, 0.0  ;;  %v6020_v31 = vld [vmem:[#allocation19_spill] sm:$0xff] }
 0x1a7   :  { %v4855_v32 = vpop.f32.mrf.mxu2  ;;  %v750_v53 = vadd.f32 %v6014_v55, %v6013_v29  ;;  %v774_v55 = vpop.f32.mrf.mxu3 }
 0x1a8   :  { %v477_v27 = vpop.f32.mrf.mxu0  ;;  %v1025_v7 = vadd.f32 %v1024_v15, %v4869_v18  ;;  %6015 = vst [vmem:[#allocation18_spill] sm:$0xff] %v4897_v45  ;;  %v1058_v50 = vadd.f32 %v1057_v37, %v4885_v21  ;;  %v6016_v15 = vld [vmem:[#allocation17_spill] sm:$0xff]  ;;  %v581_v1 = vpop.f32.mrf.mxu1 }
 0x1a9   :  { %v577_v46 = vadd.f32 %v576_v16, %v477_v27  ;;  %v4901_v24 = vmax.f32 %v6016_v15, 0.0  ;;  %v4907_v29 = vmax.f32 %v750_v53, 0.0  ;;  %v6021_v15 = vld [vmem:[#allocation20_spill] sm:$0xff] }
 0x1aa   :  { %v1026_v0 = vadd.f32 %v1025_v7, %v4879_v8  ;;  %v1059_v2 = vadd.f32 %v1058_v50, %v4892_v23  ;;  %v6019_v7 = vld [vmem:[#allocation23_spill] sm:$0xff]  ;;  %v4916_v21 = vmax.f32 %v6021_v15, 0.0  ;;  %v4083_v23 = vmov 288.0  }
 0x1ab   :  { %6017 = vst [vmem:[#allocation16_spill] sm:$0xff] %v4901_v24  ;;  %v755_v20 = vadd.f32 %v6020_v31, %v6019_v7  ;;  %v4912_v27 = vmax.f32 %v577_v46, 0.0  ;;  %4047 = vrcp.f32 %v4083_v23 }
 0x1ac   :  { %v1027_v12 = vadd.f32 %v1026_v0, %v4888_v54  ;;  %6018 = vst [vmem:[#allocation17_spill] sm:$0xff] %v4907_v29  ;;  %v1060_v37 = vadd.f32 %v1059_v2, %v4901_v24  ;;  %v6022_v0 = vld [vmem:[#allocation28_spill] sm:$0xff]  ;;  %v6024_v2 = vld [vmem:[#allocation29_spill] sm:$0xff] }
 0x1ad   :  { %v4924_v46 = vmax.f32 %v755_v20, 0.0  ;;  %v760_v31 = vadd.f32 %v6024_v2, %v4656_v6  ;;  %v765_v6 = vadd.f32 %v4708_v36, %v4725_v61  ;;  %v770_v2 = vadd.f32 %v4814_v38, %v4807_v3 }
 0x1ae   :  { %v1028_v16 = vadd.f32 %v1027_v12, %v4897_v45  ;;  %v1061_v7 = vadd.f32 %v1060_v37, %v4907_v29 }
 0x1af   :  { %v675_v40 = vpop.f32.mrf.mxu2  ;;  %v4938_v29 = vmax.f32 %v760_v31, 0.0 }
 0x1b0   :  { %v480_v17 = vpop.f32.mrf.mxu0  ;;  %v1029_v53 = vadd.f32 %v1028_v16, %v4904_v63  ;;  %v1062_v45 = vadd.f32 %v1061_v7, %v4916_v21 }
 0x1b1   :  { %v580_v39 = vadd.f32 %v579_v57, %v480_v17  ;;  %v6023_v17 = vld [vmem:[#allocation22_spill] sm:$0xff]  ;;  %v4048_v20 = vpop.eup %4047  ;;  %6025 = vst [vmem:[#allocation23_spill] sm:$0xff] %v4938_v29 }
 0x1b2   :  { %v758_v57 = vadd.f32 %v6023_v17, %v6022_v0  ;;  %v1030_v15 = vadd.f32 %v1029_v53, %v4912_v27  ;;  %v1063_v17 = vadd.f32 %v1062_v45, %v4924_v46  ;;  %v4949_v45 = vmax.f32 %v765_v6, 0.0 }
 0x1b3   :  { %v4921_v50 = vmax.f32 %v580_v39, 0.0  ;;  %v763_v39 = vadd.f32 %v4664_v25, %v4680_v51  ;;  %v768_v25 = vadd.f32 %v4759_v11, %v4765_v60  ;;  %v4959_v60 = vmax.f32 %v770_v2, 0.0 }
 0x1b4   :  { %v4930_v0 = vmax.f32 %v758_v57, 0.0  ;;  %v777_v57 = vpop.f32.mrf.mxu3  ;;  %vm1085_vm1 = vweird.f32 %v4048_v20 }
 0x1b5   :  { %v1031_v23 = vadd.f32 %v1030_v15, %v4921_v50  ;;  %v4944_v7 = vmax.f32 %v763_v39, 0.0  ;;  %v4954_v31 = vmax.f32 %v768_v25, 0.0  ;;  %v773_v15 = vadd.f32 %v4866_v62, %v4855_v32  ;;  %6026 = vst [vmem:[#allocation19_spill] sm:$0xff] %v4959_v60 }
 0x1b6   :  { %v1064_v53 = vadd.f32 %v1063_v17, %v4930_v0  ;;  %v775_v17 = vadd.f32 %v774_v55, %v675_v40 }
 0x1b7   :  { %v678_v37 = vpop.f32.mrf.mxu2 }
 0x1b8   :  { %v482_v12 = vpop.f32.mrf.mxu0  ;;  %v778_v3 = vadd.f32 %v777_v57, %v678_v37 }
 0x1b9   :  { %v582_v24 = vadd.f32 %v581_v1, %v482_v12  ;;  %v1065_v12 = vadd.f32 %v1064_v53, %v4938_v29  ;;  %v4962_v29 = vmax.f32 %v773_v15, 0.0 }
 0x1bb   :  { %v4935_v16 = vmax.f32 %v582_v24, 0.0  ;;  %v1081_v24 = vmul.f32 288.0, %v4048_v20  ;;  %v1066_v61 = vadd.f32 %v1065_v12, %v4944_v7  ;;  %6027 = vst [vmem:[#allocation20_spill] sm:$0xff] %v4962_v29  ;;  %v4965_v12 = vmax.f32 %v775_v17, 0.0 }
 0x1bd   :  { %v1032_v1 = vadd.f32 %v1031_v23, %v4935_v16  ;;  %v1082_v23 = vsub.f32 1.0, %v1081_v24  ;;  %v1067_v11 = vadd.f32 %v1066_v61, %v4949_v45  ;;  %6028 = vst [vmem:[#allocation28_spill] sm:$0xff] %v4965_v12  ;;  %v4968_v24 = vmax.f32 %v778_v3, 0.0 }
 0x1bf   :  { %v1033_v51 = vrot.slane %v1032_v1, 4  ;;  %v680_v6 = vpop.f32.mrf.mxu2  ;;  %v1068_v53 = vadd.f32 %v1067_v11, %v4954_v31  ;;  %v1083_v25 = vmul.f32 %v4048_v20, %v1082_v23  ;;  %6029 = vst [vmem:[#allocation22_spill] sm:$0xff] %v4968_v24  ;;  %v6032_v11 = vld [vmem:[#allocation25_spill] sm:$0xff] }
 0x1c1   :  { %v1034_v36 = vadd.f32 %v1033_v51, %v1032_v1  ;;  %v779_v1 = vpop.f32.mrf.mxu3  ;;  %v1069_v51 = vadd.f32 %v1068_v53, %v4959_v60  ;;  %v1084_v40 = vadd.f32 %v4048_v20, %v1083_v25 }
 0x1c2   :  { %v780_v32 = vadd.f32 %v779_v1, %v680_v6  ;;  %v6033_v6 = vld [vmem:[#allocation26_spill] sm:$0xff] }
 0x1c3   :  { %v1035_v39 = vrot.slane %v1034_v36, 2  ;;  %v1070_v62 = vadd.f32 %v1069_v51, %v4962_v29 }
 0x1c4   :  { %v4971_v61 = vmax.f32 %v780_v32, 0.0 }
 0x1c5   :  { %v1036_v38 = vadd.f32 %v1035_v39, %v1034_v36  ;;  %v1071_v55 = vadd.f32 %v1070_v62, %v4965_v12  ;;  %v4974_v36 = vsel %vm1085_vm1, %v4048_v20, %v1084_v40  ;;  %v6034_v20 = vld [vmem:[#allocation30_spill] sm:$0xff]  ;;  %v6035_v62 = vld [vmem:[#allocation31_spill] sm:$0xff] }
 0x1c6   :  { %6030 = vst [vmem:[#allocation29_spill] sm:$0xff] %v4971_v61 }
 0x1c7   :  { %v1037_v2 = vrot.slane %v1036_v38, 1  ;;  %v1072_v37 = vadd.f32 %v1071_v55, %v4968_v24 }
 0x1c9   :  { %v1038_v57 = vadd.f32 %v1037_v2, %v1036_v38  ;;  %v1073_v15 = vadd.f32 %v1072_v37, %v4971_v61  ;;  %v6036_v37 = vld [vmem:[#allocation32_spill] sm:$0xff] }
 0x1cb   :  { %v4978_v39 = vmul.f32 %v4974_v36, %v1038_v57  ;;  %v1074_v23 = vrot.slane %v1073_v15, 4 }
 0x1cd   :  { %6031 = vst [vmem:[#allocation55_spill] sm:$0xff] %v4978_v39  ;;  %v1089_v17 = vsub.f32 %v6032_v11, %v4978_v39  ;;  %v1091_v53 = vsub.f32 %v6033_v6, %v4978_v39  ;;  %v1075_v3 = vadd.f32 %v1074_v23, %v1073_v15  ;;  %v1093_v1 = vsub.f32 %v4629_v41, %v4978_v39  ;;  %v6037_v23 = vld [vmem:[#allocation33_spill] sm:$0xff] }
 0x1ce   :  { %v1095_v51 = vsub.f32 %v6034_v20, %v4978_v39  ;;  %v1097_v2 = vsub.f32 %v6035_v62, %v4978_v39  ;;  %v1099_v57 = vsub.f32 %v6036_v37, %v4978_v39  ;;  %v1101_v41 = vsub.f32 %v6037_v23, %v4978_v39 }
 0x1cf   :  { %v1161_v25 = vmul.f32 %v1089_v17, %v1089_v17  ;;  %v1163_v38 = vmul.f32 %v1091_v53, %v1091_v53  ;;  %v1076_v32 = vrot.slane %v1075_v3, 2  ;;  %v1165_v40 = vmul.f32 %v1093_v1, %v1093_v1 }
 0x1d0   :  { %v1167_v11 = vmul.f32 %v1095_v51, %v1095_v51  ;;  %v1169_v17 = vmul.f32 %v1097_v2, %v1097_v2  ;;  %v1103_v20 = vsub.f32 %v4662_v59, %v4978_v39  ;;  %v1171_v61 = vmul.f32 %v1099_v57, %v1099_v57  ;;  %v6038_v51 = vld [vmem:[#allocation35_spill] sm:$0xff] }
 0x1d1   :  { %v1233_v55 = vadd.f32 %v1163_v38, %v1161_v25  ;;  %v1077_v15 = vadd.f32 %v1076_v32, %v1075_v3  ;;  %v1105_v1 = vsub.f32 %v4668_v33, %v4978_v39  ;;  %v1173_v25 = vmul.f32 %v1101_v41, %v1101_v41 }
 0x1d2   :  { %v1175_v3 = vmul.f32 %v1103_v20, %v1103_v20  ;;  %v1111_v57 = vsub.f32 %v4689_v9, %v4978_v39  ;;  %v1113_v41 = vsub.f32 %v4701_v4, %v4978_v39 }
 0x1d3   :  { %v1234_v6 = vadd.f32 %v1233_v55, %v1165_v40  ;;  %v1078_v12 = vrot.slane %v1077_v15, 1  ;;  %v1107_v40 = vsub.f32 %v6038_v51, %v4978_v39 }
 0x1d4   :  { %v1183_v20 = vmul.f32 %v1111_v57, %v1111_v57 }
 0x1d5   :  { %v1235_v53 = vadd.f32 %v1234_v6, %v1167_v11  ;;  %v1079_v55 = vadd.f32 %v1078_v12, %v1077_v15  ;;  %v1109_v11 = vsub.f32 %v4678_v26, %v4978_v39  ;;  %v1177_v6 = vmul.f32 %v1105_v1, %v1105_v1  ;;  %v6039_v1 = vld [vmem:[#allocation39_spill] sm:$0xff]  ;;  %v6042_v26 = vld [vmem:[#allocation41_spill] sm:$0xff] }
 0x1d6   :  { %v1115_v12 = vsub.f32 %v4711_v56, %v4978_v39 }
 0x1d7   :  { %v1236_v24 = vadd.f32 %v1235_v53, %v1169_v17  ;;  %v1179_v17 = vmul.f32 %v1107_v40, %v1107_v40  ;;  %v5005_v33 = vmul.f32 %v4974_v36, %v1079_v55 }
 0x1d9   :  { %v1237_v38 = vadd.f32 %v1236_v24, %v1171_v61  ;;  %v1181_v24 = vmul.f32 %v1109_v11, %v1109_v11  ;;  %v1119_v11 = vsub.f32 %v4734_v28, %v4978_v39 }
 0x1db   :  { %v1238_v32 = vadd.f32 %v1237_v38, %v1173_v25  ;;  %v1090_v25 = vsub.f32 %v6039_v1, %v5005_v33  ;;  %v6040_v38 = vld [vmem:[#allocation37_spill] sm:$0xff]  ;;  %v1096_v1 = vsub.f32 %v6042_v26, %v5005_v33  ;;  %v1127_v26 = vsub.f32 %v4776_v30, %v4978_v39 }
 0x1dc   :  { %v1092_v40 = vsub.f32 %v6040_v38, %v5005_v33 }
 0x1dd   :  { %v1239_v2 = vadd.f32 %v1238_v32, %v1175_v3  ;;  %v1117_v3 = vsub.f32 %v4723_v22, %v4978_v39  ;;  %v1185_v32 = vmul.f32 %v1113_v41, %v1113_v41  ;;  %v1123_v41 = vsub.f32 %v4751_v10, %v4978_v39 }
 0x1df   :  { %v1240_v53 = vadd.f32 %v1239_v2, %v1177_v6  ;;  %v1187_v6 = vmul.f32 %v1115_v12, %v1115_v12  ;;  %v1189_v9 = vmul.f32 %v1117_v3, %v1117_v3  ;;  %v1098_v12 = vsub.f32 %v4717_v47, %v5005_v33 }
 0x1e0   :  { %v1100_v3 = vsub.f32 %v4729_v43, %v5005_v33 }
 0x1e1   :  { %v1241_v61 = vadd.f32 %v1240_v53, %v1179_v17  ;;  %v6041_v17 = vld [vmem:[#allocation40_spill] sm:$0xff]  ;;  %v1162_v53 = vmul.f32 %v1090_v25, %v1090_v25  ;;  %v1125_v25 = vsub.f32 %v4763_v14, %v4978_v39 }
 0x1e2   :  { %v1094_v57 = vsub.f32 %v6041_v17, %v5005_v33 }
 0x1e3   :  { %v1242_v15 = vadd.f32 %v1241_v61, %v1181_v24  ;;  %v1164_v24 = vmul.f32 %v1092_v40, %v1092_v40  ;;  %v1121_v61 = vsub.f32 %v4744_v52, %v4978_v39 }
 0x1e5   :  { %v1243_v55 = vadd.f32 %v1242_v15, %v1183_v20  ;;  %v1191_v20 = vmul.f32 %v1119_v11, %v1119_v11  ;;  %v1193_v40 = vmul.f32 %v1121_v61, %v1121_v61  ;;  %v1195_v11 = vmul.f32 %v1123_v41, %v1123_v41 }
 0x1e6   :  { %v1197_v61 = vmul.f32 %v1125_v25, %v1125_v25  ;;  %v1199_v41 = vmul.f32 %v1127_v26, %v1127_v26 }
 0x1e7   :  { %v1244_v2 = vadd.f32 %v1243_v55, %v1185_v32  ;;  %v1166_v32 = vmul.f32 %v1094_v57, %v1094_v57  ;;  %v1274_v55 = vadd.f32 %v1164_v24, %v1162_v53  ;;  %v1170_v57 = vmul.f32 %v1098_v12, %v1098_v12 }
 0x1e8   :  { %v1129_v24 = vsub.f32 %v4786_v19, %v4978_v39 }
 0x1e9   :  { %v1245_v38 = vadd.f32 %v1244_v2, %v1187_v6  ;;  %v1168_v6 = vmul.f32 %v1096_v1, %v1096_v1  ;;  %v1275_v2 = vadd.f32 %v1274_v55, %v1166_v32  ;;  %v1172_v1 = vmul.f32 %v1100_v3, %v1100_v3 }
 0x1ea   :  { %v1131_v55 = vsub.f32 %v4795_v49, %v4978_v39  ;;  %v1201_v25 = vmul.f32 %v1129_v24, %v1129_v24 }
 0x1eb   :  { %v1246_v15 = vadd.f32 %v1245_v38, %v1189_v9  ;;  %v6043_v38 = vld [vmem:[#allocation44_spill] sm:$0xff]  ;;  %v1276_v53 = vadd.f32 %v1275_v2, %v1168_v6  ;;  %v1133_v2 = vsub.f32 %v4805_v42, %v4978_v39 }
 0x1ec   :  { %v1102_v47 = vsub.f32 %v6043_v38, %v5005_v33  ;;  %v1203_v26 = vmul.f32 %v1131_v55, %v1131_v55 }
 0x1ed   :  { %v1247_v17 = vadd.f32 %v1246_v15, %v1191_v20  ;;  %v6044_v15 = vld [vmem:[#allocation45_spill] sm:$0xff]  ;;  %v1277_v32 = vadd.f32 %v1276_v53, %v1170_v57  ;;  %v1135_v53 = vsub.f32 %v4817_v34, %v4978_v39  ;;  %v1205_v24 = vmul.f32 %v1133_v2, %v1133_v2 }
 0x1ee   :  { %v1104_v14 = vsub.f32 %v6044_v15, %v5005_v33  ;;  %v1174_v12 = vmul.f32 %v1102_v47, %v1102_v47 }
 0x1ef   :  { %v1248_v9 = vadd.f32 %v1247_v17, %v1193_v40  ;;  %v1106_v40 = vsub.f32 %v4757_v44, %v5005_v33  ;;  %v1278_v6 = vadd.f32 %v1277_v32, %v1172_v1  ;;  %v1137_v32 = vsub.f32 %v4827_v58, %v4978_v39 }
 0x1f0   :  { %v1176_v3 = vmul.f32 %v1104_v14, %v1104_v14  ;;  %v1207_v55 = vmul.f32 %v1135_v53, %v1135_v53 }
 0x1f1   :  { %v1249_v20 = vadd.f32 %v1248_v9, %v1195_v11  ;;  %v1108_v9 = vsub.f32 %v4769_v48, %v5005_v33  ;;  %v1279_v57 = vadd.f32 %v1278_v6, %v1174_v12  ;;  %v1178_v47 = vmul.f32 %v1106_v40, %v1106_v40 }
 0x1f2   :  { %v1139_v6 = vsub.f32 %v4837_v13, %v4978_v39  ;;  %v1209_v2 = vmul.f32 %v1137_v32, %v1137_v32 }
 0x1f3   :  { %v1250_v17 = vadd.f32 %v1249_v20, %v1197_v61  ;;  %v1110_v20 = vsub.f32 %v4782_v5, %v5005_v33  ;;  %v1280_v1 = vadd.f32 %v1279_v57, %v1176_v3  ;;  %v1180_v14 = vmul.f32 %v1108_v9, %v1108_v9  ;;  %v6047_v57 = vld [vmem:[#allocation21_spill] sm:$0xff] }
 0x1f4   :  { %v1141_v44 = vsub.f32 %v6047_v57, %v4978_v39  ;;  %v1211_v53 = vmul.f32 %v1139_v6, %v1139_v6 }
 0x1f5   :  { %v1251_v11 = vadd.f32 %v1250_v17, %v1199_v41  ;;  %v6045_v17 = vld [vmem:[#allocation50_spill] sm:$0xff]  ;;  %v1281_v12 = vadd.f32 %v1280_v1, %v1178_v47  ;;  %v1182_v40 = vmul.f32 %v1110_v20, %v1110_v20  ;;  %v1143_v1 = vsub.f32 %v4858_v35, %v4978_v39 }
 0x1f6   :  { %v1112_v19 = vsub.f32 %v6045_v17, %v5005_v33  ;;  %v1213_v32 = vmul.f32 %v1141_v44, %v1141_v44 }
 0x1f7   :  { %v1252_v61 = vadd.f32 %v1251_v11, %v1201_v25  ;;  %v6046_v11 = vld [vmem:[#allocation51_spill] sm:$0xff]  ;;  %v1282_v3 = vadd.f32 %v1281_v12, %v1180_v14  ;;  %v1145_v12 = vsub.f32 %v4869_v18, %v4978_v39  ;;  %v1215_v6 = vmul.f32 %v1143_v1, %v1143_v1 }
 0x1f8   :  { %v1114_v30 = vsub.f32 %v6046_v11, %v5005_v33  ;;  %v1184_v9 = vmul.f32 %v1112_v19, %v1112_v19 }
 0x1f9   :  { %v1253_v41 = vadd.f32 %v1252_v61, %v1203_v26  ;;  %v6048_v61 = vld [vmem:[#allocation52_spill] sm:$0xff]  ;;  %v1283_v47 = vadd.f32 %v1282_v3, %v1182_v40  ;;  %v1147_v3 = vsub.f32 %v4879_v8, %v4978_v39  ;;  %v1217_v44 = vmul.f32 %v1145_v12, %v1145_v12 }
 0x1fa   :  { %v1116_v15 = vsub.f32 %v6048_v61, %v5005_v33  ;;  %v1186_v20 = vmul.f32 %v1114_v30, %v1114_v30 }
 0x1fb   :  { %v1254_v25 = vadd.f32 %v1253_v41, %v1205_v24  ;;  %v6049_v41 = vld [vmem:[#allocation53_spill] sm:$0xff]  ;;  %v1284_v14 = vadd.f32 %v1283_v47, %v1184_v9  ;;  %v1149_v47 = vsub.f32 %v4888_v54, %v4978_v39  ;;  %v1219_v1 = vmul.f32 %v1147_v3, %v1147_v3 }
 0x1fc   :  { %v1118_v38 = vsub.f32 %v6049_v41, %v5005_v33  ;;  %v1188_v19 = vmul.f32 %v1116_v15, %v1116_v15 }
 0x1fd   :  { %v1255_v26 = vadd.f32 %v1254_v25, %v1207_v55  ;;  %v6050_v25 = vld [vmem:[#allocation54_spill] sm:$0xff]  ;;  %v1285_v40 = vadd.f32 %v1284_v14, %v1186_v20  ;;  %v1221_v12 = vmul.f32 %v1149_v47, %v1149_v47 }
 0x1fe   :  { %v1120_v43 = vsub.f32 %v6050_v25, %v5005_v33  ;;  %v1190_v30 = vmul.f32 %v1118_v38, %v1118_v38  ;;  %v6053_v14 = vld [vmem:[#allocation18_spill] sm:$0xff] }
 0x1ff   :  { %v1256_v24 = vadd.f32 %v1255_v26, %v1209_v2  ;;  %v6051_v26 = vld [vmem:[#allocation8_spill] sm:$0xff]  ;;  %v1286_v9 = vadd.f32 %v1285_v40, %v1188_v19  ;;  %v1151_v8 = vsub.f32 %v6053_v14, %v4978_v39  ;;  %v1153_v40 = vsub.f32 %v4904_v63, %v4978_v39 }
 0x200   :  { %v1122_v35 = vsub.f32 %v6051_v26, %v5005_v33  ;;  %v1192_v15 = vmul.f32 %v1120_v43, %v1120_v43 }
 0x201   :  { %v1257_v55 = vadd.f32 %v1256_v24, %v1211_v53  ;;  %v6052_v24 = vld [vmem:[#allocation9_spill] sm:$0xff]  ;;  %v1287_v20 = vadd.f32 %v1286_v9, %v1190_v30  ;;  %v1155_v9 = vsub.f32 %v4912_v27, %v4978_v39  ;;  %v1223_v3 = vmul.f32 %v1151_v8, %v1151_v8 }
 0x202   :  { %v1124_v18 = vsub.f32 %v6052_v24, %v5005_v33  ;;  %v1194_v38 = vmul.f32 %v1122_v35, %v1122_v35  ;;  %v1225_v47 = vmul.f32 %v1153_v40, %v1153_v40  ;;  %v6059_v40 = vld [vmem:[#allocation17_spill] sm:$0xff] }
 0x203   :  { %v1258_v2 = vadd.f32 %v1257_v55, %v1213_v32  ;;  %v6054_v55 = vld [vmem:[#allocation13_spill] sm:$0xff]  ;;  %v1288_v19 = vadd.f32 %v1287_v20, %v1192_v15  ;;  %v1157_v20 = vsub.f32 %v4921_v50, %v4978_v39  ;;  %v1227_v8 = vmul.f32 %v1155_v9, %v1155_v9 }
 0x204   :  { %v1126_v26 = vsub.f32 %v6054_v55, %v5005_v33  ;;  %v1196_v43 = vmul.f32 %v1124_v18, %v1124_v18 }
 0x205   :  { %v1259_v53 = vadd.f32 %v1258_v2, %v1215_v6  ;;  %v6055_v2 = vld [vmem:[#allocation11_spill] sm:$0xff]  ;;  %v1289_v30 = vadd.f32 %v1288_v19, %v1194_v38  ;;  %v1159_v19 = vsub.f32 %v4935_v16, %v4978_v39 }
 0x206   :  { %v1128_v24 = vsub.f32 %v6055_v2, %v5005_v33  ;;  %v1198_v35 = vmul.f32 %v1126_v26, %v1126_v26 }
 0x207   :  { %v1260_v32 = vadd.f32 %v1259_v53, %v1217_v44  ;;  %v6056_v53 = vld [vmem:[#allocation12_spill] sm:$0xff]  ;;  %v1290_v15 = vadd.f32 %v1289_v30, %v1196_v43  ;;  %v1229_v30 = vmul.f32 %v1157_v20, %v1157_v20 }
 0x208   :  { %v1130_v55 = vsub.f32 %v6056_v53, %v5005_v33  ;;  %v1200_v18 = vmul.f32 %v1128_v24, %v1128_v24 }
 0x209   :  { %v1261_v6 = vadd.f32 %v1260_v32, %v1219_v1  ;;  %v6057_v32 = vld [vmem:[#allocation14_spill] sm:$0xff]  ;;  %v1291_v38 = vadd.f32 %v1290_v15, %v1198_v35  ;;  %v1138_v35 = vsub.f32 %v4916_v21, %v5005_v33 }
 0x20a   :  { %v1132_v2 = vsub.f32 %v6057_v32, %v5005_v33  ;;  %v1202_v26 = vmul.f32 %v1130_v55, %v1130_v55  ;;  %v1231_v32 = vmul.f32 %v1159_v19, %v1159_v19 }
 0x20b   :  { %v1262_v44 = vadd.f32 %v1261_v6, %v1221_v12  ;;  %v6058_v6 = vld [vmem:[#allocation16_spill] sm:$0xff]  ;;  %v1292_v43 = vadd.f32 %v1291_v38, %v1200_v18  ;;  %v1142_v38 = vsub.f32 %v4930_v0, %v5005_v33 }
 0x20c   :  { %v1134_v53 = vsub.f32 %v6058_v6, %v5005_v33 }
 0x20d   :  { %v1263_v1 = vadd.f32 %v1262_v44, %v1223_v3  ;;  %v1136_v3 = vsub.f32 %v6059_v40, %v5005_v33  ;;  %v1204_v44 = vmul.f32 %v1132_v2, %v1132_v2  ;;  %v1293_v41 = vadd.f32 %v1292_v43, %v1202_v26 }
 0x20e   :  { %v1206_v15 = vmul.f32 %v1134_v53, %v1134_v53 }
 0x20f   :  { %v1264_v12 = vadd.f32 %v1263_v1, %v1225_v47  ;;  %v1294_v9 = vadd.f32 %v1293_v41, %v1204_v44  ;;  %v1140_v1 = vsub.f32 %v4924_v46, %v5005_v33  ;;  %v1208_v55 = vmul.f32 %v1136_v3, %v1136_v3 }
 0x210   :  { %v1146_v41 = vsub.f32 %v4944_v7, %v5005_v33  ;;  %v1148_v44 = vsub.f32 %v4949_v45, %v5005_v33 }
 0x211   :  { %v1265_v25 = vadd.f32 %v1264_v12, %v1227_v8  ;;  %v1295_v18 = vadd.f32 %v1294_v9, %v1206_v15  ;;  %v1210_v8 = vmul.f32 %v1138_v35, %v1138_v35  ;;  %v1212_v26 = vmul.f32 %v1140_v1, %v1140_v1 }
 0x212   :  { %v1150_v9 = vsub.f32 %v4954_v31, %v5005_v33 }
 0x213   :  { %v1266_v24 = vadd.f32 %v1265_v25, %v1229_v30  ;;  %v1296_v2 = vadd.f32 %v1295_v18, %v1208_v55  ;;  %v6060_v25 = vld [vmem:[#allocation23_spill] sm:$0xff]  ;;  %v1152_v18 = vsub.f32 %v4959_v60, %v5005_v33 }
 0x214   :  { %v1144_v19 = vsub.f32 %v6060_v25, %v5005_v33 }
 0x215   :  { %v1267_v47 = vadd.f32 %v1266_v24, %v1231_v32  ;;  %v1297_v43 = vadd.f32 %v1296_v2, %v1210_v8  ;;  %v1214_v32 = vmul.f32 %v1142_v38, %v1142_v38  ;;  %v1154_v2 = vsub.f32 %v4962_v29, %v5005_v33 }
 0x216   :  { %v1216_v24 = vmul.f32 %v1144_v19, %v1144_v19 }
 0x217   :  { %v1268_v20 = vrot.slane %v1267_v47, 4  ;;  %v1298_v30 = vadd.f32 %v1297_v43, %v1212_v26  ;;  %v6061_v43 = vld [vmem:[#allocation28_spill] sm:$0xff] }
 0x219   :  { %v1269_v12 = vadd.f32 %v1268_v20, %v1267_v47  ;;  %v1299_v15 = vadd.f32 %v1298_v30, %v1214_v32  ;;  %v1218_v47 = vmul.f32 %v1146_v41, %v1146_v41  ;;  %v1220_v20 = vmul.f32 %v1148_v44, %v1148_v44  ;;  %v6062_v30 = vld [vmem:[#allocation22_spill] sm:$0xff] }
 0x21a   :  { %v1224_v32 = vmul.f32 %v1152_v18, %v1152_v18 }
 0x21b   :  { %v1270_v53 = vrot.slane %v1269_v12, 2  ;;  %v1300_v55 = vadd.f32 %v1299_v15, %v1216_v24  ;;  %v1226_v24 = vmul.f32 %v1154_v2, %v1154_v2  ;;  %v6063_v15 = vld [vmem:[#allocation29_spill] sm:$0xff]  ;;  %v1401_v2 = vadd.f32 %v4711_v56, %v6035_v62 }
 0x21d   :  { %v1271_v3 = vadd.f32 %v1270_v53, %v1269_v12  ;;  %v1301_v8 = vadd.f32 %v1300_v55, %v1218_v47  ;;  %v1222_v12 = vmul.f32 %v1150_v9, %v1150_v9  ;;  %v1156_v53 = vsub.f32 %v6061_v43, %v5005_v33 }
 0x21f   :  { %v1272_v35 = vrot.slane %v1271_v3, 1  ;;  %v1302_v19 = vadd.f32 %v1301_v8, %v1220_v20  ;;  %v1228_v47 = vmul.f32 %v1156_v53, %v1156_v53  ;;  %v5135_v53 = vld [vmem:[%s5861_s2] sm:$0x3] }
 0x221   :  { %v1273_v1 = vadd.f32 %v1272_v35, %v1271_v3  ;;  %v1303_v41 = vadd.f32 %v1302_v19, %v1222_v12  ;;  %v1158_v3 = vsub.f32 %v6062_v30, %v5005_v33  ;;  %v1160_v35 = vsub.f32 %v6063_v15, %v5005_v33  ;;  %v6064_v19 = vld [vmem:[#allocation30_spill] sm:$0xff] }
 0x222   :  { %v1399_v60 = vadd.f32 %v4701_v4, %v6064_v19  ;;  %v6065_v4 = vld [vmem:[#allocation34_spill] sm:$0xff] }
 0x223   :  { %v1315_v38 = vmul.f32 %v1273_v1, %v4974_v36  ;;  %v1304_v44 = vadd.f32 %v1303_v41, %v1224_v32  ;;  %v1230_v1 = vmul.f32 %v1158_v3, %v1158_v3  ;;  %v1232_v8 = vmul.f32 %v1160_v35, %v1160_v35 }
 0x224   :  { %v1403_v41 = vadd.f32 %v4723_v22, %v6036_v37  ;;  %v1405_v3 = vadd.f32 %v4734_v28, %v6037_v23  ;;  %v1435_v56 = vadd.f32 %v1399_v60, %v4795_v49  ;;  %v1437_v35 = vadd.f32 %v1401_v2, %v4805_v42 }
 0x225   :  { %v1317_v26 = vadd.f32 1e-05, %v1315_v38  ;;  %v1305_v55 = vadd.f32 %v1304_v44, %v1226_v24  ;;  %v1409_v44 = vadd.f32 %v4751_v10, %v6065_v4  ;;  %v1341_v22 = vperm.slane %v5135_v53, 0  ;;  %v6067_v4 = vld [vmem:[#allocation39_spill] sm:$0xff] }
 0x226   :  { %v1441_v28 = vadd.f32 %v1405_v3, %v4827_v58  ;;  %v1453_v10 = vadd.f32 %v1435_v56, %v4888_v54  ;;  %v1455_v49 = vadd.f32 %v1437_v35, %v6053_v14  ;;  %v6066_v3 = vld [vmem:[#allocation25_spill] sm:$0xff]  ;;  %v6068_v56 = vld [vmem:[#allocation26_spill] sm:$0xff] }
 0x227   :  { %4049 = vrsqrt.f32 %v1317_v26  ;;  %v1306_v9 = vadd.f32 %v1305_v55, %v1228_v47  ;;  %v1439_v47 = vadd.f32 %v1403_v41, %v4817_v34  ;;  %vm1325_vm3 = vweird.f32 %v1317_v26 }
 0x228   :  { %v1459_v34 = vadd.f32 %v1441_v28, %v4912_v27  ;;  %v1473_v14 = vmul.f32 0.25, %v1455_v49  ;;  %v6072_v28 = vld [vmem:[#allocation38_spill] sm:$0xff] }
 0x229   :  { %v1307_v38 = vadd.f32 %v1306_v9, %v1230_v1  ;;  %v1457_v42 = vadd.f32 %v1439_v47, %v4904_v63  ;;  %v1471_v1 = vmul.f32 0.25, %v1453_v10  ;;  %v6070_v47 = vld [vmem:[#allocation37_spill] sm:$0xff] }
 0x22b   :  { %v1308_v29 = vadd.f32 %v1307_v38, %v1232_v8  ;;  %v1475_v9 = vmul.f32 0.25, %v1457_v42  ;;  %v1477_v8 = vmul.f32 0.25, %v1459_v34  ;;  %v6077_v42 = vld [vmem:[#allocation53_spill] sm:$0xff] }
 0x22d   :  { %v4050_v20 = vpop.eup %4049  ;;  %v1309_v12 = vrot.slane %v1308_v29, 4 }
 0x22e   :  { %v1320_v39 = vmul.f32 %v4050_v20, %v1317_v26  ;;  %vm1326_vm2 = vweird.f32 %v4050_v20 }
 0x22f   :  { %v1310_v24 = vadd.f32 %v1309_v12, %v1308_v29  ;;  %vm1327_vm4 = vmor %vm1325_vm3, %vm1326_vm2 }
 0x230   :  { %v1321_v18 = vmul.f32 %v4050_v20, %v1320_v39  ;;  %v1407_v39 = vadd.f32 %v4744_v52, %v4662_v59  ;;  %v1445_v52 = vadd.f32 %v1409_v44, %v6047_v57  ;;  %v1394_v44 = vadd.f32 %v4769_v48, %v6067_v4  ;;  %v6076_v48 = vld [vmem:[#allocation43_spill] sm:$0xff] }
 0x231   :  { %v1311_v37 = vrot.slane %v1310_v24, 2  ;;  %v1404_v34 = vadd.f32 %v6077_v42, %v6076_v48  ;;  %v6092_v42 = vld [vmem:[#allocation10_spill] sm:$0xff] }
 0x232   :  { %v1322_v32 = vmul.f32 0.5, %v1321_v18  ;;  %v1443_v23 = vadd.f32 %v1407_v39, %v4837_v13  ;;  %v1463_v13 = vadd.f32 %v1445_v52, %v4935_v16  ;;  %v1393_v39 = vadd.f32 %v6038_v51, %v6066_v3  ;;  %v6074_v52 = vld [vmem:[#allocation41_spill] sm:$0xff]  ;;  %v6075_v51 = vld [vmem:[#allocation42_spill] sm:$0xff] }
 0x233   :  { %v1312_v29 = vadd.f32 %v1311_v37, %v1310_v24  ;;  %v6071_v37 = vld [vmem:[#allocation27_spill] sm:$0xff]  ;;  %v1400_v10 = vadd.f32 %v6046_v11, %v6074_v52  ;;  %v1402_v49 = vadd.f32 %v6048_v61, %v6075_v51  ;;  %v6086_v61 = vld [vmem:[#allocation48_spill] sm:$0xff]  ;;  %v6091_v52 = vld [vmem:[#allocation14_spill] sm:$0xff] }
 0x234   :  { %v1323_v62 = vsub.f32 1.5, %v1322_v32  ;;  %v1461_v60 = vadd.f32 %v1443_v23, %v4921_v50  ;;  %v1481_v63 = vmul.f32 0.25, %v1463_v13  ;;  %v6073_v23 = vld [vmem:[#allocation40_spill] sm:$0xff] }
 0x235   :  { %v1313_v26 = vrot.slane %v1312_v29, 1 }
 0x236   :  { %v1324_v59 = vmul.f32 %v4050_v20, %v1323_v62  ;;  %v1479_v38 = vmul.f32 0.25, %v1461_v60  ;;  %v6069_v62 = vld [vmem:[#allocation36_spill] sm:$0xff] }
 0x237   :  { %v1314_v54 = vadd.f32 %v1313_v26, %v1312_v29  ;;  %v1395_v35 = vadd.f32 %v6069_v62, %v6068_v56  ;;  %v6078_v60 = vld [vmem:[#allocation44_spill] sm:$0xff]  ;;  %v1342_v56 = vperm.slane %v5135_v53, 1  ;;  %v6089_v62 = vld [vmem:[#allocation49_spill] sm:$0xff] }
 0x238   :  { %v1328_v55 = vsel %vm1327_vm4, %v4050_v20, %v1324_v59  ;;  %v1398_v59 = vadd.f32 %v6045_v17, %v6073_v23  ;;  %v6081_v26 = vld [vmem:[#allocation8_spill] sm:$0xff]  ;;  %v6084_v17 = vld [vmem:[#allocation9_spill] sm:$0xff] }
 0x239   :  { %v5157_v58 = vmul.f32 %v1341_v22, %v1328_v55  ;;  %v1316_v19 = vmul.f32 %v1314_v54, %v4974_v36  ;;  %v1396_v22 = vadd.f32 %v4782_v5, %v6070_v47  ;;  %v1397_v36 = vadd.f32 %v6072_v28, %v6071_v37  ;;  %v6079_v55 = vld [vmem:[#allocation54_spill] sm:$0xff]  ;;  %v6080_v5 = vld [vmem:[#allocation45_spill] sm:$0xff]  ;;  %v6082_v54 = vld [vmem:[#allocation47_spill] sm:$0xff] }
 0x23a   :  { %v1406_v13 = vadd.f32 %v6079_v55, %v6078_v60  ;;  %v6090_v28 = vld [vmem:[#allocation12_spill] sm:$0xff]  ;;  %v6093_v60 = vld [vmem:[#allocation15_spill] sm:$0xff] }
 0x23b   :  { %v5161_v57 = vperm.slane %v5157_v58, 0  ;;  %v1318_v2 = vadd.f32 1e-05, %v1316_v19  ;;  %v1431_v19 = vadd.f32 %v1395_v35, %v6086_v61  ;;  %v1433_v47 = vadd.f32 %v1397_v36, %v6089_v62 }
 0x23c   :  { %v1442_v37 = vadd.f32 %v1406_v13, %v4916_v21  ;;  %v1434_v23 = vadd.f32 %v1398_v59, %v6090_v28 }
 0x23d   :  { %v5164_v27 = vmul.f32 %v5161_v57, %v1471_v1  ;;  %v5167_v50 = vmul.f32 %v5161_v57, %v1473_v14  ;;  %v5170_v20 = vmul.f32 %v5161_v57, %v1475_v9  ;;  %v5173_v16 = vmul.f32 %v5161_v57, %v1477_v8  ;;  %v6083_v9 = vld [vmem:[#allocation46_spill] sm:$0xff] }
 0x23e   :  { %v5176_v18 = vmul.f32 %v5161_v57, %v1479_v38  ;;  %v5179_v12 = vmul.f32 %v5161_v57, %v1481_v63  ;;  %4051 = vrsqrt.f32 %v1318_v2  ;;  %v1408_v1 = vadd.f32 %v6081_v26, %v6080_v5  ;;  %v6085_v38 = vld [vmem:[#allocation13_spill] sm:$0xff]  ;;  %v6096_v5 = vld [vmem:[#allocation55_spill] sm:$0xff] }
 0x23f   :  { %v1429_v14 = vadd.f32 %v1393_v39, %v6082_v54  ;;  %v1410_v8 = vadd.f32 %v6084_v17, %v6083_v9  ;;  %v1430_v11 = vadd.f32 %v1394_v44, %v6085_v38  ;;  %vm1335_vm6 = vweird.f32 %v1318_v2 }
 0x240   :  { %v1436_v44 = vadd.f32 %v1400_v10, %v6091_v52  ;;  %v1444_v51 = vadd.f32 %v1408_v1, %v4924_v46  ;;  %v1460_v53 = vadd.f32 %v1442_v37, %v6061_v43  ;;  %v1449_v46 = vadd.f32 %v1431_v19, %v6092_v42 }
 0x241   :  { %v1446_v35 = vadd.f32 %v1410_v8, %v4930_v0  ;;  %v1448_v10 = vadd.f32 %v1430_v11, %v6060_v25  ;;  %v1451_v55 = vadd.f32 %v1433_v47, %v6093_v60  ;;  %v1348_v26 = vmul.f32 %v5157_v58, %v6096_v5 }
 0x242   :  { %v1462_v21 = vadd.f32 %v1444_v51, %v6062_v30  ;;  %v1467_v54 = vmul.f32 0.25, %v1449_v46 }
 0x243   :  { %v1464_v59 = vadd.f32 %v1446_v35, %v6063_v15  ;;  %v1478_v15 = vmul.f32 0.25, %v1460_v53  ;;  %v1469_v9 = vmul.f32 0.25, %v1451_v55 }
 0x244   :  { %v4052_v32 = vpop.eup %4051  ;;  %v1480_v25 = vmul.f32 0.25, %v1462_v21 }
 0x245   :  { %v1330_v41 = vmul.f32 %v4052_v32, %v1318_v2  ;;  %vm1336_vm5 = vweird.f32 %v4052_v32  ;;  %v1482_v1 = vmul.f32 0.25, %v1464_v59 }
 0x246   :  { %vm1337_vm7 = vmor %vm1335_vm6, %vm1336_vm5 }
 0x247   :  { %v1331_v24 = vmul.f32 %v4052_v32, %v1330_v41  ;;  %v6087_v41 = vld [vmem:[#allocation11_spill] sm:$0xff] }
 0x248   :  { %v1432_v3 = vadd.f32 %v1396_v22, %v6087_v41  ;;  %v1438_v22 = vadd.f32 %v1402_v49, %v6058_v6  ;;  %v1452_v6 = vadd.f32 %v1434_v23, %v4949_v45  ;;  %v6094_v49 = vld [vmem:[#allocation19_spill] sm:$0xff] }
 0x249   :  { %v1332_v29 = vmul.f32 0.5, %v1331_v24  ;;  %v6088_v24 = vld [vmem:[#allocation24_spill] sm:$0xff] }
 0x24a   :  { %v1447_v4 = vadd.f32 %v1429_v14, %v6088_v24  ;;  %v1450_v0 = vadd.f32 %v1432_v3, %v4944_v7  ;;  %v1456_v30 = vadd.f32 %v1438_v22, %v6094_v49  ;;  %v1347_v7 = vld [vmem:[%s5862_s3] sm:$0x3]  ;;  %v1470_v11 = vmul.f32 0.25, %v1452_v6 }
 0x24b   :  { %v1333_v63 = vsub.f32 1.5, %v1332_v29  ;;  %v1440_v29 = vadd.f32 %v1404_v34, %v6059_v40  ;;  %v1454_v40 = vadd.f32 %v1436_v44, %v4954_v31  ;;  %v6095_v34 = vld [vmem:[#allocation20_spill] sm:$0xff]  ;;  %v1466_v31 = vmul.f32 0.25, %v1448_v10 }
 0x24c   :  { %v1465_v48 = vmul.f32 0.25, %v1447_v4  ;;  %v1474_v61 = vmul.f32 0.25, %v1456_v30  ;;  %v1487_v3 = vmul.f32 %v5161_v57, %v1467_v54  ;;  %v1489_v24 = vmul.f32 %v5161_v57, %v1469_v9 }
 0x24d   :  { %v1334_v39 = vmul.f32 %v4052_v32, %v1333_v63  ;;  %v1458_v13 = vadd.f32 %v1440_v29, %v6095_v34  ;;  %v1472_v63 = vmul.f32 0.25, %v1454_v40 }
 0x24e   :  { %v1485_v41 = vmul.f32 %v5161_v57, %v1465_v48 }
 0x24f   :  { %v1338_v36 = vsel %vm1337_vm7, %v4052_v32, %v1334_v39  ;;  %v1476_v58 = vmul.f32 0.25, %v1458_v13 }
 0x250   :  { %v1346_v2 = vmul.f32 %v1342_v56, %v1338_v36 }
 0x252   :  { %v1349_v43 = vmul.f32 %v1346_v2, %v5005_v33  ;;  %v1484_v32 = vperm.slane %v1346_v2, 0  ;;  %v1468_v33 = vmul.f32 0.25, %v1450_v0 }
 0x254   :  { %v1352_v45 = vrot.slane %v1349_v43, 7  ;;  %v1498_v14 = vmul.f32 %v1484_v32, %v1478_v15  ;;  %v1500_v8 = vmul.f32 %v1484_v32, %v1480_v25  ;;  %v1502_v38 = vmul.f32 %v1484_v32, %v1482_v1 }
 0x255   :  { %v1486_v4 = vmul.f32 %v1484_v32, %v1466_v31  ;;  %v1488_v56 = vmul.f32 %v1484_v32, %v1468_v33  ;;  %v1490_v37 = vmul.f32 %v1484_v32, %v1470_v11  ;;  %v1492_v39 = vmul.f32 %v1484_v32, %v1472_v63 }
 0x256   :  { %v1354_v17 = vsel %vm1353_vm8, %v1348_v26, %v1352_v45  ;;  %v1494_v28 = vmul.f32 %v1484_v32, %v1474_v61  ;;  %v1496_v23 = vmul.f32 %v1484_v32, %v1476_v58 }
 0x257   :  { %v1356_v19 = vsub.f32 %v1347_v7, %v1354_v17 }
 0x259   :  { %v1504_v62 = vperm.slane %v1356_v19, 0  ;;  %v1505_v47 = vperm.slane %v1356_v19, 1 }
 0x25b   :  { %v1508_v52 = vadd.f32 %v1504_v62, %v1485_v41  ;;  %v1509_v44 = vadd.f32 %v1505_v47, %v1486_v4  ;;  %v1510_v51 = vadd.f32 %v1504_v62, %v1487_v3  ;;  %v1511_v35 = vadd.f32 %v1505_v47, %v1488_v56 }
 0x25c   :  { %v1512_v22 = vadd.f32 %v1504_v62, %v1489_v24  ;;  %v1513_v29 = vadd.f32 %v1505_v47, %v1490_v37  ;;  %v1514_v53 = vadd.f32 %v1504_v62, %v5164_v27  ;;  %v1515_v36 = vadd.f32 %v1505_v47, %v1492_v39 }
 0x25d   :  { %v1516_v48 = vadd.f32 %v1504_v62, %v5167_v50  ;;  %v1517_v57 = vadd.f32 %v1505_v47, %v1494_v28  ;;  %v1518_v21 = vadd.f32 %v1504_v62, %v5170_v20  ;;  %v1519_v2 = vadd.f32 %v1505_v47, %v1496_v23 }
 0x25e   :  { %v1520_v59 = vadd.f32 %v1504_v62, %v5173_v16  ;;  %v1521_v10 = vadd.f32 %v1505_v47, %v1498_v14  ;;  %v1522_v42 = vadd.f32 %v1504_v62, %v5176_v18  ;;  %v1523_v46 = vadd.f32 %v1505_v47, %v1500_v8 }
 0x25f   :  { %v1524_v0 = vadd.f32 %v1504_v62, %v5179_v12  ;;  %v1525_v60 = vadd.f32 %v1505_v47, %v1502_v38  ;;  %v1526_v55 = vpack.c.bf16 %v1509_v44, %v1508_v52  ;;  %v1527_v6 = vpack.c.bf16 %v1511_v35, %v1510_v51 }
 0x260   :  { %v1528_v40 = vpack.c.bf16 %v1513_v29, %v1512_v22  ;;  %v1529_v27 = vpack.c.bf16 %v1515_v36, %v1514_v53  ;;  %v1530_v43 = vpack.c.bf16 %v1517_v57, %v1516_v48  ;;  %v1531_v32 = vpack.c.bf16 %v1519_v2, %v1518_v21 }
 0x261   :  { %v1532_v50 = vpack.c.bf16 %v1521_v10, %v1520_v59  ;;  %v1533_v49 = vpack.c.bf16 %v1523_v46, %v1522_v42  ;;  %v1534_v30 = vpack.c.bf16 %v1525_v60, %v1524_v0  ;;  %1535 = vst [vmem:[#allocation3 + $0x30] sm:$0xff] %v1526_v55 }
 0x262   :  { %1536 = vst [vmem:[#allocation3] sm:$0xff] %v1527_v6 }
 0x263   :  { %1537 = vst [vmem:[#allocation3 + $0x18] sm:$0xff] %v1528_v40 }
 0x264   :  { %1538 = vst [vmem:[#allocation3 + $0x10] sm:$0xff] %v1529_v27 }
 0x265   :  { %1539 = vst [vmem:[#allocation3 + $0x20] sm:$0xff] %v1530_v43 }
 0x266   :  { %1540 = vst [vmem:[#allocation3 + $0x28] sm:$0xff] %v1531_v32 }
 0x267   :  { %1541 = vst [vmem:[#allocation3 + $0x40] sm:$0xff] %v1532_v50 }
 0x268   :  { %1542 = vst [vmem:[#allocation3 + $0x38] sm:$0xff] %v1533_v49  ;;  %v1544_v20 = vld [vmem:[#allocation3 + $0x30] sm:$0x11]  ;;  %v1552_v16 = vld [vmem:[#allocation3 + $0x30] sm:$0x22] }
 0x269   :  { %1543 = vst [vmem:[#allocation3 + $0x8] sm:$0xff] %v1534_v30  ;;  %v1546_v18 = vrot.slane %v1544_v20, 3  ;;  %v1573_v12 = vld [vmem:[#allocation3] sm:$0x11]  ;;  %v1559_v14 = vld [vmem:[#allocation3 + $0x30] sm:$0x44] }
 0x26a   :  { %1554 = vst [vmem:[#allocation1] sm:$0xff] %v1552_v16  ;;  %v1575_v13 = vrot.slane %v1573_v12, 3  ;;  %v1602_v15 = vld [vmem:[#allocation3 + $0x18] sm:$0x11]  ;;  %v1566_v56 = vld [vmem:[#allocation3 + $0x30] sm:$0x88] }
 0x26b   :  { %v1549_v34 = vsel %vm1353_vm8, %v1544_v20, %v1546_v18  ;;  %v1604_v5 = vrot.slane %v1602_v15, 3  ;;  %v1631_v26 = vld [vmem:[#allocation3 + $0x10] sm:$0x11]  ;;  %v1581_v37 = vld [vmem:[#allocation3] sm:$0x22] }
 0x26c   :  { %1551 = vst [vmem:[#allocation4] sm:$0x3] %v1549_v34  ;;  %v1578_v25 = vsel %vm1353_vm8, %v1573_v12, %v1575_v13  ;;  %v1633_v45 = vrot.slane %v1631_v26, 3  ;;  %v1660_v1 = vld [vmem:[#allocation3 + $0x20] sm:$0x11] }
 0x26d   :  { %1580 = vst [vmem:[#allocation4 + $0x8] sm:$0x3] %v1578_v25  ;;  %v1607_v7 = vsel %vm1353_vm8, %v1602_v15, %v1604_v5  ;;  %v1662_v33 = vrot.slane %v1660_v1, 3  ;;  %v1689_v9 = vld [vmem:[#allocation3 + $0x28] sm:$0x11] }
 0x26e   :  { %1609 = vst [vmem:[#allocation4 + $0x10] sm:$0x3] %v1607_v7  ;;  %v1636_v54 = vsel %vm1353_vm8, %v1631_v26, %v1633_v45  ;;  %v1691_v8 = vrot.slane %v1689_v9, 3  ;;  %v1718_v38 = vld [vmem:[#allocation3 + $0x40] sm:$0x11] }
 0x26f   :  { %v1665_v17 = vsel %vm1353_vm8, %v1660_v1, %v1662_v33  ;;  %1638 = vst [vmem:[#allocation4 + $0x18] sm:$0x3] %v1636_v54  ;;  %v1720_v63 = vrot.slane %v1718_v38, 3  ;;  %v1747_v19 = vld [vmem:[#allocation3 + $0x38] sm:$0x11] }
 0x270   :  { %1667 = vst [vmem:[#allocation4 + $0x20] sm:$0x3] %v1665_v17  ;;  %v1694_v11 = vsel %vm1353_vm8, %v1689_v9, %v1691_v8  ;;  %v1749_v58 = vrot.slane %v1747_v19, 3  ;;  %v1776_v41 = vld [vmem:[#allocation3 + $0x8] sm:$0x11] }
 0x271   :  { %v1556_v31 = vld [vmem:[#allocation1 + $0x1] ss:$4 sm:$0xff]  ;;  %1696 = vst [vmem:[#allocation4 + $0x28] sm:$0x3] %v1694_v11  ;;  %v1723_v61 = vsel %vm1353_vm8, %v1718_v38, %v1720_v63  ;;  %v1778_v4 = vrot.slane %v1776_v41, 3 }
 0x272   :  { %1558 = vst [vmem:[#allocation4 + $0x2] sm:$0x3] %v1556_v31  ;;  %v1752_v24 = vsel %vm1353_vm8, %v1747_v19, %v1749_v58  ;;  %v1588_v28 = vld [vmem:[#allocation3] sm:$0x44]  ;;  %v1595_v52 = vld [vmem:[#allocation3] sm:$0x88] }
 0x273   :  { %1561 = vst [vmem:[#allocation1] sm:$0xff] %v1559_v14  ;;  %v1781_v62 = vsel %vm1353_vm8, %v1776_v41, %v1778_v4  ;;  %v1610_v51 = vld [vmem:[#allocation3 + $0x18] sm:$0x22]  ;;  %v1617_v22 = vld [vmem:[#allocation3 + $0x18] sm:$0x44] }
 0x274   :  { %1725 = vst [vmem:[#allocation4 + $0x30] sm:$0x3] %v1723_v61  ;;  %v1624_v53 = vld [vmem:[#allocation3 + $0x18] sm:$0x88]  ;;  %v1639_v48 = vld [vmem:[#allocation3 + $0x10] sm:$0x22] }
 0x275   :  { %1754 = vst [vmem:[#allocation4 + $0x38] sm:$0x3] %v1752_v24  ;;  %v1646_v21 = vld [vmem:[#allocation3 + $0x10] sm:$0x44]  ;;  %v1653_v59 = vld [vmem:[#allocation3 + $0x10] sm:$0x88] }
 0x276   :  { %1783 = vst [vmem:[#allocation4 + $0x40] sm:$0x3] %v1781_v62  ;;  %v1668_v42 = vld [vmem:[#allocation3 + $0x20] sm:$0x22]  ;;  %v1675_v0 = vld [vmem:[#allocation3 + $0x20] sm:$0x44] }
 0x277   :  { %v1682_v55 = vld [vmem:[#allocation3 + $0x20] sm:$0x88]  ;;  %v1697_v40 = vld [vmem:[#allocation3 + $0x28] sm:$0x22]  ;;  %v1704_v43 = vld [vmem:[#allocation3 + $0x28] sm:$0x44] }
 0x278   :  { %v1711_v50 = vld [vmem:[#allocation3 + $0x28] sm:$0x88]  ;;  %v1726_v30 = vld [vmem:[#allocation3 + $0x40] sm:$0x22]  ;;  %v1733_v16 = vld [vmem:[#allocation3 + $0x40] sm:$0x44] }
 0x279   :  { %v1740_v12 = vld [vmem:[#allocation3 + $0x40] sm:$0x88]  ;;  %v1755_v13 = vld [vmem:[#allocation3 + $0x38] sm:$0x22]  ;;  %v1762_v25 = vld [vmem:[#allocation3 + $0x38] sm:$0x44] }
 0x27a   :  { %v1563_v3 = vld [vmem:[#allocation1 + $0x2] ss:$4 sm:$0xff]  ;;  %v1769_v26 = vld [vmem:[#allocation3 + $0x38] sm:$0x88]  ;;  %v1784_v45 = vld [vmem:[#allocation3 + $0x8] sm:$0x22] }
 0x27b   :  { %1565 = vst [vmem:[#allocation4 + $0x4] sm:$0x3] %v1563_v3  ;;  %v1791_v1 = vld [vmem:[#allocation3 + $0x8] sm:$0x44]  ;;  %v3972_v54 = vld [vmem:[%s5863_s4 + $0x4] sm:$0xf] }
 0x27c   :  { %1568 = vst [vmem:[#allocation1] sm:$0xff] %v1566_v56  ;;  %v3634_v33 = vld [vmem:[%s5863_s4 + $0x120] sm:$0x10]  ;;  %v3632_v9 = vld [vmem:[%s5863_s4] sm:$0xf] }
 0x27d   :  { %v3637_v14 = vor.u32 %v3972_v54, %v3634_v33  ;;  %v4008_v17 = vld [vmem:[%s5863_s4 + $0x11c] sm:$0x10]  ;;  %v3974_v38 = vld [vmem:[%s5863_s4 + $0x14] sm:$0xf]  ;;  %v3648_v61 = vld [vmem:[%s5863_s4 + $0x10] sm:$0xf] }
 0x27e   :  { %v3633_v8 = vor.u32 %v4008_v17, %v3632_v9  ;;  %v3650_v11 = vld [vmem:[%s5863_s4 + $0x130] sm:$0x10]  ;;  %v4010_v19 = vld [vmem:[%s5863_s4 + $0x12c] sm:$0x10]  ;;  %v1798_v3 = vld [vmem:[#allocation3 + $0x8] sm:$0x88] }
 0x27f   :  { %2432 = vmatpush.bf16.xpose.msrb.mxu3 %v3637_v14  ;;  %v3653_v63 = vor.u32 %v3974_v38, %v3650_v11  ;;  %v3649_v58 = vor.u32 %v4010_v19, %v3648_v61  ;;  %v3973_v24 = vld [vmem:[%s5863_s4 + $0xc] sm:$0xf]  ;;  %v3640_v56 = vld [vmem:[%s5863_s4 + $0x8] sm:$0xf]  ;;  %v4016_v61 = vld [vmem:[%s5863_s4 + $0x15c] sm:$0x10] }
 0x280   :  { %2419 = vmatpush.bf16.xpose.msrb.mxu1 %v3633_v8  ;;  %v3642_v4 = vld [vmem:[%s5863_s4 + $0x128] sm:$0x10]  ;;  %v3672_v8 = vld [vmem:[%s5863_s4 + $0x28] sm:$0xf] }
 0x281   :  { %2484 = vmatpush.bf16.xpose.msrb.mxu2 %v3653_v63  ;;  %2471 = vmatpush.bf16.xpose.msrb.mxu0 %v3649_v58  ;;  %v3645_v62 = vor.u32 %v3973_v24, %v3642_v4  ;;  %v3977_v9 = vld [vmem:[%s5863_s4 + $0x2c] sm:$0xf]  ;;  %v4013_v11 = vld [vmem:[%s5863_s4 + $0x144] sm:$0x10]  ;;  %v3696_v63 = vld [vmem:[%s5863_s4 + $0x40] sm:$0xf] }
 0x282   :  { %v3674_v17 = vld [vmem:[%s5863_s4 + $0x148] sm:$0x10]  ;;  %v3673_v19 = vor.u32 %v4013_v11, %v3672_v8  ;;  %v3697_v58 = vor.u32 %v4016_v61, %v3696_v63 }
 0x283   :  { %v1570_v47 = vld [vmem:[#allocation1 + $0x3] ss:$4 sm:$0xff]  ;;  %v3677_v38 = vor.u32 %v3977_v9, %v3674_v17 }
 0x284   :  { %1572 = vst [vmem:[#allocation4 + $0x6] sm:$0x3] %v1570_v47  ;;  %v4009_v47 = vld [vmem:[%s5863_s4 + $0x124] sm:$0x10] }
 0x285   :  { %1583 = vst [vmem:[#allocation1] sm:$0xff] %v1581_v37  ;;  %v3664_v37 = vld [vmem:[%s5863_s4 + $0x20] sm:$0xf] }
 0x287   :  { %2458 = vmatpush.bf16.xpose.msra.mxu3 %v3645_v62 }
 0x28c   :  { %v1585_v39 = vld [vmem:[#allocation1 + $0x1] ss:$4 sm:$0xff] }
 0x28d   :  { %1587 = vst [vmem:[#allocation4 + $0xa] sm:$0x3] %v1585_v39  ;;  %v4012_v39 = vld [vmem:[%s5863_s4 + $0x13c] sm:$0x10] }
 0x28e   :  { %1590 = vst [vmem:[#allocation1] sm:$0xff] %v1588_v28 }
 0x295   :  { %v1592_v23 = vld [vmem:[#allocation1 + $0x2] ss:$4 sm:$0xff] }
 0x296   :  { %1594 = vst [vmem:[#allocation4 + $0xc] sm:$0x3] %v1592_v23  ;;  %v3641_v23 = vor.u32 %v4009_v47, %v3640_v56 }
 0x297   :  { %1597 = vst [vmem:[#allocation1] sm:$0xff] %v1595_v52  ;;  %v3665_v52 = vor.u32 %v4012_v39, %v3664_v37 }
 0x298   :  { %2445 = vmatpush.bf16.xpose.msra.mxu1 %v3641_v23 }
 0x299   :  { %2523 = vmatpush.bf16.xpose.msra.mxu0 %v3665_v52 }
 0x29e   :  { %v1599_v44 = vld [vmem:[#allocation1 + $0x3] ss:$4 sm:$0xff] }
 0x29f   :  { %1601 = vst [vmem:[#allocation4 + $0xe] sm:$0x3] %v1599_v44  ;;  %v3976_v44 = vld [vmem:[%s5863_s4 + $0x24] sm:$0xf] }
 0x2a0   :  { %1612 = vst [vmem:[#allocation1] sm:$0xff] %v1610_v51  ;;  %v3666_v51 = vld [vmem:[%s5863_s4 + $0x140] sm:$0x10] }
 0x2a7   :  { %v1614_v35 = vld [vmem:[#allocation1 + $0x1] ss:$4 sm:$0xff] }
 0x2a8   :  { %1616 = vst [vmem:[#allocation4 + $0x12] sm:$0x3] %v1614_v35  ;;  %v1805_v35 = vld [vmem:[#allocation4] sm:$0xff] }
 0x2a9   :  { %1619 = vst [vmem:[#allocation1] sm:$0xff] %v1617_v22  ;;  %v3669_v22 = vor.u32 %v3976_v44, %v3666_v51  ;;  %v3979_v44 = vld [vmem:[%s5863_s4 + $0x3c] sm:$0xf] }
 0x2aa   :  { %v3690_v51 = vld [vmem:[%s5863_s4 + $0x158] sm:$0x10] }
 0x2ab   :  { %2536 = vmatpush.bf16.xpose.msra.mxu2 %v3669_v22  ;;  %v3693_v22 = vor.u32 %v3979_v44, %v3690_v51  ;;  %v3986_v44 = vld [vmem:[%s5863_s4 + $0x74] sm:$0xf] }
 0x2ac   :  { %v3746_v51 = vld [vmem:[%s5863_s4 + $0x190] sm:$0x10] }
 0x2b0   :  { %v1621_v29 = vld [vmem:[#allocation1 + $0x2] ss:$4 sm:$0xff] }
 0x2b1   :  { %1623 = vst [vmem:[#allocation4 + $0x14] sm:$0x3] %v1621_v29 }
 0x2b2   :  { %1626 = vst [vmem:[#allocation1] sm:$0xff] %v1624_v53 }
 0x2b9   :  { %v1628_v36 = vld [vmem:[#allocation1 + $0x3] ss:$4 sm:$0xff] }
 0x2ba   :  { %1630 = vst [vmem:[#allocation4 + $0x16] sm:$0x3] %v1628_v36 }
 0x2bb   :  { %1641 = vst [vmem:[#allocation1] sm:$0xff] %v1639_v48 }
 0x2c2   :  { %v1643_v57 = vld [vmem:[#allocation1 + $0x1] ss:$4 sm:$0xff] }
 0x2c3   :  { %1645 = vst [vmem:[#allocation4 + $0x1a] sm:$0x3] %v1643_v57 }
 0x2c4   :  { %1648 = vst [vmem:[#allocation1] sm:$0xff] %v1646_v21 }
 0x2cb   :  { %v1650_v2 = vld [vmem:[#allocation1 + $0x2] ss:$4 sm:$0xff] }
 0x2cc   :  { %1652 = vst [vmem:[#allocation4 + $0x1c] sm:$0x3] %v1650_v2  ;;  %v1806_v2 = vld [vmem:[#allocation4 + $0x8] sm:$0xff] }
 0x2cd   :  { %1655 = vst [vmem:[#allocation1] sm:$0xff] %v1653_v59 }
 0x2d4   :  { %v1657_v10 = vld [vmem:[#allocation1 + $0x3] ss:$4 sm:$0xff] }
 0x2d5   :  { %1659 = vst [vmem:[#allocation4 + $0x1e] sm:$0x3] %v1657_v10 }
 0x2d6   :  { %1670 = vst [vmem:[#allocation1] sm:$0xff] %v1668_v42  ;;  %v3975_v42 = vld [vmem:[%s5863_s4 + $0x1c] sm:$0xf] }
 0x2dd   :  { %v1672_v46 = vld [vmem:[#allocation1 + $0x1] ss:$4 sm:$0xff] }
 0x2de   :  { %1674 = vst [vmem:[#allocation4 + $0x22] sm:$0x3] %v1672_v46  ;;  %v3658_v46 = vld [vmem:[%s5863_s4 + $0x138] sm:$0x10] }
 0x2df   :  { %1677 = vst [vmem:[#allocation1] sm:$0xff] %v1675_v0  ;;  %v3656_v0 = vld [vmem:[%s5863_s4 + $0x18] sm:$0xf] }
 0x2e6   :  { %v1679_v60 = vld [vmem:[#allocation1 + $0x2] ss:$4 sm:$0xff] }
 0x2e7   :  { %1681 = vst [vmem:[#allocation4 + $0x24] sm:$0x3] %v1679_v60  ;;  %v3661_v60 = vor.u32 %v3975_v42, %v3658_v46 }
 0x2e8   :  { %1684 = vst [vmem:[#allocation1] sm:$0xff] %v1682_v55  ;;  %v4011_v55 = vld [vmem:[%s5863_s4 + $0x134] sm:$0x10] }
 0x2ef   :  { %v1686_v6 = vld [vmem:[#allocation1 + $0x3] ss:$4 sm:$0xff] }
 0x2f0   :  { %1688 = vst [vmem:[#allocation4 + $0x26] sm:$0x3] %v1686_v6  ;;  %v3680_v6 = vld [vmem:[%s5863_s4 + $0x30] sm:$0xf] }
 0x2f1   :  { %1699 = vst [vmem:[#allocation1] sm:$0xff] %v1697_v40  ;;  %v4014_v40 = vld [vmem:[%s5863_s4 + $0x14c] sm:$0x10] }
 0x2f8   :  { %v1701_v27 = vld [vmem:[#allocation1 + $0x1] ss:$4 sm:$0xff] }
 0x2f9   :  { %1703 = vst [vmem:[#allocation4 + $0x2a] sm:$0x3] %v1701_v27  ;;  %v3657_v27 = vor.u32 %v4011_v55, %v3656_v0 }
 0x2fa   :  { %1706 = vst [vmem:[#allocation1] sm:$0xff] %v1704_v43  ;;  %v3681_v43 = vor.u32 %v4014_v40, %v3680_v6 }
 0x301   :  { %v1708_v32 = vld [vmem:[#allocation1 + $0x2] ss:$4 sm:$0xff] }
 0x302   :  { %1710 = vst [vmem:[#allocation4 + $0x2c] sm:$0x3] %v1708_v32  ;;  %v3978_v32 = vld [vmem:[%s5863_s4 + $0x34] sm:$0xf] }
 0x303   :  { %1713 = vst [vmem:[#allocation1] sm:$0xff] %v1711_v50  ;;  %v3682_v50 = vld [vmem:[%s5863_s4 + $0x150] sm:$0x10] }
 0x30a   :  { %v1715_v49 = vld [vmem:[#allocation1 + $0x3] ss:$4 sm:$0xff] }
 0x30b   :  { %1717 = vst [vmem:[#allocation4 + $0x2e] sm:$0x3] %v1715_v49  ;;  %v3685_v49 = vor.u32 %v3978_v32, %v3682_v50  ;;  %v3706_v32 = vld [vmem:[%s5863_s4 + $0x168] sm:$0x10]  ;;  %v3704_v50 = vld [vmem:[%s5863_s4 + $0x48] sm:$0xf] }
 0x30c   :  { %1728 = vst [vmem:[#allocation1] sm:$0xff] %v1726_v30 }
 0x312   :  { %v1810_v6 = vld [vmem:[#allocation4 + $0x28] sm:$0xff] }
 0x313   :  { %v1730_v20 = vld [vmem:[#allocation1 + $0x1] ss:$4 sm:$0xff] }
 0x314   :  { %1732 = vst [vmem:[#allocation4 + $0x32] sm:$0x3] %v1730_v20 }
 0x315   :  { %1735 = vst [vmem:[#allocation1] sm:$0xff] %v1733_v16 }
 0x31c   :  { %v1737_v18 = vld [vmem:[#allocation1 + $0x2] ss:$4 sm:$0xff] }
 0x31d   :  { %1739 = vst [vmem:[#allocation4 + $0x34] sm:$0x3] %v1737_v18 }
 0x31e   :  { %1742 = vst [vmem:[#allocation1] sm:$0xff] %v1740_v12 }
 0x325   :  { %v1744_v34 = vld [vmem:[#allocation1 + $0x3] ss:$4 sm:$0xff] }
 0x326   :  { %1746 = vst [vmem:[#allocation4 + $0x36] sm:$0x3] %v1744_v34 }
 0x327   :  { %1757 = vst [vmem:[#allocation1] sm:$0xff] %v1755_v13  ;;  %v1807_v13 = vld [vmem:[#allocation4 + $0x10] sm:$0xff] }
 0x32e   :  { %v1759_v15 = vld [vmem:[#allocation1 + $0x1] ss:$4 sm:$0xff] }
 0x32f   :  { %1761 = vst [vmem:[#allocation4 + $0x3a] sm:$0x3] %v1759_v15 }
 0x330   :  { %1764 = vst [vmem:[#allocation1] sm:$0xff] %v1762_v25 }
 0x337   :  { %v1766_v5 = vld [vmem:[#allocation1 + $0x2] ss:$4 sm:$0xff] }
 0x338   :  { %1768 = vst [vmem:[#allocation4 + $0x3c] sm:$0x3] %v1766_v5  ;;  %v1808_v5 = vld [vmem:[#allocation4 + $0x18] sm:$0xff] }
 0x339   :  { %1771 = vst [vmem:[#allocation1] sm:$0xff] %v1769_v26 }
 0x340   :  { %v1773_v7 = vld [vmem:[#allocation1 + $0x3] ss:$4 sm:$0xff] }
 0x341   :  { %1775 = vst [vmem:[#allocation4 + $0x3e] sm:$0x3] %v1773_v7 }
 0x342   :  { %1786 = vst [vmem:[#allocation1] sm:$0xff] %v1784_v45 }
 0x349   :  { %v1788_v31 = vld [vmem:[#allocation1 + $0x1] ss:$4 sm:$0xff] }
 0x34a   :  { %1790 = vst [vmem:[#allocation4 + $0x42] sm:$0x3] %v1788_v31 }
 0x34b   :  { %1793 = vst [vmem:[#allocation1] sm:$0xff] %v1791_v1 }
 0x352   :  { %v1795_v41 = vld [vmem:[#allocation1 + $0x2] ss:$4 sm:$0xff] }
 0x353   :  { %1797 = vst [vmem:[#allocation4 + $0x44] sm:$0x3] %v1795_v41  ;;  %v3980_v41 = vld [vmem:[%s5863_s4 + $0x44] sm:$0xf] }
 0x354   :  { %1800 = vst [vmem:[#allocation1] sm:$0xff] %v1798_v3  ;;  %v3698_v3 = vld [vmem:[%s5863_s4 + $0x160] sm:$0x10] }
 0x355   :  { %v3701_v24 = vor.u32 %v3980_v41, %v3698_v3  ;;  %v3720_v41 = vld [vmem:[%s5863_s4 + $0x58] sm:$0xf] }
 0x356   :  { %v4019_v3 = vld [vmem:[%s5863_s4 + $0x174] sm:$0x10] }
 0x35b   :  { %v1802_v28 = vld [vmem:[#allocation1 + $0x3] ss:$4 sm:$0xff] }
 0x35c   :  { %1804 = vst [vmem:[#allocation4 + $0x46] sm:$0x3] %v1802_v28  ;;  %v1809_v28 = vld [vmem:[#allocation4 + $0x20] sm:$0xff] }
 0x35d   :  { %1891 = vst [vmem:[#allocation1] ss:$9 sm:$0xff] %v1805_v35  ;;  %v3688_v35 = vld [vmem:[%s5863_s4 + $0x38] sm:$0xf] }
 0x364   :  { %v1892_v29 = vld [vmem:[#allocation1] sm:$0xff]  ;;  %v1893_v53 = vld [vmem:[#allocation1 + $0x9] sm:$0xff]  ;;  %v1894_v36 = vld [vmem:[#allocation1 + $0x12] sm:$0xff] }
 0x365   :  { %v1895_v48 = vld [vmem:[#allocation1 + $0x1b] sm:$0xff]  ;;  %v1896_v57 = vld [vmem:[#allocation1 + $0x24] sm:$0xff]  ;;  %v1897_v21 = vld [vmem:[#allocation1 + $0x2d] sm:$0xff]  ;;  %2420 = vmatmul.bf16.vlgmr.msrb.gmra.mxu1 %v1892_v29  ;;  %2433 = vmatmul.bf16.vlgmr.msrb.gmra.mxu3 %v1893_v53 }
 0x366   :  { %v5304_v59 = vld [vmem:[#allocation1 + $0x36] sm:$0xff]  ;;  %v5306_v10 = vld [vmem:[#allocation1 + $0x3f] sm:$0xff]  ;;  %2472 = vmatmul.bf16.vlgmr.msrb.gmra.mxu0 %v1896_v57  ;;  %2485 = vmatmul.bf16.vlgmr.msrb.gmra.mxu2 %v1897_v21  ;;  %v4015_v29 = vld [vmem:[%s5863_s4 + $0x154] sm:$0x10] }
 0x367   :  { %1901 = vst [vmem:[#allocation1] ss:$9 sm:$0xff] %v1806_v2  ;;  %2510 = vmatpush.bf16.xpose.msrb.mxu3 %v3661_v60  ;;  %2497 = vmatpush.bf16.xpose.msrb.mxu1 %v3657_v27  ;;  %v3712_v53 = vld [vmem:[%s5863_s4 + $0x50] sm:$0xf]  ;;  %v3982_v21 = vld [vmem:[%s5863_s4 + $0x54] sm:$0xf] }
 0x368   :  { %2575 = vmatpush.bf16.xpose.msrb.mxu0 %v3681_v43  ;;  %2588 = vmatpush.bf16.xpose.msrb.mxu2 %v3685_v49  ;;  %v3714_v2 = vld [vmem:[%s5863_s4 + $0x170] sm:$0x10]  ;;  %v3981_v43 = vld [vmem:[%s5863_s4 + $0x4c] sm:$0xf]  ;;  %v4017_v49 = vld [vmem:[%s5863_s4 + $0x164] sm:$0x10] }
 0x369   :  { %v3717_v46 = vor.u32 %v3982_v21, %v3714_v2 }
 0x36e   :  { %v1902_v30 = vld [vmem:[#allocation1] sm:$0xff]  ;;  %v1903_v20 = vld [vmem:[#allocation1 + $0x9] sm:$0xff]  ;;  %v5332_v16 = vld [vmem:[#allocation1 + $0x12] sm:$0xff] }
 0x36f   :  { %v5334_v18 = vld [vmem:[#allocation1 + $0x1b] sm:$0xff]  ;;  %v1906_v12 = vld [vmem:[#allocation1 + $0x24] sm:$0xff]  ;;  %v1907_v34 = vld [vmem:[#allocation1 + $0x2d] sm:$0xff] }
 0x370   :  { %v5336_v15 = vld [vmem:[#allocation1 + $0x36] sm:$0xff]  ;;  %v5338_v25 = vld [vmem:[#allocation1 + $0x3f] sm:$0xff] }
 0x371   :  { %1911 = vst [vmem:[#allocation1] ss:$9 sm:$0xff] %v1807_v13  ;;  %v3709_v13 = vor.u32 %v3981_v43, %v3706_v32  ;;  %v3749_v32 = vor.u32 %v3986_v44, %v3746_v51  ;;  %v3987_v44 = vld [vmem:[%s5863_s4 + $0x7c] sm:$0xf] }
 0x372   :  { %v3754_v51 = vld [vmem:[%s5863_s4 + $0x198] sm:$0x10] }
 0x375   :  { %2446 = vmatmul.bf16.vlgmr.msra.gmra.mxu1 %v1894_v36  ;;  %2459 = vmatmul.bf16.vlgmr.msra.gmra.mxu3 %v1895_v48  ;;  %v4018_v36 = vld [vmem:[%s5863_s4 + $0x16c] sm:$0x10]  ;;  %v3689_v48 = vor.u32 %v4015_v29, %v3688_v35 }
 0x376   :  { %2524 = vmatmul.bf16.vlgmr.msra.gmra.mxu0 %v1902_v30  ;;  %2537 = vmatmul.bf16.vlgmr.msra.gmra.mxu2 %v1903_v20  ;;  %v3713_v57 = vor.u32 %v4018_v36, %v3712_v53  ;;  %v3728_v30 = vld [vmem:[%s5863_s4 + $0x60] sm:$0xf] }
 0x377   :  { %2562 = vmatpush.bf16.xpose.msra.mxu3 %v3677_v38  ;;  %2549 = vmatpush.bf16.xpose.msra.mxu1 %v3673_v19  ;;  %v4020_v20 = vld [vmem:[%s5863_s4 + $0x17c] sm:$0x10] }
 0x378   :  { %v5340_v26 = vld [vmem:[#allocation1] sm:$0xff]  ;;  %v5342_v7 = vld [vmem:[#allocation1 + $0x9] sm:$0xff]  ;;  %v5344_v45 = vld [vmem:[#allocation1 + $0x12] sm:$0xff]  ;;  %2627 = vmatpush.bf16.xpose.msra.mxu0 %v3697_v58  ;;  %2640 = vmatpush.bf16.xpose.msra.mxu2 %v3701_v24  ;;  %v3729_v9 = vor.u32 %v4020_v20, %v3728_v30 }
 0x379   :  { %v5346_v1 = vld [vmem:[#allocation1 + $0x1b] sm:$0xff]  ;;  %v5348_v31 = vld [vmem:[#allocation1 + $0x24] sm:$0xff]  ;;  %v5350_v54 = vld [vmem:[#allocation1 + $0x2d] sm:$0xff] }
 0x37a   :  { %v5352_v33 = vld [vmem:[#allocation1 + $0x36] sm:$0xff]  ;;  %v5354_v14 = vld [vmem:[#allocation1 + $0x3f] sm:$0xff]  ;;  %v3744_v24 = vld [vmem:[%s5863_s4 + $0x70] sm:$0xf] }
 0x37b   :  { %1921 = vst [vmem:[#allocation1] ss:$9 sm:$0xff] %v1808_v5  ;;  %v3705_v5 = vor.u32 %v4017_v49, %v3704_v50 }
 0x382   :  { %v5380_v4 = vld [vmem:[#allocation1] sm:$0xff]  ;;  %v5382_v56 = vld [vmem:[#allocation1 + $0x9] sm:$0xff]  ;;  %v5384_v62 = vld [vmem:[#allocation1 + $0x12] sm:$0xff] }
 0x383   :  { %v5386_v47 = vld [vmem:[#allocation1 + $0x1b] sm:$0xff]  ;;  %v5388_v37 = vld [vmem:[#allocation1 + $0x24] sm:$0xff]  ;;  %v5390_v39 = vld [vmem:[#allocation1 + $0x2d] sm:$0xff] }
 0x384   :  { %v5392_v23 = vld [vmem:[#allocation1 + $0x36] sm:$0xff]  ;;  %v5394_v52 = vld [vmem:[#allocation1 + $0x3f] sm:$0xff] }
 0x385   :  { %1931 = vst [vmem:[#allocation1] ss:$9 sm:$0xff] %v1809_v28  ;;  %2498 = vmatmul.bf16.vlgmr.msrb.gmra.mxu1 %v5304_v59  ;;  %2511 = vmatmul.bf16.vlgmr.msrb.gmra.mxu3 %v5306_v10  ;;  %v4022_v28 = vld [vmem:[%s5863_s4 + $0x18c] sm:$0x10] }
 0x386   :  { %2576 = vmatmul.bf16.vlgmr.msrb.gmra.mxu0 %v1906_v12  ;;  %2589 = vmatmul.bf16.vlgmr.msrb.gmra.mxu2 %v1907_v34  ;;  %v3984_v12 = vld [vmem:[%s5863_s4 + $0x64] sm:$0xf]  ;;  %v3745_v43 = vor.u32 %v4022_v28, %v3744_v24 }
 0x387   :  { %2614 = vmatpush.bf16.xpose.msrb.mxu3 %v3693_v22  ;;  %2601 = vmatpush.bf16.xpose.msrb.mxu1 %v3689_v48  ;;  %v3730_v34 = vld [vmem:[%s5863_s4 + $0x180] sm:$0x10] }
 0x388   :  { %2679 = vmatpush.bf16.xpose.msrb.mxu0 %v3713_v57  ;;  %2692 = vmatpush.bf16.xpose.msrb.mxu2 %v3717_v46  ;;  %v3733_v17 = vor.u32 %v3984_v12, %v3730_v34  ;;  %v1812_v57 = vld [vmem:[#allocation4 + $0x38] sm:$0xff]  ;;  %v3985_v34 = vld [vmem:[%s5863_s4 + $0x6c] sm:$0xf] }
 0x38c   :  { %v5422_v59 = vld [vmem:[#allocation1] sm:$0xff]  ;;  %v5424_v10 = vld [vmem:[#allocation1 + $0x9] sm:$0xff]  ;;  %v5426_v42 = vld [vmem:[#allocation1 + $0x12] sm:$0xff] }
 0x38d   :  { %v5428_v0 = vld [vmem:[#allocation1 + $0x1b] sm:$0xff]  ;;  %v5430_v60 = vld [vmem:[#allocation1 + $0x24] sm:$0xff]  ;;  %v5432_v55 = vld [vmem:[#allocation1 + $0x2d] sm:$0xff] }
 0x38e   :  { %v5434_v40 = vld [vmem:[#allocation1 + $0x36] sm:$0xff]  ;;  %v5436_v27 = vld [vmem:[#allocation1 + $0x3f] sm:$0xff] }
 0x38f   :  { %1941 = vst [vmem:[#allocation1] ss:$9 sm:$0xff] %v1810_v6  ;;  %v3721_v6 = vor.u32 %v4019_v3, %v3720_v41 }
 0x395   :  { %2550 = vmatmul.bf16.vlgmr.msra.gmra.mxu1 %v5332_v16  ;;  %2563 = vmatmul.bf16.vlgmr.msra.gmra.mxu3 %v5334_v18  ;;  %v1811_v16 = vld [vmem:[#allocation4 + $0x30] sm:$0xff] }
 0x396   :  { %v5464_v8 = vld [vmem:[#allocation1] sm:$0xff]  ;;  %v5466_v38 = vld [vmem:[#allocation1 + $0x9] sm:$0xff]  ;;  %v5468_v11 = vld [vmem:[#allocation1 + $0x12] sm:$0xff]  ;;  %2628 = vmatmul.bf16.vlgmr.msra.gmra.mxu0 %v5340_v26  ;;  %2641 = vmatmul.bf16.vlgmr.msra.gmra.mxu2 %v5342_v7 }
 0x397   :  { %v5472_v63 = vld [vmem:[#allocation1 + $0x1b] sm:$0xff]  ;;  %v5474_v61 = vld [vmem:[#allocation1 + $0x24] sm:$0xff]  ;;  %v5476_v19 = vld [vmem:[#allocation1 + $0x2d] sm:$0xff]  ;;  %2666 = vmatpush.bf16.xpose.msra.mxu3 %v3709_v13  ;;  %2653 = vmatpush.bf16.xpose.msra.mxu1 %v3705_v5 }
 0x398   :  { %v5478_v18 = vld [vmem:[#allocation1 + $0x36] sm:$0xff]  ;;  %v5480_v58 = vld [vmem:[#allocation1 + $0x3f] sm:$0xff]  ;;  %2731 = vmatpush.bf16.xpose.msra.mxu0 %v3729_v9  ;;  %2744 = vmatpush.bf16.xpose.msra.mxu2 %v3733_v17  ;;  %v3722_v7 = vld [vmem:[%s5863_s4 + $0x178] sm:$0x10] }
 0x399   :  { %1951 = vst [vmem:[#allocation1] ss:$9 sm:$0xff] %v1811_v16  ;;  %v3983_v26 = vld [vmem:[%s5863_s4 + $0x5c] sm:$0xf]  ;;  %v3738_v13 = vld [vmem:[%s5863_s4 + $0x188] sm:$0x10] }
 0x39a   :  { %v3725_v46 = vor.u32 %v3983_v26, %v3722_v7  ;;  %v3736_v5 = vld [vmem:[%s5863_s4 + $0x68] sm:$0xf]  ;;  %v3760_v17 = vld [vmem:[%s5863_s4 + $0x80] sm:$0xf]  ;;  %v3988_v26 = vld [vmem:[%s5863_s4 + $0x84] sm:$0xf]  ;;  %v3741_v41 = vor.u32 %v3985_v34, %v3738_v13 }
 0x39b   :  { %v4021_v9 = vld [vmem:[%s5863_s4 + $0x184] sm:$0x10]  ;;  %v4024_v16 = vld [vmem:[%s5863_s4 + $0x19c] sm:$0x10]  ;;  %v3762_v7 = vld [vmem:[%s5863_s4 + $0x1a0] sm:$0x10] }
 0x39c   :  { %v3737_v3 = vor.u32 %v4021_v9, %v3736_v5  ;;  %v3761_v24 = vor.u32 %v4024_v16, %v3760_v17  ;;  %v3765_v28 = vor.u32 %v3988_v26, %v3762_v7  ;;  %v3989_v34 = vld [vmem:[%s5863_s4 + $0x8c] sm:$0xf]  ;;  %v3992_v5 = vld [vmem:[%s5863_s4 + $0xa4] sm:$0xf] }
 0x39d   :  { %v3770_v13 = vld [vmem:[%s5863_s4 + $0x1a8] sm:$0x10]  ;;  %v3794_v9 = vld [vmem:[%s5863_s4 + $0x1c0] sm:$0x10] }
 0x39e   :  { %v3773_v17 = vor.u32 %v3989_v34, %v3770_v13  ;;  %v3797_v7 = vor.u32 %v3992_v5, %v3794_v9  ;;  %v4029_v13 = vld [vmem:[%s5863_s4 + $0x1c4] sm:$0x10]  ;;  %v3826_v5 = vld [vmem:[%s5863_s4 + $0x1e0] sm:$0x10] }
 0x3a0   :  { %v5506_v35 = vld [vmem:[#allocation1] sm:$0xff]  ;;  %v5508_v22 = vld [vmem:[#allocation1 + $0x9] sm:$0xff]  ;;  %v5510_v29 = vld [vmem:[#allocation1 + $0x12] sm:$0xff] }
 0x3a1   :  { %v5512_v53 = vld [vmem:[#allocation1 + $0x1b] sm:$0xff]  ;;  %v5514_v36 = vld [vmem:[#allocation1 + $0x24] sm:$0xff]  ;;  %v5516_v48 = vld [vmem:[#allocation1 + $0x2d] sm:$0xff] }
 0x3a2   :  { %v5518_v21 = vld [vmem:[#allocation1 + $0x36] sm:$0xff]  ;;  %v5520_v2 = vld [vmem:[#allocation1 + $0x3f] sm:$0xff] }
 0x3a3   :  { %1961 = vst [vmem:[#allocation1] ss:$9 sm:$0xff] %v1812_v57  ;;  %v3990_v57 = vld [vmem:[%s5863_s4 + $0x94] sm:$0xf] }
 0x3a5   :  { %2602 = vmatmul.bf16.vlgmr.msrb.gmra.mxu1 %v5336_v15  ;;  %2615 = vmatmul.bf16.vlgmr.msrb.gmra.mxu3 %v5338_v25  ;;  %v1813_v25 = vld [vmem:[#allocation4 + $0x40] sm:$0xff] }
 0x3a6   :  { %2680 = vmatmul.bf16.vlgmr.msrb.gmra.mxu0 %v5348_v31  ;;  %2693 = vmatmul.bf16.vlgmr.msrb.gmra.mxu2 %v5350_v54 }
 0x3a7   :  { %2718 = vmatpush.bf16.xpose.msrb.mxu3 %v3725_v46  ;;  %2705 = vmatpush.bf16.xpose.msrb.mxu1 %v3721_v6  ;;  %v3778_v46 = vld [vmem:[%s5863_s4 + $0x1b0] sm:$0x10]  ;;  %v3757_v6 = vor.u32 %v3987_v44, %v3754_v51  ;;  %v4046_v51 = vld [vmem:[%s5864_s5] ss:$0 sm:$0xff] }
 0x3a8   :  { %2783 = vmatpush.bf16.xpose.msrb.mxu0 %v3745_v43  ;;  %2796 = vmatpush.bf16.xpose.msrb.mxu2 %v3749_v32 }
 0x3aa   :  { %v5526_v50 = vld [vmem:[#allocation1 + $0x36] sm:$0xff]  ;;  %v5528_v49 = vld [vmem:[#allocation1 + $0x3f] sm:$0xff]  ;;  %v5532_v20 = vld [vmem:[#allocation1 + $0x9] sm:$0xff] }
 0x3ab   :  { %v5530_v30 = vld [vmem:[#allocation1] sm:$0xff]  ;;  %v5536_v15 = vld [vmem:[#allocation1 + $0x2d] sm:$0xff] }
 0x3ac   :  { %v5534_v12 = vld [vmem:[#allocation1 + $0x24] sm:$0xff]  ;;  %v5538_v31 = vld [vmem:[#allocation1 + $0x12] sm:$0xff]  ;;  %v5540_v54 = vld [vmem:[#allocation1 + $0x1b] sm:$0xff] }
 0x3ad   :  { %1971 = vst [vmem:[#allocation1] ss:$9 sm:$0xff] %v1813_v25  ;;  %v3781_v25 = vor.u32 %v3990_v57, %v3778_v46 }
 0x3b5   :  { %2654 = vmatmul.bf16.vlgmr.msra.gmra.mxu1 %v5344_v45  ;;  %2667 = vmatmul.bf16.vlgmr.msra.gmra.mxu3 %v5346_v1  ;;  %v3752_v45 = vld [vmem:[%s5863_s4 + $0x78] sm:$0xf] }
 0x3b6   :  { %2732 = vmatmul.bf16.vlgmr.msra.gmra.mxu0 %v5380_v4  ;;  %2745 = vmatmul.bf16.vlgmr.msra.gmra.mxu2 %v5382_v56  ;;  %v4023_v1 = vld [vmem:[%s5863_s4 + $0x194] sm:$0x10]  ;;  %v3776_v4 = vld [vmem:[%s5863_s4 + $0x90] sm:$0xf] }
 0x3b7   :  { %2770 = vmatpush.bf16.xpose.msra.mxu3 %v3741_v41  ;;  %2757 = vmatpush.bf16.xpose.msra.mxu1 %v3737_v3  ;;  %v4026_v56 = vld [vmem:[%s5863_s4 + $0x1ac] sm:$0x10]  ;;  %v3753_v43 = vor.u32 %v4023_v1, %v3752_v45  ;;  %v3991_v41 = vld [vmem:[%s5863_s4 + $0x9c] sm:$0xf] }
 0x3b8   :  { %2835 = vmatpush.bf16.xpose.msra.mxu0 %v3761_v24  ;;  %2848 = vmatpush.bf16.xpose.msra.mxu2 %v3765_v28  ;;  %v3777_v32 = vor.u32 %v4026_v56, %v3776_v4  ;;  %v3786_v3 = vld [vmem:[%s5863_s4 + $0x1b8] sm:$0x10]  ;;  %v3994_v24 = vld [vmem:[%s5863_s4 + $0xb4] sm:$0xf] }
 0x3b9   :  { %v3810_v28 = vld [vmem:[%s5863_s4 + $0x1d0] sm:$0x10]  ;;  %v3789_v1 = vor.u32 %v3991_v41, %v3786_v3 }
 0x3ba   :  { %v3813_v57 = vor.u32 %v3994_v24, %v3810_v28 }
 0x3c5   :  { %2706 = vmatmul.bf16.vlgmr.msrb.gmra.mxu1 %v5352_v33  ;;  %2719 = vmatmul.bf16.vlgmr.msrb.gmra.mxu3 %v5354_v14  ;;  %v3768_v33 = vld [vmem:[%s5863_s4 + $0x88] sm:$0xf] }
 0x3c6   :  { %2784 = vmatmul.bf16.vlgmr.msrb.gmra.mxu0 %v5388_v37  ;;  %2797 = vmatmul.bf16.vlgmr.msrb.gmra.mxu2 %v5390_v39  ;;  %v4025_v14 = vld [vmem:[%s5863_s4 + $0x1a4] sm:$0x10]  ;;  %v3792_v37 = vld [vmem:[%s5863_s4 + $0xa0] sm:$0xf] }
 0x3c7   :  { %2822 = vmatpush.bf16.xpose.msrb.mxu3 %v3757_v6  ;;  %2809 = vmatpush.bf16.xpose.msrb.mxu1 %v3753_v43  ;;  %v4028_v39 = vld [vmem:[%s5863_s4 + $0x1bc] sm:$0x10]  ;;  %v3769_v16 = vor.u32 %v4025_v14, %v3768_v33 }
 0x3c8   :  { %2887 = vmatpush.bf16.xpose.msrb.mxu0 %v3777_v32  ;;  %2900 = vmatpush.bf16.xpose.msrb.mxu2 %v3781_v25  ;;  %v3793_v26 = vor.u32 %v4028_v39, %v3792_v37  ;;  %v3824_v33 = vld [vmem:[%s5863_s4 + $0xc0] sm:$0xf]  ;;  %v3996_v39 = vld [vmem:[%s5863_s4 + $0xc4] sm:$0xf] }
 0x3c9   :  { %v4032_v37 = vld [vmem:[%s5863_s4 + $0x1dc] sm:$0x10]  ;;  %v3829_v3 = vor.u32 %v3996_v39, %v3826_v5  ;;  %v4033_v39 = vld [vmem:[%s5863_s4 + $0x1e4] sm:$0x10] }
 0x3ca   :  { %v3825_v41 = vor.u32 %v4032_v37, %v3824_v33  ;;  %v3856_v5 = vld [vmem:[%s5863_s4 + $0xe0] sm:$0xf] }
 0x3d5   :  { %2758 = vmatmul.bf16.vlgmr.msra.gmra.mxu1 %v5384_v62  ;;  %2771 = vmatmul.bf16.vlgmr.msra.gmra.mxu3 %v5386_v47  ;;  %v3784_v62 = vld [vmem:[%s5863_s4 + $0x98] sm:$0xf] }
 0x3d6   :  { %2836 = vmatmul.bf16.vlgmr.msra.gmra.mxu0 %v5422_v59  ;;  %2849 = vmatmul.bf16.vlgmr.msra.gmra.mxu2 %v5424_v10  ;;  %v4027_v47 = vld [vmem:[%s5863_s4 + $0x1b4] sm:$0x10]  ;;  %v3808_v59 = vld [vmem:[%s5863_s4 + $0xb0] sm:$0xf] }
 0x3d7   :  { %2874 = vmatpush.bf16.xpose.msra.mxu3 %v3773_v17  ;;  %2861 = vmatpush.bf16.xpose.msra.mxu1 %v3769_v16  ;;  %v4030_v10 = vld [vmem:[%s5863_s4 + $0x1cc] sm:$0x10]  ;;  %v3785_v4 = vor.u32 %v4027_v47, %v3784_v62 }
 0x3d8   :  { %2939 = vmatpush.bf16.xpose.msra.mxu0 %v3793_v26  ;;  %2952 = vmatpush.bf16.xpose.msra.mxu2 %v3797_v7  ;;  %v3809_v56 = vor.u32 %v4030_v10, %v3808_v59 }
 0x3e2   :  { %v2421_v44 = vpop.f32.mrf.mxu1 }
 0x3e3   :  { %v2473_v45 = vpop.f32.mrf.mxu0  ;;  %v2422_v46 = vadd.f32 %v4046_v51, %v2421_v44  ;;  %v4031_v51 = vld [vmem:[%s5863_s4 + $0x1d4] sm:$0x10] }
 0x3e5   :  { %2810 = vmatmul.bf16.vlgmr.msrb.gmra.mxu1 %v5392_v23  ;;  %2823 = vmatmul.bf16.vlgmr.msrb.gmra.mxu3 %v5394_v52  ;;  %v3993_v23 = vld [vmem:[%s5863_s4 + $0xac] sm:$0xf] }
 0x3e6   :  { %2888 = vmatmul.bf16.vlgmr.msrb.gmra.mxu0 %v5430_v60  ;;  %2901 = vmatmul.bf16.vlgmr.msrb.gmra.mxu2 %v5432_v55  ;;  %v3802_v52 = vld [vmem:[%s5863_s4 + $0x1c8] sm:$0x10]  ;;  %v3800_v55 = vld [vmem:[%s5863_s4 + $0xa8] sm:$0xf] }
 0x3e7   :  { %2926 = vmatpush.bf16.xpose.msrb.mxu3 %v3789_v1  ;;  %2913 = vmatpush.bf16.xpose.msrb.mxu1 %v3785_v4  ;;  %v3805_v26 = vor.u32 %v3993_v23, %v3802_v52  ;;  %v3801_v7 = vor.u32 %v4029_v13, %v3800_v55  ;;  %v4034_v4 = vld [vmem:[%s5863_s4 + $0x1ec] sm:$0x10] }
 0x3e8   :  { %v2434_v6 = vpop.f32.mrf.mxu3  ;;  %2991 = vmatpush.bf16.xpose.msrb.mxu0 %v3809_v56  ;;  %3004 = vmatpush.bf16.xpose.msrb.mxu2 %v3813_v57  ;;  %v3998_v56 = vld [vmem:[%s5863_s4 + $0xd4] sm:$0xf] }
 0x3e9   :  { %v2435_v43 = vadd.f32 %v2434_v6, %v2422_v46  ;;  %v2486_v32 = vpop.f32.mrf.mxu2  ;;  %v3842_v57 = vld [vmem:[%s5863_s4 + $0x1f0] sm:$0x10] }
 0x3ea   :  { %v2423_v25 = vpop.f32.mrf.mxu1  ;;  %v3845_v23 = vor.u32 %v3998_v56, %v3842_v57  ;;  %v4002_v56 = vld [vmem:[%s5863_s4 + $0xf4] sm:$0xf] }
 0x3eb   :  { %v2475_v34 = vpop.f32.mrf.mxu0  ;;  %v3874_v57 = vld [vmem:[%s5863_s4 + $0x210] sm:$0x10] }
 0x3f0   :  { %v2436_v60 = vpop.f32.mrf.mxu3 }
 0x3f1   :  { %v2488_v14 = vpop.f32.mrf.mxu2 }
 0x3f2   :  { %v2447_v9 = vpop.f32.mrf.mxu1 }
 0x3f3   :  { %v2448_v17 = vadd.f32 %v2447_v9, %v2435_v43  ;;  %v2525_v16 = vpop.f32.mrf.mxu0 }
 0x3f5   :  { %2862 = vmatmul.bf16.vlgmr.msra.gmra.mxu1 %v5426_v42  ;;  %2875 = vmatmul.bf16.vlgmr.msra.gmra.mxu3 %v5428_v0  ;;  %v3995_v42 = vld [vmem:[%s5863_s4 + $0xbc] sm:$0xf] }
 0x3f6   :  { %2940 = vmatmul.bf16.vlgmr.msra.gmra.mxu0 %v5464_v8  ;;  %2953 = vmatmul.bf16.vlgmr.msra.gmra.mxu2 %v5466_v38  ;;  %v3818_v0 = vld [vmem:[%s5863_s4 + $0x1d8] sm:$0x10]  ;;  %v3816_v38 = vld [vmem:[%s5863_s4 + $0xb8] sm:$0xf] }
 0x3f7   :  { %2978 = vmatpush.bf16.xpose.msra.mxu3 %v3805_v26  ;;  %2965 = vmatpush.bf16.xpose.msra.mxu1 %v3801_v7  ;;  %v3817_v25 = vor.u32 %v4031_v51, %v3816_v38  ;;  %v3858_v26 = vld [vmem:[%s5863_s4 + $0x200] sm:$0x10]  ;;  %v4035_v51 = vld [vmem:[%s5863_s4 + $0x1f4] sm:$0x10] }
 0x3f8   :  { %v2460_v62 = vpop.f32.mrf.mxu3  ;;  %3043 = vmatpush.bf16.xpose.msra.mxu0 %v3825_v41  ;;  %3056 = vmatpush.bf16.xpose.msra.mxu2 %v3829_v3 }
 0x3f9   :  { %v2461_v47 = vadd.f32 %v2460_v62, %v2448_v17  ;;  %v2538_v59 = vpop.f32.mrf.mxu2  ;;  %v4036_v17 = vld [vmem:[%s5863_s4 + $0x1fc] sm:$0x10] }
 0x3fa   :  { %v2449_v10 = vpop.f32.mrf.mxu1 }
 0x3fb   :  { %v2474_v24 = vadd.f32 %v2473_v45, %v2461_v47  ;;  %v2527_v28 = vpop.f32.mrf.mxu0  ;;  %v3840_v45 = vld [vmem:[%s5863_s4 + $0xd0] sm:$0xf] }
 0x3fc   :  { %v3841_v34 = vor.u32 %v4034_v4, %v3840_v45  ;;  %v3872_v45 = vld [vmem:[%s5863_s4 + $0xf0] sm:$0xf] }
 0x3fd   :  { %v2487_v44 = vadd.f32 %v2486_v32, %v2474_v24  ;;  %v3821_v32 = vor.u32 %v3995_v42, %v3818_v0  ;;  %v4038_v4 = vld [vmem:[%s5863_s4 + $0x20c] sm:$0x10] }
 0x400   :  { %v2462_v8 = vpop.f32.mrf.mxu3 }
 0x401   :  { %v2540_v1 = vpop.f32.mrf.mxu2 }
 0x402   :  { %v2499_v46 = vpop.f32.mrf.mxu1 }
 0x403   :  { %v2500_v6 = vadd.f32 %v2499_v46, %v2487_v44  ;;  %v2577_v43 = vpop.f32.mrf.mxu0 }
 0x405   :  { %2914 = vmatmul.bf16.vlgmr.msrb.gmra.mxu1 %v5434_v40  ;;  %2927 = vmatmul.bf16.vlgmr.msrb.gmra.mxu3 %v5436_v27  ;;  %v3997_v40 = vld [vmem:[%s5863_s4 + $0xcc] sm:$0xf] }
 0x406   :  { %2992 = vmatmul.bf16.vlgmr.msrb.gmra.mxu0 %v5474_v61  ;;  %3005 = vmatmul.bf16.vlgmr.msrb.gmra.mxu2 %v5476_v19  ;;  %v3834_v27 = vld [vmem:[%s5863_s4 + $0x1e8] sm:$0x10]  ;;  %v3832_v19 = vld [vmem:[%s5863_s4 + $0xc8] sm:$0xf] }
 0x407   :  { %3030 = vmatpush.bf16.xpose.msrb.mxu3 %v3821_v32  ;;  %3017 = vmatpush.bf16.xpose.msrb.mxu1 %v3817_v25  ;;  %v3837_v62 = vor.u32 %v3997_v40, %v3834_v27  ;;  %v3833_v47 = vor.u32 %v4033_v39, %v3832_v19  ;;  %v4037_v40 = vld [vmem:[%s5863_s4 + $0x204] sm:$0x10]  ;;  %v3888_v27 = vld [vmem:[%s5863_s4 + $0x100] sm:$0xf]  ;;  %v4004_v39 = vld [vmem:[%s5863_s4 + $0x104] sm:$0xf] }
 0x408   :  { %v2512_v52 = vpop.f32.mrf.mxu3  ;;  %3095 = vmatpush.bf16.xpose.msrb.mxu0 %v3841_v34  ;;  %3108 = vmatpush.bf16.xpose.msrb.mxu2 %v3845_v23  ;;  %v3873_v34 = vor.u32 %v4038_v4, %v3872_v45  ;;  %v3877_v23 = vor.u32 %v4002_v56, %v3874_v57  ;;  %v4040_v19 = vld [vmem:[%s5863_s4 + $0x21c] sm:$0x10] }
 0x409   :  { %v2513_v60 = vadd.f32 %v2512_v52, %v2500_v6  ;;  %v2590_v55 = vpop.f32.mrf.mxu2 }
 0x40a   :  { %v2501_v13 = vpop.f32.mrf.mxu1 }
 0x40b   :  { %v2526_v33 = vadd.f32 %v2525_v16, %v2513_v60  ;;  %v2579_v14 = vpop.f32.mrf.mxu0  ;;  %v4000_v16 = vld [vmem:[%s5863_s4 + $0xe4] sm:$0xf] }
 0x40c   :  { %v3861_v10 = vor.u32 %v4000_v16, %v3858_v26 }
 0x40d   :  { %v2539_v37 = vadd.f32 %v2538_v59, %v2526_v33  ;;  %v3857_v59 = vor.u32 %v4036_v17, %v3856_v5  ;;  %v3890_v5 = vld [vmem:[%s5863_s4 + $0x220] sm:$0x10] }
 0x410   :  { %v2514_v61 = vpop.f32.mrf.mxu3 }
 0x411   :  { %v2592_v9 = vpop.f32.mrf.mxu2 }
 0x412   :  { %v2551_v7 = vpop.f32.mrf.mxu1 }
 0x413   :  { %v2552_v41 = vadd.f32 %v2551_v7, %v2539_v37  ;;  %v2629_v3 = vpop.f32.mrf.mxu0 }
 0x415   :  { %2966 = vmatmul.bf16.vlgmr.msra.gmra.mxu1 %v5468_v11  ;;  %2979 = vmatmul.bf16.vlgmr.msra.gmra.mxu3 %v5472_v63  ;;  %v3999_v11 = vld [vmem:[%s5863_s4 + $0xdc] sm:$0xf] }
 0x416   :  { %3044 = vmatmul.bf16.vlgmr.msra.gmra.mxu0 %v5506_v35  ;;  %3057 = vmatmul.bf16.vlgmr.msra.gmra.mxu2 %v5508_v22  ;;  %v3850_v63 = vld [vmem:[%s5863_s4 + $0x1f8] sm:$0x10]  ;;  %v3848_v22 = vld [vmem:[%s5863_s4 + $0xd8] sm:$0xf] }
 0x417   :  { %3082 = vmatpush.bf16.xpose.msra.mxu3 %v3837_v62  ;;  %3069 = vmatpush.bf16.xpose.msra.mxu1 %v3833_v47  ;;  %v3853_v32 = vor.u32 %v3999_v11, %v3850_v63  ;;  %v3849_v25 = vor.u32 %v4035_v51, %v3848_v22  ;;  %v4006_v11 = vld [vmem:[%s5863_s4 + $0x114] sm:$0xf] }
 0x418   :  { %v2564_v24 = vpop.f32.mrf.mxu3  ;;  %3147 = vmatpush.bf16.xpose.msra.mxu0 %v3857_v59  ;;  %3160 = vmatpush.bf16.xpose.msra.mxu2 %v3861_v10  ;;  %v3906_v63 = vld [vmem:[%s5863_s4 + $0x230] sm:$0x10] }
 0x419   :  { %v2565_v28 = vadd.f32 %v2564_v24, %v2552_v41  ;;  %v2642_v44 = vpop.f32.mrf.mxu2  ;;  %v3889_v41 = vor.u32 %v4040_v19, %v3888_v27  ;;  %v3909_v56 = vor.u32 %v4006_v11, %v3906_v63 }
 0x41a   :  { %v2553_v42 = vpop.f32.mrf.mxu1 }
 0x41b   :  { %v2578_v0 = vadd.f32 %v2577_v43, %v2565_v28  ;;  %v2631_v8 = vpop.f32.mrf.mxu0  ;;  %v4039_v42 = vld [vmem:[%s5863_s4 + $0x214] sm:$0x10] }
 0x41d   :  { %v2591_v38 = vadd.f32 %v2590_v55, %v2578_v0  ;;  %v3904_v0 = vld [vmem:[%s5863_s4 + $0x110] sm:$0xf] }
 0x420   :  { %v2566_v35 = vpop.f32.mrf.mxu3 }
 0x421   :  { %v2644_v1 = vpop.f32.mrf.mxu2 }
 0x422   :  { %v2603_v46 = vpop.f32.mrf.mxu1 }
 0x423   :  { %v2604_v6 = vadd.f32 %v2603_v46, %v2591_v38  ;;  %v2681_v43 = vpop.f32.mrf.mxu0  ;;  %v4042_v38 = vld [vmem:[%s5863_s4 + $0x22c] sm:$0x10] }
 0x424   :  { %v3905_v4 = vor.u32 %v4042_v38, %v3904_v0 }
 0x425   :  { %3018 = vmatmul.bf16.vlgmr.msrb.gmra.mxu1 %v5478_v18  ;;  %3031 = vmatmul.bf16.vlgmr.msrb.gmra.mxu3 %v5480_v58  ;;  %v4001_v18 = vld [vmem:[%s5863_s4 + $0xec] sm:$0xf] }
 0x426   :  { %3096 = vmatmul.bf16.vlgmr.msrb.gmra.mxu0 %v5514_v36  ;;  %3109 = vmatmul.bf16.vlgmr.msrb.gmra.mxu2 %v5516_v48  ;;  %v3866_v58 = vld [vmem:[%s5863_s4 + $0x208] sm:$0x10]  ;;  %v3864_v48 = vld [vmem:[%s5863_s4 + $0xe8] sm:$0xf] }
 0x427   :  { %3134 = vmatpush.bf16.xpose.msrb.mxu3 %v3853_v32  ;;  %3121 = vmatpush.bf16.xpose.msrb.mxu1 %v3849_v25  ;;  %v3869_v26 = vor.u32 %v4001_v18, %v3866_v58  ;;  %v3865_v7 = vor.u32 %v4037_v40, %v3864_v48  ;;  %v1973_v18 = vld [vmem:[#allocation1 + $0x9] sm:$0xff] }
 0x428   :  { %v2616_v52 = vpop.f32.mrf.mxu3  ;;  %3199 = vmatpush.bf16.xpose.msrb.mxu0 %v3873_v34  ;;  %3212 = vmatpush.bf16.xpose.msrb.mxu2 %v3877_v23  ;;  %v4041_v23 = vld [vmem:[%s5863_s4 + $0x224] sm:$0x10] }
 0x429   :  { %v2617_v60 = vadd.f32 %v2616_v52, %v2604_v6  ;;  %v2694_v55 = vpop.f32.mrf.mxu2 }
 0x42a   :  { %v2605_v13 = vpop.f32.mrf.mxu1 }
 0x42b   :  { %v2630_v33 = vadd.f32 %v2629_v3, %v2617_v60  ;;  %v2683_v14 = vpop.f32.mrf.mxu0  ;;  %v3893_v3 = vor.u32 %v4004_v39, %v3890_v5  ;;  %v4007_v39 = vld [vmem:[%s5863_s4 + $0x11c] sm:$0xf]  ;;  %v3912_v5 = vld [vmem:[%s5863_s4 + $0x118] sm:$0xf] }
 0x42d   :  { %v2643_v37 = vadd.f32 %v2642_v44, %v2630_v33 }
 0x430   :  { %v2618_v36 = vpop.f32.mrf.mxu3 }
 0x431   :  { %v2696_v61 = vpop.f32.mrf.mxu2 }
 0x432   :  { %v2655_v9 = vpop.f32.mrf.mxu1 }
 0x433   :  { %v2656_v17 = vadd.f32 %v2655_v9, %v2643_v37  ;;  %v2733_v16 = vpop.f32.mrf.mxu0  ;;  %v1972_v37 = vld [vmem:[#allocation1] sm:$0xff]  ;;  %v4043_v9 = vld [vmem:[%s5863_s4 + $0x234] sm:$0x10] }
 0x435   :  { %3070 = vmatmul.bf16.vlgmr.msra.gmra.mxu1 %v5510_v29  ;;  %3083 = vmatmul.bf16.vlgmr.msra.gmra.mxu3 %v5512_v53  ;;  %v4003_v29 = vld [vmem:[%s5863_s4 + $0xfc] sm:$0xf] }
 0x436   :  { %3148 = vmatmul.bf16.vlgmr.msra.gmra.mxu0 %v5530_v30  ;;  %3161 = vmatmul.bf16.vlgmr.msra.gmra.mxu2 %v5532_v20  ;;  %v3882_v53 = vld [vmem:[%s5863_s4 + $0x218] sm:$0x10]  ;;  %v3880_v20 = vld [vmem:[%s5863_s4 + $0xf8] sm:$0xf] }
 0x437   :  { %3186 = vmatpush.bf16.xpose.msra.mxu3 %v3869_v26  ;;  %3173 = vmatpush.bf16.xpose.msra.mxu1 %v3865_v7  ;;  %v3885_v45 = vor.u32 %v4003_v29, %v3882_v53  ;;  %v3881_v1 = vor.u32 %v4039_v42, %v3880_v20 }
 0x438   :  { %v2668_v62 = vpop.f32.mrf.mxu3  ;;  %3251 = vmatpush.bf16.xpose.msra.mxu0 %v3889_v41  ;;  %3264 = vmatpush.bf16.xpose.msra.mxu2 %v3893_v3  ;;  %v3913_v3 = vor.u32 %v4043_v9, %v3912_v5 }
 0x439   :  { %v2669_v47 = vadd.f32 %v2668_v62, %v2656_v17  ;;  %v2746_v59 = vpop.f32.mrf.mxu2  ;;  %v1976_v62 = vld [vmem:[#allocation1 + $0x24] sm:$0xff] }
 0x43a   :  { %v2657_v10 = vpop.f32.mrf.mxu1 }
 0x43b   :  { %v2682_v24 = vadd.f32 %v2681_v43, %v2669_v47  ;;  %v2735_v28 = vpop.f32.mrf.mxu0  ;;  %v1977_v47 = vld [vmem:[#allocation1 + $0x2d] sm:$0xff] }
 0x43d   :  { %v2695_v44 = vadd.f32 %v2694_v55, %v2682_v24 }
 0x440   :  { %v2670_v30 = vpop.f32.mrf.mxu3 }
 0x441   :  { %v2748_v8 = vpop.f32.mrf.mxu2 }
 0x442   :  { %v2707_v35 = vpop.f32.mrf.mxu1  ;;  %v1974_v8 = vld [vmem:[#allocation1 + $0x12] sm:$0xff] }
 0x443   :  { %v2708_v22 = vadd.f32 %v2707_v35, %v2695_v44  ;;  %v2785_v51 = vpop.f32.mrf.mxu0 }
 0x445   :  { %3122 = vmatmul.bf16.vlgmr.msrb.gmra.mxu1 %v5518_v21  ;;  %3135 = vmatmul.bf16.vlgmr.msrb.gmra.mxu3 %v5520_v2  ;;  %v4005_v21 = vld [vmem:[%s5863_s4 + $0x10c] sm:$0xf] }
 0x446   :  { %3200 = vmatmul.bf16.vlgmr.msrb.gmra.mxu0 %v5534_v12  ;;  %3213 = vmatmul.bf16.vlgmr.msrb.gmra.mxu2 %v5536_v15  ;;  %v3898_v12 = vld [vmem:[%s5863_s4 + $0x228] sm:$0x10]  ;;  %v3896_v15 = vld [vmem:[%s5863_s4 + $0x108] sm:$0xf] }
 0x447   :  { %3238 = vmatpush.bf16.xpose.msrb.mxu3 %v3885_v45  ;;  %3225 = vmatpush.bf16.xpose.msrb.mxu1 %v3881_v1  ;;  %v3901_v33 = vor.u32 %v4005_v21, %v3898_v12  ;;  %v3897_v14 = vor.u32 %v4041_v23, %v3896_v15 }
 0x448   :  { %v2720_v57 = vpop.f32.mrf.mxu3  ;;  %3303 = vmatpush.bf16.xpose.msrb.mxu0 %v3905_v4  ;;  %3316 = vmatpush.bf16.xpose.msrb.mxu2 %v3909_v56 }
 0x449   :  { %v2721_v46 = vadd.f32 %v2720_v57, %v2708_v22  ;;  %v2798_v6 = vpop.f32.mrf.mxu2 }
 0x44a   :  { %v2709_v43 = vpop.f32.mrf.mxu1 }
 0x44b   :  { %v2734_v32 = vadd.f32 %v2733_v16, %v2721_v46  ;;  %v2787_v25 = vpop.f32.mrf.mxu0  ;;  %v1979_v43 = vld [vmem:[#allocation1 + $0x3f] sm:$0xff] }
 0x44d   :  { %v2747_v34 = vadd.f32 %v2746_v59, %v2734_v32 }
 0x450   :  { %v2722_v2 = vpop.f32.mrf.mxu3 }
 0x451   :  { %v2800_v52 = vpop.f32.mrf.mxu2 }
 0x452   :  { %v2759_v60 = vpop.f32.mrf.mxu1 }
 0x453   :  { %v2760_v55 = vadd.f32 %v2759_v60, %v2747_v34  ;;  %v2837_v13 = vpop.f32.mrf.mxu0 }
 0x455   :  { %3174 = vmatmul.bf16.vlgmr.msra.gmra.mxu1 %v5538_v31  ;;  %3187 = vmatmul.bf16.vlgmr.msra.gmra.mxu3 %v5540_v54  ;;  %v3914_v54 = vld [vmem:[%s5863_s4 + $0x238] sm:$0x10]  ;;  %s4084_s4 = smov [#allocation5]  }
 0x456   :  { %3252 = vmatmul.bf16.vlgmr.msra.gmra.mxu0 %v1972_v37  ;;  %3265 = vmatmul.bf16.vlgmr.msra.gmra.mxu2 %v1973_v18  ;;  %v3917_v41 = vor.u32 %v4007_v39, %v3914_v54  ;;  %s3367_s22 = sshll.u32 %s4084_s4, 4  ;;  %s3368_s22 = int_to_ptr.vmem [resolvable:$true] %s3367_s22 }
 0x457   :  { %3290 = vmatpush.bf16.xpose.msra.mxu3 %v3901_v33  ;;  %3277 = vmatpush.bf16.xpose.msra.mxu1 %v3897_v14 }
 0x458   :  { %v2772_v58 = vpop.f32.mrf.mxu3 }
 0x459   :  { %v2773_v36 = vadd.f32 %v2772_v58, %v2760_v55  ;;  %v2850_v48 = vpop.f32.mrf.mxu2 }
 0x45a   :  { %v2761_v40 = vpop.f32.mrf.mxu1 }
 0x45b   :  { %v2786_v27 = vadd.f32 %v2785_v51, %v2773_v36  ;;  %v2839_v61 = vpop.f32.mrf.mxu0 }
 0x45d   :  { %v2799_v19 = vadd.f32 %v2798_v6, %v2786_v27  ;;  %v1978_v6 = vld [vmem:[#allocation1 + $0x36] sm:$0xff] }
 0x460   :  { %v2774_v31 = vpop.f32.mrf.mxu3 }
 0x461   :  { %v2852_v17 = vpop.f32.mrf.mxu2 }
 0x462   :  { %v2811_v16 = vpop.f32.mrf.mxu1 }
 0x463   :  { %v2812_v26 = vadd.f32 %v2811_v16, %v2799_v19  ;;  %v2889_v7 = vpop.f32.mrf.mxu0 }
 0x465   :  { %3226 = vmatmul.bf16.vlgmr.msrb.gmra.mxu1 %v5526_v50  ;;  %3239 = vmatmul.bf16.vlgmr.msrb.gmra.mxu3 %v5528_v49  ;;  %v1975_v49 = vld [vmem:[#allocation1 + $0x1b] sm:$0xff] }
 0x466   :  { %3304 = vmatmul.bf16.vlgmr.msrb.gmra.mxu0 %v1976_v62  ;;  %3317 = vmatmul.bf16.vlgmr.msrb.gmra.mxu2 %v1977_v47 }
 0x467   :  { %3342 = vmatpush.bf16.xpose.msrb.mxu3 %v3917_v41  ;;  %3329 = vmatpush.bf16.xpose.msrb.mxu1 %v3913_v3 }
 0x468   :  { %v2824_v59 = vpop.f32.mrf.mxu3 }
 0x469   :  { %v2825_v10 = vadd.f32 %v2824_v59, %v2812_v26  ;;  %v2902_v24 = vpop.f32.mrf.mxu2 }
 0x46a   :  { %v2813_v28 = vpop.f32.mrf.mxu1 }
 0x46b   :  { %v2838_v44 = vadd.f32 %v2837_v13, %v2825_v10  ;;  %v2891_v29 = vpop.f32.mrf.mxu0 }
 0x46d   :  { %v2851_v53 = vadd.f32 %v2850_v48, %v2838_v44 }
 0x470   :  { %v2826_v30 = vpop.f32.mrf.mxu3 }
 0x471   :  { %v2904_v20 = vpop.f32.mrf.mxu2 }
 0x472   :  { %v2863_v42 = vpop.f32.mrf.mxu1 }
 0x473   :  { %v2864_v0 = vadd.f32 %v2863_v42, %v2851_v53  ;;  %v2941_v50 = vpop.f32.mrf.mxu0 }
 0x475   :  { %3278 = vmatmul.bf16.vlgmr.msra.gmra.mxu1 %v1974_v8  ;;  %3291 = vmatmul.bf16.vlgmr.msra.gmra.mxu3 %v1975_v49 }
 0x478   :  { %v2876_v38 = vpop.f32.mrf.mxu3 }
 0x479   :  { %v2877_v11 = vadd.f32 %v2876_v38, %v2864_v0  ;;  %v2954_v63 = vpop.f32.mrf.mxu2 }
 0x47a   :  { %v2865_v35 = vpop.f32.mrf.mxu1 }
 0x47b   :  { %v2890_v22 = vadd.f32 %v2889_v7, %v2877_v11  ;;  %v2943_v51 = vpop.f32.mrf.mxu0 }
 0x47d   :  { %v2903_v45 = vadd.f32 %v2902_v24, %v2890_v22 }
 0x480   :  { %v2878_v1 = vpop.f32.mrf.mxu3 }
 0x481   :  { %v2956_v4 = vpop.f32.mrf.mxu2 }
 0x482   :  { %v2915_v56 = vpop.f32.mrf.mxu1 }
 0x483   :  { %v2916_v57 = vadd.f32 %v2915_v56, %v2903_v45  ;;  %v2993_v46 = vpop.f32.mrf.mxu0 }
 0x485   :  { %3330 = vmatmul.bf16.vlgmr.msrb.gmra.mxu1 %v1978_v6  ;;  %3343 = vmatmul.bf16.vlgmr.msrb.gmra.mxu3 %v1979_v43 }
 0x488   :  { %v2928_v32 = vpop.f32.mrf.mxu3 }
 0x489   :  { %v2929_v25 = vadd.f32 %v2928_v32, %v2916_v57  ;;  %v3006_v34 = vpop.f32.mrf.mxu2 }
 0x48a   :  { %v2917_v21 = vpop.f32.mrf.mxu1 }
 0x48b   :  { %v2942_v2 = vadd.f32 %v2941_v50, %v2929_v25  ;;  %v2995_v12 = vpop.f32.mrf.mxu0 }
 0x48d   :  { %v2955_v15 = vadd.f32 %v2954_v63, %v2942_v2 }
 0x490   :  { %v2930_v23 = vpop.f32.mrf.mxu3 }
 0x491   :  { %v3008_v52 = vpop.f32.mrf.mxu2 }
 0x492   :  { %v2967_v60 = vpop.f32.mrf.mxu1 }
 0x493   :  { %v3045_v55 = vpop.f32.mrf.mxu0  ;;  %v2968_v13 = vadd.f32 %v2967_v60, %v2955_v15 }
 0x498   :  { %v2980_v33 = vpop.f32.mrf.mxu3 }
 0x499   :  { %v2981_v14 = vadd.f32 %v2980_v33, %v2968_v13  ;;  %v3058_v37 = vpop.f32.mrf.mxu2 }
 0x49a   :  { %v2969_v18 = vpop.f32.mrf.mxu1 }
 0x49b   :  { %v2994_v58 = vadd.f32 %v2993_v46, %v2981_v14  ;;  %v3047_v36 = vpop.f32.mrf.mxu0 }
 0x49d   :  { %v3007_v48 = vadd.f32 %v3006_v34, %v2994_v58 }
 0x4a0   :  { %v2982_v40 = vpop.f32.mrf.mxu3 }
 0x4a1   :  { %v3060_v27 = vpop.f32.mrf.mxu2 }
 0x4a2   :  { %v3019_v61 = vpop.f32.mrf.mxu1 }
 0x4a3   :  { %v3097_v19 = vpop.f32.mrf.mxu0  ;;  %v3020_v39 = vadd.f32 %v3019_v61, %v3007_v48 }
 0x4a8   :  { %v3032_v31 = vpop.f32.mrf.mxu3 }
 0x4a9   :  { %v3033_v54 = vadd.f32 %v3032_v31, %v3020_v39  ;;  %v3110_v5 = vpop.f32.mrf.mxu2 }
 0x4aa   :  { %v3021_v9 = vpop.f32.mrf.mxu1 }
 0x4ab   :  { %v3046_v17 = vadd.f32 %v3045_v55, %v3033_v54  ;;  %v3099_v16 = vpop.f32.mrf.mxu0 }
 0x4ad   :  { %v3059_v26 = vadd.f32 %v3058_v37, %v3046_v17 }
 0x4b0   :  { %v3034_v7 = vpop.f32.mrf.mxu3 }
 0x4b1   :  { %v3112_v41 = vpop.f32.mrf.mxu2 }
 0x4b2   :  { %v3071_v3 = vpop.f32.mrf.mxu1 }
 0x4b3   :  { %v3149_v62 = vpop.f32.mrf.mxu0  ;;  %v3072_v0 = vadd.f32 %v3071_v3, %v3059_v26 }
 0x4b8   :  { %v3084_v47 = vpop.f32.mrf.mxu3 }
 0x4b9   :  { %v3162_v59 = vpop.f32.mrf.mxu2  ;;  %v3085_v8 = vadd.f32 %v3084_v47, %v3072_v0 }
 0x4ba   :  { %v3073_v10 = vpop.f32.mrf.mxu1 }
 0x4bb   :  { %v3151_v24 = vpop.f32.mrf.mxu0  ;;  %v3098_v38 = vadd.f32 %v3097_v19, %v3085_v8 }
 0x4bd   :  { %v3111_v22 = vadd.f32 %v3110_v5, %v3098_v38 }
 0x4c0   :  { %v3086_v28 = vpop.f32.mrf.mxu3 }
 0x4c1   :  { %v3164_v44 = vpop.f32.mrf.mxu2 }
 0x4c2   :  { %v3123_v29 = vpop.f32.mrf.mxu1 }
 0x4c3   :  { %v3201_v53 = vpop.f32.mrf.mxu0  ;;  %v3124_v51 = vadd.f32 %v3123_v29, %v3111_v22 }
 0x4c8   :  { %v3136_v30 = vpop.f32.mrf.mxu3 }
 0x4c9   :  { %v3214_v20 = vpop.f32.mrf.mxu2  ;;  %v3137_v1 = vadd.f32 %v3136_v30, %v3124_v51 }
 0x4ca   :  { %v3125_v42 = vpop.f32.mrf.mxu1 }
 0x4cb   :  { %v3203_v50 = vpop.f32.mrf.mxu0  ;;  %v3150_v46 = vadd.f32 %v3149_v62, %v3137_v1 }
 0x4cd   :  { %v3163_v43 = vadd.f32 %v3162_v59, %v3150_v46 }
 0x4d0   :  { %v3138_v49 = vpop.f32.mrf.mxu3 }
 0x4d1   :  { %v3216_v11 = vpop.f32.mrf.mxu2 }
 0x4d2   :  { %v3175_v63 = vpop.f32.mrf.mxu1 }
 0x4d3   :  { %v3253_v35 = vpop.f32.mrf.mxu0  ;;  %v3176_v34 = vadd.f32 %v3175_v63, %v3163_v43 }
 0x4d8   :  { %v3188_v45 = vpop.f32.mrf.mxu3 }
 0x4d9   :  { %v3266_v4 = vpop.f32.mrf.mxu2  ;;  %v3189_v2 = vadd.f32 %v3188_v45, %v3176_v34 }
 0x4da   :  { %v3177_v56 = vpop.f32.mrf.mxu1 }
 0x4db   :  { %v3255_v57 = vpop.f32.mrf.mxu0  ;;  %v3202_v15 = vadd.f32 %v3201_v53, %v3189_v2 }
 0x4dd   :  { %v3215_v55 = vadd.f32 %v3214_v20, %v3202_v15 }
 0x4e0   :  { %v3190_v6 = vpop.f32.mrf.mxu3 }
 0x4e1   :  { %v3268_v32 = vpop.f32.mrf.mxu2 }
 0x4e2   :  { %v3227_v25 = vpop.f32.mrf.mxu1 }
 0x4e3   :  { %v3305_v21 = vpop.f32.mrf.mxu0  ;;  %v3228_v13 = vadd.f32 %v3227_v25, %v3215_v55 }
 0x4e8   :  { %v3240_v12 = vpop.f32.mrf.mxu3 }
 0x4e9   :  { %v3318_v23 = vpop.f32.mrf.mxu2  ;;  %v3241_v14 = vadd.f32 %v3240_v12, %v3228_v13 }
 0x4ea   :  { %v3229_v52 = vpop.f32.mrf.mxu1 }
 0x4eb   :  { %v3307_v60 = vpop.f32.mrf.mxu0  ;;  %v3254_v58 = vadd.f32 %v3253_v35, %v3241_v14 }
 0x4ed   :  { %v3267_v48 = vadd.f32 %v3266_v4, %v3254_v58 }
 0x4f0   :  { %v3242_v33 = vpop.f32.mrf.mxu3 }
 0x4f1   :  { %v3320_v37 = vpop.f32.mrf.mxu2 }
 0x4f2   :  { %v3279_v18 = vpop.f32.mrf.mxu1 }
 0x4f3   :  { %v3280_v27 = vadd.f32 %v3279_v18, %v3267_v48 }
 0x4f8   :  { %v3292_v36 = vpop.f32.mrf.mxu3 }
 0x4f9   :  { %v3293_v61 = vadd.f32 %v3292_v36, %v3280_v27 }
 0x4fa   :  { %v3281_v40 = vpop.f32.mrf.mxu1 }
 0x4fb   :  { %v3306_v39 = vadd.f32 %v3305_v21, %v3293_v61 }
 0x4fd   :  { %v3319_v54 = vadd.f32 %v3318_v23, %v3306_v39 }
 0x500   :  { %v3294_v19 = vpop.f32.mrf.mxu3 }
 0x502   :  { %v3331_v31 = vpop.f32.mrf.mxu1 }
 0x503   :  { %v3332_v5 = vadd.f32 %v3331_v31, %v3319_v54 }
 0x508   :  { %v3344_v9 = vpop.f32.mrf.mxu3 }
 0x509   :  { %v3345_v17 = vadd.f32 %v3344_v9, %v3332_v5 }
 0x50a   :  { %v3333_v16 = vpop.f32.mrf.mxu1 }
 0x50b   :  { %v3349_v26 = vsel %vm3348_vm9, %v3345_v17, -inf }
 0x50c   :  { %3350 = vmax.xlane.f32.xlu0 %v3349_v26 }
 0x510   :  { %v3346_v7 = vpop.f32.mrf.mxu3 }
 0x57f   :  { %v3351_v41 = vpop.xlane.xlu0 %3350 }
 0x580   :  { %v3352_v3 = vsub.f32 %v3345_v17, %v3351_v41 }
 0x582   :  { %v3353_v62 = vmul.f32 1.442695, %v3352_v3 }
 0x584   :  { %4053 = vpow2.f32 %v3353_v62 }
 0x58a   :  { %v4054_v47 = vpop.eup %4053 }
 0x58b   :  { %v3355_v59 = vsel %vm3348_vm9, %v4054_v47, 0.0 }
 0x58c   :  { %3356 = vadd.xlane.f32.xlu0 %v3355_v59 }
 0x5ff   :  { %v3357_v10 = vpop.xlane.xlu0 %3356 }
 0x600   :  { %4055 = vlog2.f32 %v3357_v10 }
 0x606   :  { %v4056_v24 = vpop.eup %4055 }
 0x607   :  { %v3359_v28 = vmul.f32 0.6931472, %v4056_v24 }
 0x609   :  { %v3360_v44 = vsub.f32 %v3352_v3, %v3359_v28 }
 0x60b   :  { %3361 = vst.msk [vmem:[#allocation5] sm:$0x3] %vm3348_vm9, %v3360_v44 }
 0x60c   :  { %3372 = dma.vmem_to_hbm [thread:$0]  %s3368_s22, 32, %s3370_s25, [#allocation6]  }
 0x60d   :  { %4081 = dma.done.wait [#allocation6], 32  }
 0x60e   :  { %4082 = vsyncadd [#allocation6], 4294967264 }
 0x60f   :  { %3377 = vsyncpa [#allocation6], 1 }

</bundles_post_ra>
